<compile_context>
chip_gen: v7x
topology: tpu7x:2x2x1
jax: 0.10.0
libtpu: 0.0.40
codegen_flags: <defaults>
</compile_context>

<pallas_src>
import functools

import numpy as np
import jax
import jax.numpy as jnp
from jax import lax
from jax.experimental import pallas as pl
from jax.experimental.pallas import tpu as pltpu


# --------------------------------------------------------------------------- #
#  Trace-time helpers                                                         #
# --------------------------------------------------------------------------- #
def _lerp_taps(n_in, n_out):
    """(i0, i1, frac) per output index for bilinear resize, align_corners=True."""
    taps = []
    for j in range(n_out):
        src = j * (n_in - 1) / (n_out - 1) if n_out > 1 else 0.0
        i0 = int(np.floor(src))
        i1 = min(i0 + 1, n_in - 1)
        taps.append((i0, i1, float(src - i0)))
    return taps


def _bilinear_matrix(n_in, n_out):
    """Dense (n_out, n_in) align_corners=True matrix (reference check only)."""
    M = np.zeros((n_out, n_in), np.float32)
    for j in range(n_out):
        src = j * (n_in - 1) / (n_out - 1) if n_out > 1 else 0.0
        i0 = int(np.floor(src))
        i1 = min(i0 + 1, n_in - 1)
        f = src - i0
        M[j, i0] += 1.0 - f
        M[j, i1] += f
    return M


# --------------------------------------------------------------------------- #
#  Kernel                                                                     #
# --------------------------------------------------------------------------- #
def _frru_kernel(y_ref, z_ref, w1_ref, s1_ref, b1_ref, w2_ref, s2_ref, b2_ref,
                 wz_ref, bz_ref, yout_ref, zout_ref, *, H, W, Cy, Cz, Co):
    Hf, Wf = 2 * H, 2 * W
    f32, bf16 = jnp.float32, jnp.bfloat16
    neg = jnp.float32(-jnp.inf)

    yb = y_ref[0].astype(f32)                    # (H, W, Cy)
    zb = z_ref[0].astype(f32)                    # (Hf, Wf, Cz)

    # ---- MaxPool2d(k=3, s=2, p=1) directly at output resolution ------------ #
    # out[i, j] = max over z[2i-1:2i+2, 2j-1:2j+2]  (borders padded with -inf)
    zr = zb.reshape(H, 2, Wf, Cz)                # rows split into (even, odd)
    r_even, r_odd = zr[:, 0], zr[:, 1]           # z[2i], z[2i+1]
    r_prev = jnp.concatenate(
        [jnp.full((1, Wf, Cz), neg, f32), r_odd[:-1]], axis=0)      # z[2i-1]
    rmax = jnp.maximum(jnp.maximum(r_even, r_odd), r_prev)          # (H, Wf, Cz)

    rc = rmax.reshape(H, W, 2, Cz)               # cols split into (even, odd)
    c_even, c_odd = rc[:, :, 0], rc[:, :, 1]     # cols 2j, 2j+1
    c_prev = jnp.concatenate(
        [jnp.full((H, 1, Cz), neg, f32), c_odd[:, :-1]], axis=1)    # col 2j-1
    z_pool = jnp.maximum(jnp.maximum(c_even, c_odd), c_prev)        # (H, W, Cz)

    # ---- im2col: (H, W, C) -> (H*W, 9*C), tap order dy-major / dx / channel - #
    def im2col(x):
        h, w, c = x.shape
        zc_ = jnp.zeros((h, 1, c), x.dtype)
        xp = jnp.concatenate([zc_, x, zc_], axis=1)
        zr_ = jnp.zeros((1, w + 2, c), x.dtype)
        xp = jnp.concatenate([zr_, xp, zr_], axis=0)                # (H+2, W+2, C)
        taps = [xp[dy:dy + h, dx:dx + w, :]
                for dy in range(3) for dx in range(3)]
        return jnp.concatenate(taps, axis=-1).reshape(h * w, 9 * c)

    # ---- conv1 (single bf16 MXU matmul, K = 9*(Cy+Cz)) + BN1 + ReLU --------- #
    cat = jnp.concatenate([yb, z_pool], axis=-1).astype(bf16)       # (H, W, Cy+Cz)
    acc1 = jnp.dot(im2col(cat), w1_ref[...], preferred_element_type=f32)
    a1 = jnp.maximum(acc1 * s1_ref[...] + b1_ref[...], 0.0)         # (H*W, Co) f32

    # ---- conv2 (K = 9*Co) + BN2 + ReLU -------------------------------------- #
    p2 = im2col(a1.astype(bf16).reshape(H, W, Co))
    acc2 = jnp.dot(p2, w2_ref[...], preferred_element_type=f32)
    a2 = jnp.maximum(acc2 * s2_ref[...] + b2_ref[...], 0.0)         # (H*W, Co) f32

    yout_ref[0] = a2.reshape(H, W, Co).astype(yout_ref.dtype)

    # ---- 1x1 conv to z channels --------------------------------------------- #
    zc = jnp.dot(a2.astype(bf16), wz_ref[...],
                 preferred_element_type=f32) + bz_ref[...]          # (H*W, Cz)
    zc3 = zc.reshape(H, W, Cz)

    # ---- separable x2 bilinear upsample (align_corners=True), 2-tap lerps --- #
    rows = []
    for (i0, i1, f) in _lerp_taps(H, Hf):                           # H direction
        r = zc3[i0] if f == 0.0 else (1.0 - f) * zc3[i0] + f * zc3[i1]
        rows.append(r[None])
    zh = jnp.concatenate(rows, axis=0)                              # (Hf, W, Cz)

    cols = []
    for (j0, j1, f) in _lerp_taps(W, Wf):                           # W direction
        c0 = zh[:, j0:j0 + 1, :]
        c = c0 if f == 0.0 else (1.0 - f) * c0 + f * zh[:, j1:j1 + 1, :]
        cols.append(c)
    zu = jnp.concatenate(cols, axis=1)                              # (Hf, Wf, Cz)

    zout_ref[0] = (zb + zu).astype(zout_ref.dtype)                  # residual


# --------------------------------------------------------------------------- #
#  Wrapper                                                                    #
# --------------------------------------------------------------------------- #
def frru_forward(y_nchw, z_nchw, params):
    """FRRU forward.  y_nchw: (N, y_in_c, H, W); z_nchw: (N, z_c, 2H, 2W)."""
    N, Cy, H, W = y_nchw.shape
    _, Cz, Hf, Wf = z_nchw.shape
    assert Hf == 2 * H and Wf == 2 * W  # factor = 2

    y = jnp.transpose(y_nchw, (0, 2, 3, 1)).astype(jnp.float32)     # NHWC
    z = jnp.transpose(z_nchw, (0, 2, 3, 1)).astype(jnp.float32)

    # Conv weights: OIHW -> (kh, kw, I, O) -> (9*I, O); bf16 MXU operands.
    Cin1 = Cy + Cz
    w1 = jnp.transpose(params['w1_oihw'], (2, 3, 1, 0)).reshape(9 * Cin1, -1)
    Co = w1.shape[-1]
    w2 = jnp.transpose(params['w2_oihw'], (2, 3, 1, 0)).reshape(9 * Co, Co)
    wz = jnp.transpose(params['wz_oihw'][:, :, 0, 0], (1, 0))       # (Co, Cz)
    w1, w2, wz = (w.astype(jnp.bfloat16) for w in (w1, w2, wz))
    bz = params['bz'].reshape(1, Cz).astype(jnp.float32)

    # Fold eval-mode BatchNorm into per-channel scale / bias (f32).
    s1 = (params['gamma1'] / jnp.sqrt(params['var1'] + 1e-5)).reshape(1, Co)
    b1 = (params['beta1'] - params['mean1'] * s1[0]).reshape(1, Co)
    s2 = (params['gamma2'] / jnp.sqrt(params['var2'] + 1e-5)).reshape(1, Co)
    b2 = (params['beta2'] - params['mean2'] * s2[0]).reshape(1, Co)

    kernel = functools.partial(_frru_kernel, H=H, W=W, Cy=Cy, Cz=Cz, Co=Co)

    yout, zout = pl.pallas_call(
        kernel,
        out_shape=(jax.ShapeDtypeStruct((N, H, W, Co), jnp.float32),
                   jax.ShapeDtypeStruct((N, Hf, Wf, Cz), jnp.float32)),
        grid=(N,),
        in_specs=[
            pl.BlockSpec((1, H, W, Cy), lambda n: (n, 0, 0, 0)),
            pl.BlockSpec((1, Hf, Wf, Cz), lambda n: (n, 0, 0, 0)),
            pl.BlockSpec((9 * Cin1, Co), lambda n: (0, 0)),
            pl.BlockSpec((1, Co), lambda n: (0, 0)),
            pl.BlockSpec((1, Co), lambda n: (0, 0)),
            pl.BlockSpec((9 * Co, Co), lambda n: (0, 0)),
            pl.BlockSpec((1, Co), lambda n: (0, 0)),
            pl.BlockSpec((1, Co), lambda n: (0, 0)),
            pl.BlockSpec((Co, Cz), lambda n: (0, 0)),
            pl.BlockSpec((1, Cz), lambda n: (0, 0)),
        ],
        out_specs=(
            pl.BlockSpec((1, H, W, Co), lambda n: (n, 0, 0, 0)),
            pl.BlockSpec((1, Hf, Wf, Cz), lambda n: (n, 0, 0, 0)),
        ),
        compiler_params=pltpu.CompilerParams(dimension_semantics=("parallel",)),
    )(y, z, w1, s1, b1, w2, s2, b2, wz, bz)

    # back to NCHW (PyTorch convention)
    return jnp.transpose(yout, (0, 3, 1, 2)), jnp.transpose(zout, (0, 3, 1, 2))


# --------------------------------------------------------------------------- #
#  Pure-JAX reference (for correctness check)                                 #
# --------------------------------------------------------------------------- #
def _reference(y_nchw, z_nchw, params):
    y = jnp.transpose(y_nchw, (0, 2, 3, 1)).astype(jnp.float32)
    z = jnp.transpose(z_nchw, (0, 2, 3, 1)).astype(jnp.float32)
    N, H, W, _ = y.shape
    _, Hf, Wf, _ = z.shape

    zp = lax.reduce_window(z, -jnp.inf, lax.max, (1, 3, 3, 1), (1, 2, 2, 1),
                           ((0, 0), (1, 1), (1, 1), (0, 0)))
    cat = jnp.concatenate([y, zp], axis=-1)

    dn = ('NHWC', 'HWIO', 'NHWC')
    w1 = jnp.transpose(params['w1_oihw'], (2, 3, 1, 0))
    w2 = jnp.transpose(params['w2_oihw'], (2, 3, 1, 0))
    s1 = params['gamma1'] / jnp.sqrt(params['var1'] + 1e-5)
    b1 = params['beta1'] - params['mean1'] * s1
    s2 = params['gamma2'] / jnp.sqrt(params['var2'] + 1e-5)
    b2 = params['beta2'] - params['mean2'] * s2

    h1 = lax.conv_general_dilated(cat, w1, (1, 1), ((1, 1), (1, 1)),
                                  dimension_numbers=dn)
    h1 = jnp.maximum(h1 * s1 + b1, 0.0)
    h2 = lax.conv_general_dilated(h1, w2, (1, 1), ((1, 1), (1, 1)),
                                  dimension_numbers=dn)
    h2 = jnp.maximum(h2 * s2 + b2, 0.0)

    wz = params['wz_oihw'][:, :, 0, 0]                              # (Cz, Co)
    zc = jnp.einsum('nhwc,oc->nhwo', h2, wz) + params['bz']
    Mh = jnp.asarray(_bilinear_matrix(H, Hf))
    Mw = jnp.asarray(_bilinear_matrix(W, Wf))
    zu = jnp.einsum('Hh,nhwc->nHwc', Mh, zc)
    zu = jnp.einsum('Ww,nhwc->nhWc', Mw, zu)
    zout = z + zu
    return jnp.transpose(h2, (0, 3, 1, 2)), jnp.transpose(zout, (0, 3, 1, 2))


# --------------------------------------------------------------------------- #
#  Main                                                                       #
# --------------------------------------------------------------------------- #
if __name__ == "__main__":
    N, y_in_c, y_out_c, z_c = 2, 16, 32, 32
    H = W = 8
    Hf, Wf = 2 * H, 2 * W

    key = jax.random.PRNGKey(0)
    ks = jax.random.split(key, 12)
    y = jax.random.normal(ks[0], (N, y_in_c, H, W), jnp.float32)
    z = jax.random.normal(ks[1], (N, z_c, Hf, Wf), jnp.float32)

    params = dict(
        w1_oihw=0.1 * jax.random.normal(ks[2], (y_out_c, y_in_c + z_c, 3, 3), jnp.float32),
        w2_oihw=0.1 * jax.random.normal(ks[3], (y_out_c, y_out_c, 3, 3), jnp.float32),
        wz_oihw=0.1 * jax.random.normal(ks[4], (z_c, y_out_c, 1, 1), jnp.float32),
        bz=0.1 * jax.random.normal(ks[5], (z_c,), jnp.float32),
        gamma1=1.0 + 0.1 * jax.random.normal(ks[6], (y_out_c,), jnp.float32),
        beta1=0.1 * jax.random.normal(ks[7], (y_out_c,), jnp.float32),
        mean1=0.1 * jax.random.normal(ks[8], (y_out_c,), jnp.float32),
        var1=jax.random.uniform(ks[9], (y_out_c,), jnp.float32, 0.5, 1.5),
        gamma2=1.0 + 0.1 * jax.random.normal(ks[10], (y_out_c,), jnp.float32),
        beta2=0.1 * jax.random.normal(ks[11], (y_out_c,), jnp.float32),
        mean2=jnp.zeros((y_out_c,), jnp.float32),
        var2=jnp.ones((y_out_c,), jnp.float32),
    )

    yout, zout = jax.jit(frru_forward)(y, z, params)
    jax.block_until_ready((yout, zout))

    y_ref, z_ref = _reference(y, z, params)
    assert yout.shape == (N, y_out_c, H, W) and zout.shape == (N, z_c, Hf, Wf)
    # bf16 MXU operands (f32 accumulate) -> slightly looser tolerance than pure f32.
    assert bool(jnp.allclose(yout, y_ref, atol=5e-2, rtol=5e-2))
    assert bool(jnp.allclose(zout, z_ref, atol=5e-2, rtol=5e-2))
    print("KERNEL_OK")
</pallas_src>

<mosaic_0001>
module attributes {stable_mosaic.version = 11 : i64} {
  func.func @_frru_kernel(%arg0: i32, %arg1: memref<1x8x8x16xf32, #tpu.memory_space<vmem>>, %arg2: memref<1x16x16x32xf32, #tpu.memory_space<vmem>>, %arg3: memref<432x32xbf16, #tpu.memory_space<vmem>>, %arg4: memref<1x32xf32, #tpu.memory_space<vmem>>, %arg5: memref<1x32xf32, #tpu.memory_space<vmem>>, %arg6: memref<288x32xbf16, #tpu.memory_space<vmem>>, %arg7: memref<1x32xf32, #tpu.memory_space<vmem>>, %arg8: memref<1x32xf32, #tpu.memory_space<vmem>>, %arg9: memref<32x32xbf16, #tpu.memory_space<vmem>>, %arg10: memref<1x32xf32, #tpu.memory_space<vmem>>, %arg11: memref<1x8x8x32xf32, #tpu.memory_space<vmem>>, %arg12: memref<1x16x16x32xf32, #tpu.memory_space<vmem>>) attributes {dimension_semantics = [#tpu.dimension_semantics<parallel>], iteration_bounds = array<i64: 2>, scalar_prefetch = 0 : i64, scratch_operands = 0 : i64, tpu.core_type = #tpu.core_type<tc>, window_params = [{transform_indices = @transform_0, window_bounds = array<i64: 1, 8, 8, 16>}, {transform_indices = @transform_1, window_bounds = array<i64: 1, 16, 16, 32>}, {pipeline_mode = #tpu.pipeline_mode<synchronous>, transform_indices = @transform_2, window_bounds = array<i64: 432, 32>}, {pipeline_mode = #tpu.pipeline_mode<synchronous>, transform_indices = @transform_3, window_bounds = array<i64: 1, 32>}, {pipeline_mode = #tpu.pipeline_mode<synchronous>, transform_indices = @transform_4, window_bounds = array<i64: 1, 32>}, {pipeline_mode = #tpu.pipeline_mode<synchronous>, transform_indices = @transform_5, window_bounds = array<i64: 288, 32>}, {pipeline_mode = #tpu.pipeline_mode<synchronous>, transform_indices = @transform_6, window_bounds = array<i64: 1, 32>}, {pipeline_mode = #tpu.pipeline_mode<synchronous>, transform_indices = @transform_7, window_bounds = array<i64: 1, 32>}, {pipeline_mode = #tpu.pipeline_mode<synchronous>, transform_indices = @transform_8, window_bounds = array<i64: 32, 32>}, {pipeline_mode = #tpu.pipeline_mode<synchronous>, transform_indices = @transform_9, window_bounds = array<i64: 1, 32>}, {transform_indices = @transform_10, window_bounds = array<i64: 1, 8, 8, 32>}, {transform_indices = @transform_11, window_bounds = array<i64: 1, 16, 16, 32>}]} {
    %c0 = arith.constant 0 : index
    %c0_0 = arith.constant 0 : index
    %c0_1 = arith.constant 0 : index
    %c0_2 = arith.constant 0 : index
    %0 = vector.load %arg1[%c0, %c0_0, %c0_1, %c0_2] : memref<1x8x8x16xf32, #tpu.memory_space<vmem>>, vector<1x8x8x16xf32>
    %1 = vector.shape_cast %0 : vector<1x8x8x16xf32> to vector<8x8x16xf32>
    %c0_3 = arith.constant 0 : index
    %c0_4 = arith.constant 0 : index
    %c0_5 = arith.constant 0 : index
    %c0_6 = arith.constant 0 : index
    %2 = vector.load %arg2[%c0_3, %c0_4, %c0_5, %c0_6] : memref<1x16x16x32xf32, #tpu.memory_space<vmem>>, vector<1x16x16x32xf32>
    %3 = vector.shape_cast %2 : vector<1x16x16x32xf32> to vector<16x16x32xf32>
    %4 = vector.shape_cast %3 : vector<16x16x32xf32> to vector<8x2x16x32xf32>
    %5 = vector.extract_strided_slice %4 {offsets = [0, 0, 0, 0], sizes = [8, 1, 16, 32], strides = [1, 1, 1, 1]} : vector<8x2x16x32xf32> to vector<8x1x16x32xf32>
    %6 = vector.shape_cast %5 : vector<8x1x16x32xf32> to vector<8x16x32xf32>
    %7 = vector.extract_strided_slice %4 {offsets = [0, 1, 0, 0], sizes = [8, 1, 16, 32], strides = [1, 1, 1, 1]} : vector<8x2x16x32xf32> to vector<8x1x16x32xf32>
    %8 = vector.shape_cast %7 : vector<8x1x16x32xf32> to vector<8x16x32xf32>
    %cst = arith.constant 0xFF800000 : f32
    %9 = vector.broadcast %cst : f32 to vector<1x16x32xf32>
    %10 = vector.extract_strided_slice %8 {offsets = [0, 0, 0], sizes = [7, 16, 32], strides = [1, 1, 1]} : vector<8x16x32xf32> to vector<7x16x32xf32>
    %11 = tpu.concatenate %9, %10 in 0 : vector<1x16x32xf32>, vector<7x16x32xf32> -> vector<8x16x32xf32>
    %12 = arith.maximumf %6, %8 : vector<8x16x32xf32>
    %13 = arith.maximumf %12, %11 : vector<8x16x32xf32>
    %14 = vector.shape_cast %13 : vector<8x16x32xf32> to vector<8x8x2x32xf32>
    %15 = vector.extract_strided_slice %14 {offsets = [0, 0, 0, 0], sizes = [8, 8, 1, 32], strides = [1, 1, 1, 1]} : vector<8x8x2x32xf32> to vector<8x8x1x32xf32>
    %16 = vector.shape_cast %15 : vector<8x8x1x32xf32> to vector<8x8x32xf32>
    %17 = vector.extract_strided_slice %14 {offsets = [0, 0, 1, 0], sizes = [8, 8, 1, 32], strides = [1, 1, 1, 1]} : vector<8x8x2x32xf32> to vector<8x8x1x32xf32>
    %18 = vector.shape_cast %17 : vector<8x8x1x32xf32> to vector<8x8x32xf32>
    %cst_7 = arith.constant 0xFF800000 : f32
    %19 = vector.broadcast %cst_7 : f32 to vector<8x1x32xf32>
    %20 = vector.extract_strided_slice %18 {offsets = [0, 0, 0], sizes = [8, 7, 32], strides = [1, 1, 1]} : vector<8x8x32xf32> to vector<8x7x32xf32>
    %21 = tpu.concatenate %19, %20 in 1 : vector<8x1x32xf32>, vector<8x7x32xf32> -> vector<8x8x32xf32>
    %22 = arith.maximumf %16, %18 : vector<8x8x32xf32>
    %23 = arith.maximumf %22, %21 : vector<8x8x32xf32>
    %24 = tpu.concatenate %1, %23 in 2 : vector<8x8x16xf32>, vector<8x8x32xf32> -> vector<8x8x48xf32>
    %25 = arith.truncf %24 : vector<8x8x48xf32> to vector<8x8x48xbf16>
    %cst_8 = arith.constant 0.000000e+00 : bf16
    %26 = vector.broadcast %cst_8 : bf16 to vector<8x1x48xbf16>
    %27 = tpu.concatenate %26, %25, %26 in 1 : vector<8x1x48xbf16>, vector<8x8x48xbf16>, vector<8x1x48xbf16> -> vector<8x10x48xbf16>
    %cst_9 = arith.constant 0.000000e+00 : bf16
    %28 = vector.broadcast %cst_9 : bf16 to vector<1x10x48xbf16>
    %29 = tpu.concatenate %28, %27, %28 in 0 : vector<1x10x48xbf16>, vector<8x10x48xbf16>, vector<1x10x48xbf16> -> vector<10x10x48xbf16>
    %30 = vector.extract_strided_slice %29 {offsets = [0, 0, 0], sizes = [8, 8, 48], strides = [1, 1, 1]} : vector<10x10x48xbf16> to vector<8x8x48xbf16>
    %31 = vector.extract_strided_slice %29 {offsets = [0, 1, 0], sizes = [8, 8, 48], strides = [1, 1, 1]} : vector<10x10x48xbf16> to vector<8x8x48xbf16>
    %32 = vector.extract_strided_slice %29 {offsets = [0, 2, 0], sizes = [8, 8, 48], strides = [1, 1, 1]} : vector<10x10x48xbf16> to vector<8x8x48xbf16>
    %33 = vector.extract_strided_slice %29 {offsets = [1, 0, 0], sizes = [8, 8, 48], strides = [1, 1, 1]} : vector<10x10x48xbf16> to vector<8x8x48xbf16>
    %34 = vector.extract_strided_slice %29 {offsets = [1, 1, 0], sizes = [8, 8, 48], strides = [1, 1, 1]} : vector<10x10x48xbf16> to vector<8x8x48xbf16>
    %35 = vector.extract_strided_slice %29 {offsets = [1, 2, 0], sizes = [8, 8, 48], strides = [1, 1, 1]} : vector<10x10x48xbf16> to vector<8x8x48xbf16>
    %36 = vector.extract_strided_slice %29 {offsets = [2, 0, 0], sizes = [8, 8, 48], strides = [1, 1, 1]} : vector<10x10x48xbf16> to vector<8x8x48xbf16>
    %37 = vector.extract_strided_slice %29 {offsets = [2, 1, 0], sizes = [8, 8, 48], strides = [1, 1, 1]} : vector<10x10x48xbf16> to vector<8x8x48xbf16>
    %38 = vector.extract_strided_slice %29 {offsets = [2, 2, 0], sizes = [8, 8, 48], strides = [1, 1, 1]} : vector<10x10x48xbf16> to vector<8x8x48xbf16>
    %39 = tpu.concatenate %30, %31, %32, %33, %34, %35, %36, %37, %38 in 2 : vector<8x8x48xbf16>, vector<8x8x48xbf16>, vector<8x8x48xbf16>, vector<8x8x48xbf16>, vector<8x8x48xbf16>, vector<8x8x48xbf16>, vector<8x8x48xbf16>, vector<8x8x48xbf16>, vector<8x8x48xbf16> -> vector<8x8x432xbf16>
    %40 = vector.shape_cast %39 : vector<8x8x432xbf16> to vector<64x432xbf16>
    %c0_10 = arith.constant 0 : index
    %c0_11 = arith.constant 0 : index
    %41 = vector.load %arg3[%c0_10, %c0_11] : memref<432x32xbf16, #tpu.memory_space<vmem>>, vector<432x32xbf16>
    %cst_12 = arith.constant dense<0.000000e+00> : vector<64x32xf32>
    %42 = tpu.matmul %40, %41, %cst_12 {dimension_numbers = #tpu.dot_dimension_numbers<[1], [0], [0], [1], [0, 0, 1, 1], [], []>} : vector<64x432xbf16>, vector<432x32xbf16>, vector<64x32xf32> -> vector<64x32xf32>
    %c0_13 = arith.constant 0 : index
    %c0_14 = arith.constant 0 : index
    %43 = vector.load %arg4[%c0_13, %c0_14] : memref<1x32xf32, #tpu.memory_space<vmem>>, vector<1x32xf32>
    %44 = vector.broadcast %43 : vector<1x32xf32> to vector<64x32xf32>
    %45 = arith.mulf %42, %44 : vector<64x32xf32>
    %c0_15 = arith.constant 0 : index
    %c0_16 = arith.constant 0 : index
    %46 = vector.load %arg5[%c0_15, %c0_16] : memref<1x32xf32, #tpu.memory_space<vmem>>, vector<1x32xf32>
    %47 = vector.broadcast %46 : vector<1x32xf32> to vector<64x32xf32>
    %48 = arith.addf %45, %47 : vector<64x32xf32>
    %cst_17 = arith.constant 0.000000e+00 : f32
    %49 = vector.broadcast %cst_17 : f32 to vector<64x32xf32>
    %50 = arith.maximumf %48, %49 : vector<64x32xf32>
    %51 = arith.truncf %50 : vector<64x32xf32> to vector<64x32xbf16>
    %52 = vector.shape_cast %51 : vector<64x32xbf16> to vector<8x8x32xbf16>
    %cst_18 = arith.constant 0.000000e+00 : bf16
    %53 = vector.broadcast %cst_18 : bf16 to vector<8x1x32xbf16>
    %54 = tpu.concatenate %53, %52, %53 in 1 : vector<8x1x32xbf16>, vector<8x8x32xbf16>, vector<8x1x32xbf16> -> vector<8x10x32xbf16>
    %cst_19 = arith.constant 0.000000e+00 : bf16
    %55 = vector.broadcast %cst_19 : bf16 to vector<1x10x32xbf16>
    %56 = tpu.concatenate %55, %54, %55 in 0 : vector<1x10x32xbf16>, vector<8x10x32xbf16>, vector<1x10x32xbf16> -> vector<10x10x32xbf16>
    %57 = vector.extract_strided_slice %56 {offsets = [0, 0, 0], sizes = [8, 8, 32], strides = [1, 1, 1]} : vector<10x10x32xbf16> to vector<8x8x32xbf16>
    %58 = vector.extract_strided_slice %56 {offsets = [0, 1, 0], sizes = [8, 8, 32], strides = [1, 1, 1]} : vector<10x10x32xbf16> to vector<8x8x32xbf16>
    %59 = vector.extract_strided_slice %56 {offsets = [0, 2, 0], sizes = [8, 8, 32], strides = [1, 1, 1]} : vector<10x10x32xbf16> to vector<8x8x32xbf16>
    %60 = vector.extract_strided_slice %56 {offsets = [1, 0, 0], sizes = [8, 8, 32], strides = [1, 1, 1]} : vector<10x10x32xbf16> to vector<8x8x32xbf16>
    %61 = vector.extract_strided_slice %56 {offsets = [1, 1, 0], sizes = [8, 8, 32], strides = [1, 1, 1]} : vector<10x10x32xbf16> to vector<8x8x32xbf16>
    %62 = vector.extract_strided_slice %56 {offsets = [1, 2, 0], sizes = [8, 8, 32], strides = [1, 1, 1]} : vector<10x10x32xbf16> to vector<8x8x32xbf16>
    %63 = vector.extract_strided_slice %56 {offsets = [2, 0, 0], sizes = [8, 8, 32], strides = [1, 1, 1]} : vector<10x10x32xbf16> to vector<8x8x32xbf16>
    %64 = vector.extract_strided_slice %56 {offsets = [2, 1, 0], sizes = [8, 8, 32], strides = [1, 1, 1]} : vector<10x10x32xbf16> to vector<8x8x32xbf16>
    %65 = vector.extract_strided_slice %56 {offsets = [2, 2, 0], sizes = [8, 8, 32], strides = [1, 1, 1]} : vector<10x10x32xbf16> to vector<8x8x32xbf16>
    %66 = tpu.concatenate %57, %58, %59, %60, %61, %62, %63, %64, %65 in 2 : vector<8x8x32xbf16>, vector<8x8x32xbf16>, vector<8x8x32xbf16>, vector<8x8x32xbf16>, vector<8x8x32xbf16>, vector<8x8x32xbf16>, vector<8x8x32xbf16>, vector<8x8x32xbf16>, vector<8x8x32xbf16> -> vector<8x8x288xbf16>
    %67 = vector.shape_cast %66 : vector<8x8x288xbf16> to vector<64x288xbf16>
    %c0_20 = arith.constant 0 : index
    %c0_21 = arith.constant 0 : index
    %68 = vector.load %arg6[%c0_20, %c0_21] : memref<288x32xbf16, #tpu.memory_space<vmem>>, vector<288x32xbf16>
    %cst_22 = arith.constant dense<0.000000e+00> : vector<64x32xf32>
    %69 = tpu.matmul %67, %68, %cst_22 {dimension_numbers = #tpu.dot_dimension_numbers<[1], [0], [0], [1], [0, 0, 1, 1], [], []>} : vector<64x288xbf16>, vector<288x32xbf16>, vector<64x32xf32> -> vector<64x32xf32>
    %c0_23 = arith.constant 0 : index
    %c0_24 = arith.constant 0 : index
    %70 = vector.load %arg7[%c0_23, %c0_24] : memref<1x32xf32, #tpu.memory_space<vmem>>, vector<1x32xf32>
    %71 = vector.broadcast %70 : vector<1x32xf32> to vector<64x32xf32>
    %72 = arith.mulf %69, %71 : vector<64x32xf32>
    %c0_25 = arith.constant 0 : index
    %c0_26 = arith.constant 0 : index
    %73 = vector.load %arg8[%c0_25, %c0_26] : memref<1x32xf32, #tpu.memory_space<vmem>>, vector<1x32xf32>
    %74 = vector.broadcast %73 : vector<1x32xf32> to vector<64x32xf32>
    %75 = arith.addf %72, %74 : vector<64x32xf32>
    %cst_27 = arith.constant 0.000000e+00 : f32
    %76 = vector.broadcast %cst_27 : f32 to vector<64x32xf32>
    %77 = arith.maximumf %75, %76 : vector<64x32xf32>
    %78 = vector.shape_cast %77 : vector<64x32xf32> to vector<8x8x32xf32>
    %c0_28 = arith.constant 0 : index
    %c0_29 = arith.constant 0 : index
    %c0_30 = arith.constant 0 : index
    %c0_31 = arith.constant 0 : index
    %79 = vector.load %arg11[%c0_28, %c0_29, %c0_30, %c0_31] : memref<1x8x8x32xf32, #tpu.memory_space<vmem>>, vector<1x8x8x32xf32>
    %80 = vector.shape_cast %79 : vector<1x8x8x32xf32> to vector<8x8x32xf32>
    %81 = vector.shape_cast %78 : vector<8x8x32xf32> to vector<1x8x8x32xf32>
    tpu.vector_store %arg11[%c0_28, %c0_29, %c0_30, %c0_31], %81 {strides = array<i32>} : memref<1x8x8x32xf32, #tpu.memory_space<vmem>>, vector<1x8x8x32xf32>,
    %82 = arith.truncf %77 : vector<64x32xf32> to vector<64x32xbf16>
    %c0_32 = arith.constant 0 : index
    %c0_33 = arith.constant 0 : index
    %83 = vector.load %arg9[%c0_32, %c0_33] : memref<32x32xbf16, #tpu.memory_space<vmem>>, vector<32x32xbf16>
    %cst_34 = arith.constant dense<0.000000e+00> : vector<64x32xf32>
    %84 = tpu.matmul %82, %83, %cst_34 {dimension_numbers = #tpu.dot_dimension_numbers<[1], [0], [0], [1], [0, 0, 1, 1], [], []>} : vector<64x32xbf16>, vector<32x32xbf16>, vector<64x32xf32> -> vector<64x32xf32>
    %c0_35 = arith.constant 0 : index
    %c0_36 = arith.constant 0 : index
    %85 = vector.load %arg10[%c0_35, %c0_36] : memref<1x32xf32, #tpu.memory_space<vmem>>, vector<1x32xf32>
    %86 = vector.broadcast %85 : vector<1x32xf32> to vector<64x32xf32>
    %87 = arith.addf %84, %86 : vector<64x32xf32>
    %88 = vector.shape_cast %87 : vector<64x32xf32> to vector<8x8x32xf32>
    %89 = vector.extract_strided_slice %88 {offsets = [0, 0, 0], sizes = [1, 8, 32], strides = [1, 1, 1]} : vector<8x8x32xf32> to vector<1x8x32xf32>
    %90 = vector.shape_cast %89 : vector<1x8x32xf32> to vector<8x32xf32>
    %91 = vector.shape_cast %90 : vector<8x32xf32> to vector<1x8x32xf32>
    %92 = vector.extract_strided_slice %88 {offsets = [0, 0, 0], sizes = [1, 8, 32], strides = [1, 1, 1]} : vector<8x8x32xf32> to vector<1x8x32xf32>
    %93 = vector.shape_cast %92 : vector<1x8x32xf32> to vector<8x32xf32>
    %cst_37 = arith.constant 0.533333361 : f32
    %94 = vector.broadcast %cst_37 : f32 to vector<8x32xf32>
    %95 = arith.mulf %94, %93 : vector<8x32xf32>
    %96 = vector.extract_strided_slice %88 {offsets = [1, 0, 0], sizes = [1, 8, 32], strides = [1, 1, 1]} : vector<8x8x32xf32> to vector<1x8x32xf32>
    %97 = vector.shape_cast %96 : vector<1x8x32xf32> to vector<8x32xf32>
    %cst_38 = arith.constant 0.466666669 : f32
    %98 = vector.broadcast %cst_38 : f32 to vector<8x32xf32>
    %99 = arith.mulf %98, %97 : vector<8x32xf32>
    %100 = arith.addf %95, %99 : vector<8x32xf32>
    %101 = vector.shape_cast %100 : vector<8x32xf32> to vector<1x8x32xf32>
    %102 = vector.extract_strided_slice %88 {offsets = [0, 0, 0], sizes = [1, 8, 32], strides = [1, 1, 1]} : vector<8x8x32xf32> to vector<1x8x32xf32>
    %103 = vector.shape_cast %102 : vector<1x8x32xf32> to vector<8x32xf32>
    %cst_39 = arith.constant 0.0666666701 : f32
    %104 = vector.broadcast %cst_39 : f32 to vector<8x32xf32>
    %105 = arith.mulf %104, %103 : vector<8x32xf32>
    %106 = vector.extract_strided_slice %88 {offsets = [1, 0, 0], sizes = [1, 8, 32], strides = [1, 1, 1]} : vector<8x8x32xf32> to vector<1x8x32xf32>
    %107 = vector.shape_cast %106 : vector<1x8x32xf32> to vector<8x32xf32>
    %cst_40 = arith.constant 0.933333337 : f32
    %108 = vector.broadcast %cst_40 : f32 to vector<8x32xf32>
    %109 = arith.mulf %108, %107 : vector<8x32xf32>
    %110 = arith.addf %105, %109 : vector<8x32xf32>
    %111 = vector.shape_cast %110 : vector<8x32xf32> to vector<1x8x32xf32>
    %112 = vector.extract_strided_slice %88 {offsets = [1, 0, 0], sizes = [1, 8, 32], strides = [1, 1, 1]} : vector<8x8x32xf32> to vector<1x8x32xf32>
    %113 = vector.shape_cast %112 : vector<1x8x32xf32> to vector<8x32xf32>
    %cst_41 = arith.constant 6.000000e-01 : f32
    %114 = vector.broadcast %cst_41 : f32 to vector<8x32xf32>
    %115 = arith.mulf %114, %113 : vector<8x32xf32>
    %116 = vector.extract_strided_slice %88 {offsets = [2, 0, 0], sizes = [1, 8, 32], strides = [1, 1, 1]} : vector<8x8x32xf32> to vector<1x8x32xf32>
    %117 = vector.shape_cast %116 : vector<1x8x32xf32> to vector<8x32xf32>
    %cst_42 = arith.constant 4.000000e-01 : f32
    %118 = vector.broadcast %cst_42 : f32 to vector<8x32xf32>
    %119 = arith.mulf %118, %117 : vector<8x32xf32>
    %120 = arith.addf %115, %119 : vector<8x32xf32>
    %121 = vector.shape_cast %120 : vector<8x32xf32> to vector<1x8x32xf32>
    %122 = vector.extract_strided_slice %88 {offsets = [1, 0, 0], sizes = [1, 8, 32], strides = [1, 1, 1]} : vector<8x8x32xf32> to vector<1x8x32xf32>
    %123 = vector.shape_cast %122 : vector<1x8x32xf32> to vector<8x32xf32>
    %cst_43 = arith.constant 0.13333334 : f32
    %124 = vector.broadcast %cst_43 : f32 to vector<8x32xf32>
    %125 = arith.mulf %124, %123 : vector<8x32xf32>
    %126 = vector.extract_strided_slice %88 {offsets = [2, 0, 0], sizes = [1, 8, 32], strides = [1, 1, 1]} : vector<8x8x32xf32> to vector<1x8x32xf32>
    %127 = vector.shape_cast %126 : vector<1x8x32xf32> to vector<8x32xf32>
    %cst_44 = arith.constant 0.866666674 : f32
    %128 = vector.broadcast %cst_44 : f32 to vector<8x32xf32>
    %129 = arith.mulf %128, %127 : vector<8x32xf32>
    %130 = arith.addf %125, %129 : vector<8x32xf32>
    %131 = vector.shape_cast %130 : vector<8x32xf32> to vector<1x8x32xf32>
    %132 = vector.extract_strided_slice %88 {offsets = [2, 0, 0], sizes = [1, 8, 32], strides = [1, 1, 1]} : vector<8x8x32xf32> to vector<1x8x32xf32>
    %133 = vector.shape_cast %132 : vector<1x8x32xf32> to vector<8x32xf32>
    %cst_45 = arith.constant 0.666666686 : f32
    %134 = vector.broadcast %cst_45 : f32 to vector<8x32xf32>
    %135 = arith.mulf %134, %133 : vector<8x32xf32>
    %136 = vector.extract_strided_slice %88 {offsets = [3, 0, 0], sizes = [1, 8, 32], strides = [1, 1, 1]} : vector<8x8x32xf32> to vector<1x8x32xf32>
    %137 = vector.shape_cast %136 : vector<1x8x32xf32> to vector<8x32xf32>
    %cst_46 = arith.constant 0.333333343 : f32
    %138 = vector.broadcast %cst_46 : f32 to vector<8x32xf32>
    %139 = arith.mulf %138, %137 : vector<8x32xf32>
    %140 = arith.addf %135, %139 : vector<8x32xf32>
    %141 = vector.shape_cast %140 : vector<8x32xf32> to vector<1x8x32xf32>
    %142 = vector.extract_strided_slice %88 {offsets = [2, 0, 0], sizes = [1, 8, 32], strides = [1, 1, 1]} : vector<8x8x32xf32> to vector<1x8x32xf32>
    %143 = vector.shape_cast %142 : vector<1x8x32xf32> to vector<8x32xf32>
    %cst_47 = arith.constant 2.000000e-01 : f32
    %144 = vector.broadcast %cst_47 : f32 to vector<8x32xf32>
    %145 = arith.mulf %144, %143 : vector<8x32xf32>
    %146 = vector.extract_strided_slice %88 {offsets = [3, 0, 0], sizes = [1, 8, 32], strides = [1, 1, 1]} : vector<8x8x32xf32> to vector<1x8x32xf32>
    %147 = vector.shape_cast %146 : vector<1x8x32xf32> to vector<8x32xf32>
    %cst_48 = arith.constant 8.000000e-01 : f32
    %148 = vector.broadcast %cst_48 : f32 to vector<8x32xf32>
    %149 = arith.mulf %148, %147 : vector<8x32xf32>
    %150 = arith.addf %145, %149 : vector<8x32xf32>
    %151 = vector.shape_cast %150 : vector<8x32xf32> to vector<1x8x32xf32>
    %152 = vector.extract_strided_slice %88 {offsets = [3, 0, 0], sizes = [1, 8, 32], strides = [1, 1, 1]} : vector<8x8x32xf32> to vector<1x8x32xf32>
    %153 = vector.shape_cast %152 : vector<1x8x32xf32> to vector<8x32xf32>
    %cst_49 = arith.constant 0.733333349 : f32
    %154 = vector.broadcast %cst_49 : f32 to vector<8x32xf32>
    %155 = arith.mulf %154, %153 : vector<8x32xf32>
    %156 = vector.extract_strided_slice %88 {offsets = [4, 0, 0], sizes = [1, 8, 32], strides = [1, 1, 1]} : vector<8x8x32xf32> to vector<1x8x32xf32>
    %157 = vector.shape_cast %156 : vector<1x8x32xf32> to vector<8x32xf32>
    %cst_50 = arith.constant 0.266666681 : f32
    %158 = vector.broadcast %cst_50 : f32 to vector<8x32xf32>
    %159 = arith.mulf %158, %157 : vector<8x32xf32>
    %160 = arith.addf %155, %159 : vector<8x32xf32>
    %161 = vector.shape_cast %160 : vector<8x32xf32> to vector<1x8x32xf32>
    %162 = vector.extract_strided_slice %88 {offsets = [3, 0, 0], sizes = [1, 8, 32], strides = [1, 1, 1]} : vector<8x8x32xf32> to vector<1x8x32xf32>
    %163 = vector.shape_cast %162 : vector<1x8x32xf32> to vector<8x32xf32>
    %cst_51 = arith.constant 0.266666681 : f32
    %164 = vector.broadcast %cst_51 : f32 to vector<8x32xf32>
    %165 = arith.mulf %164, %163 : vector<8x32xf32>
    %166 = vector.extract_strided_slice %88 {offsets = [4, 0, 0], sizes = [1, 8, 32], strides = [1, 1, 1]} : vector<8x8x32xf32> to vector<1x8x32xf32>
    %167 = vector.shape_cast %166 : vector<1x8x32xf32> to vector<8x32xf32>
    %cst_52 = arith.constant 0.733333349 : f32
    %168 = vector.broadcast %cst_52 : f32 to vector<8x32xf32>
    %169 = arith.mulf %168, %167 : vector<8x32xf32>
    %170 = arith.addf %165, %169 : vector<8x32xf32>
    %171 = vector.shape_cast %170 : vector<8x32xf32> to vector<1x8x32xf32>
    %172 = vector.extract_strided_slice %88 {offsets = [4, 0, 0], sizes = [1, 8, 32], strides = [1, 1, 1]} : vector<8x8x32xf32> to vector<1x8x32xf32>
    %173 = vector.shape_cast %172 : vector<1x8x32xf32> to vector<8x32xf32>
    %cst_53 = arith.constant 8.000000e-01 : f32
    %174 = vector.broadcast %cst_53 : f32 to vector<8x32xf32>
    %175 = arith.mulf %174, %173 : vector<8x32xf32>
    %176 = vector.extract_strided_slice %88 {offsets = [5, 0, 0], sizes = [1, 8, 32], strides = [1, 1, 1]} : vector<8x8x32xf32> to vector<1x8x32xf32>
    %177 = vector.shape_cast %176 : vector<1x8x32xf32> to vector<8x32xf32>
    %cst_54 = arith.constant 2.000000e-01 : f32
    %178 = vector.broadcast %cst_54 : f32 to vector<8x32xf32>
    %179 = arith.mulf %178, %177 : vector<8x32xf32>
    %180 = arith.addf %175, %179 : vector<8x32xf32>
    %181 = vector.shape_cast %180 : vector<8x32xf32> to vector<1x8x32xf32>
    %182 = vector.extract_strided_slice %88 {offsets = [4, 0, 0], sizes = [1, 8, 32], strides = [1, 1, 1]} : vector<8x8x32xf32> to vector<1x8x32xf32>
    %183 = vector.shape_cast %182 : vector<1x8x32xf32> to vector<8x32xf32>
    %cst_55 = arith.constant 0.333333343 : f32
    %184 = vector.broadcast %cst_55 : f32 to vector<8x32xf32>
    %185 = arith.mulf %184, %183 : vector<8x32xf32>
    %186 = vector.extract_strided_slice %88 {offsets = [5, 0, 0], sizes = [1, 8, 32], strides = [1, 1, 1]} : vector<8x8x32xf32> to vector<1x8x32xf32>
    %187 = vector.shape_cast %186 : vector<1x8x32xf32> to vector<8x32xf32>
    %cst_56 = arith.constant 0.666666686 : f32
    %188 = vector.broadcast %cst_56 : f32 to vector<8x32xf32>
    %189 = arith.mulf %188, %187 : vector<8x32xf32>
    %190 = arith.addf %185, %189 : vector<8x32xf32>
    %191 = vector.shape_cast %190 : vector<8x32xf32> to vector<1x8x32xf32>
    %192 = vector.extract_strided_slice %88 {offsets = [5, 0, 0], sizes = [1, 8, 32], strides = [1, 1, 1]} : vector<8x8x32xf32> to vector<1x8x32xf32>
    %193 = vector.shape_cast %192 : vector<1x8x32xf32> to vector<8x32xf32>
    %cst_57 = arith.constant 0.866666674 : f32
    %194 = vector.broadcast %cst_57 : f32 to vector<8x32xf32>
    %195 = arith.mulf %194, %193 : vector<8x32xf32>
    %196 = vector.extract_strided_slice %88 {offsets = [6, 0, 0], sizes = [1, 8, 32], strides = [1, 1, 1]} : vector<8x8x32xf32> to vector<1x8x32xf32>
    %197 = vector.shape_cast %196 : vector<1x8x32xf32> to vector<8x32xf32>
    %cst_58 = arith.constant 0.13333334 : f32
    %198 = vector.broadcast %cst_58 : f32 to vector<8x32xf32>
    %199 = arith.mulf %198, %197 : vector<8x32xf32>
    %200 = arith.addf %195, %199 : vector<8x32xf32>
    %201 = vector.shape_cast %200 : vector<8x32xf32> to vector<1x8x32xf32>
    %202 = vector.extract_strided_slice %88 {offsets = [5, 0, 0], sizes = [1, 8, 32], strides = [1, 1, 1]} : vector<8x8x32xf32> to vector<1x8x32xf32>
    %203 = vector.shape_cast %202 : vector<1x8x32xf32> to vector<8x32xf32>
    %cst_59 = arith.constant 4.000000e-01 : f32
    %204 = vector.broadcast %cst_59 : f32 to vector<8x32xf32>
    %205 = arith.mulf %204, %203 : vector<8x32xf32>
    %206 = vector.extract_strided_slice %88 {offsets = [6, 0, 0], sizes = [1, 8, 32], strides = [1, 1, 1]} : vector<8x8x32xf32> to vector<1x8x32xf32>
    %207 = vector.shape_cast %206 : vector<1x8x32xf32> to vector<8x32xf32>
    %cst_60 = arith.constant 6.000000e-01 : f32
    %208 = vector.broadcast %cst_60 : f32 to vector<8x32xf32>
    %209 = arith.mulf %208, %207 : vector<8x32xf32>
    %210 = arith.addf %205, %209 : vector<8x32xf32>
    %211 = vector.shape_cast %210 : vector<8x32xf32> to vector<1x8x32xf32>
    %212 = vector.extract_strided_slice %88 {offsets = [6, 0, 0], sizes = [1, 8, 32], strides = [1, 1, 1]} : vector<8x8x32xf32> to vector<1x8x32xf32>
    %213 = vector.shape_cast %212 : vector<1x8x32xf32> to vector<8x32xf32>
    %cst_61 = arith.constant 0.933333337 : f32
    %214 = vector.broadcast %cst_61 : f32 to vector<8x32xf32>
    %215 = arith.mulf %214, %213 : vector<8x32xf32>
    %216 = vector.extract_strided_slice %88 {offsets = [7, 0, 0], sizes = [1, 8, 32], strides = [1, 1, 1]} : vector<8x8x32xf32> to vector<1x8x32xf32>
    %217 = vector.shape_cast %216 : vector<1x8x32xf32> to vector<8x32xf32>
    %cst_62 = arith.constant 0.0666666701 : f32
    %218 = vector.broadcast %cst_62 : f32 to vector<8x32xf32>
    %219 = arith.mulf %218, %217 : vector<8x32xf32>
    %220 = arith.addf %215, %219 : vector<8x32xf32>
    %221 = vector.shape_cast %220 : vector<8x32xf32> to vector<1x8x32xf32>
    %222 = vector.extract_strided_slice %88 {offsets = [6, 0, 0], sizes = [1, 8, 32], strides = [1, 1, 1]} : vector<8x8x32xf32> to vector<1x8x32xf32>
    %223 = vector.shape_cast %222 : vector<1x8x32xf32> to vector<8x32xf32>
    %cst_63 = arith.constant 0.466666669 : f32
    %224 = vector.broadcast %cst_63 : f32 to vector<8x32xf32>
    %225 = arith.mulf %224, %223 : vector<8x32xf32>
    %226 = vector.extract_strided_slice %88 {offsets = [7, 0, 0], sizes = [1, 8, 32], strides = [1, 1, 1]} : vector<8x8x32xf32> to vector<1x8x32xf32>
    %227 = vector.shape_cast %226 : vector<1x8x32xf32> to vector<8x32xf32>
    %cst_64 = arith.constant 0.533333361 : f32
    %228 = vector.broadcast %cst_64 : f32 to vector<8x32xf32>
    %229 = arith.mulf %228, %227 : vector<8x32xf32>
    %230 = arith.addf %225, %229 : vector<8x32xf32>
    %231 = vector.shape_cast %230 : vector<8x32xf32> to vector<1x8x32xf32>
    %232 = vector.extract_strided_slice %88 {offsets = [7, 0, 0], sizes = [1, 8, 32], strides = [1, 1, 1]} : vector<8x8x32xf32> to vector<1x8x32xf32>
    %233 = vector.shape_cast %232 : vector<1x8x32xf32> to vector<8x32xf32>
    %234 = vector.shape_cast %233 : vector<8x32xf32> to vector<1x8x32xf32>
    %235 = tpu.concatenate %91, %101, %111, %121, %131, %141, %151, %161, %171, %181, %191, %201, %211, %221, %231, %234 in 0 : vector<1x8x32xf32>, vector<1x8x32xf32>, vector<1x8x32xf32>, vector<1x8x32xf32>, vector<1x8x32xf32>, vector<1x8x32xf32>, vector<1x8x32xf32>, vector<1x8x32xf32>, vector<1x8x32xf32>, vector<1x8x32xf32>, vector<1x8x32xf32>, vector<1x8x32xf32>, vector<1x8x32xf32>, vector<1x8x32xf32>, vector<1x8x32xf32>, vector<1x8x32xf32> -> vector<16x8x32xf32>
    %236 = vector.extract_strided_slice %235 {offsets = [0, 0, 0], sizes = [16, 1, 32], strides = [1, 1, 1]} : vector<16x8x32xf32> to vector<16x1x32xf32>
    %237 = vector.extract_strided_slice %235 {offsets = [0, 0, 0], sizes = [16, 1, 32], strides = [1, 1, 1]} : vector<16x8x32xf32> to vector<16x1x32xf32>
    %cst_65 = arith.constant 0.533333361 : f32
    %238 = vector.broadcast %cst_65 : f32 to vector<16x1x32xf32>
    %239 = arith.mulf %238, %237 : vector<16x1x32xf32>
    %240 = vector.extract_strided_slice %235 {offsets = [0, 1, 0], sizes = [16, 1, 32], strides = [1, 1, 1]} : vector<16x8x32xf32> to vector<16x1x32xf32>
    %cst_66 = arith.constant 0.466666669 : f32
    %241 = vector.broadcast %cst_66 : f32 to vector<16x1x32xf32>
    %242 = arith.mulf %241, %240 : vector<16x1x32xf32>
    %243 = arith.addf %239, %242 : vector<16x1x32xf32>
    %244 = vector.extract_strided_slice %235 {offsets = [0, 0, 0], sizes = [16, 1, 32], strides = [1, 1, 1]} : vector<16x8x32xf32> to vector<16x1x32xf32>
    %cst_67 = arith.constant 0.0666666701 : f32
    %245 = vector.broadcast %cst_67 : f32 to vector<16x1x32xf32>
    %246 = arith.mulf %245, %244 : vector<16x1x32xf32>
    %247 = vector.extract_strided_slice %235 {offsets = [0, 1, 0], sizes = [16, 1, 32], strides = [1, 1, 1]} : vector<16x8x32xf32> to vector<16x1x32xf32>
    %cst_68 = arith.constant 0.933333337 : f32
    %248 = vector.broadcast %cst_68 : f32 to vector<16x1x32xf32>
    %249 = arith.mulf %248, %247 : vector<16x1x32xf32>
    %250 = arith.addf %246, %249 : vector<16x1x32xf32>
    %251 = vector.extract_strided_slice %235 {offsets = [0, 1, 0], sizes = [16, 1, 32], strides = [1, 1, 1]} : vector<16x8x32xf32> to vector<16x1x32xf32>
    %cst_69 = arith.constant 6.000000e-01 : f32
    %252 = vector.broadcast %cst_69 : f32 to vector<16x1x32xf32>
    %253 = arith.mulf %252, %251 : vector<16x1x32xf32>
    %254 = vector.extract_strided_slice %235 {offsets = [0, 2, 0], sizes = [16, 1, 32], strides = [1, 1, 1]} : vector<16x8x32xf32> to vector<16x1x32xf32>
    %cst_70 = arith.constant 4.000000e-01 : f32
    %255 = vector.broadcast %cst_70 : f32 to vector<16x1x32xf32>
    %256 = arith.mulf %255, %254 : vector<16x1x32xf32>
    %257 = arith.addf %253, %256 : vector<16x1x32xf32>
    %258 = vector.extract_strided_slice %235 {offsets = [0, 1, 0], sizes = [16, 1, 32], strides = [1, 1, 1]} : vector<16x8x32xf32> to vector<16x1x32xf32>
    %cst_71 = arith.constant 0.13333334 : f32
    %259 = vector.broadcast %cst_71 : f32 to vector<16x1x32xf32>
    %260 = arith.mulf %259, %258 : vector<16x1x32xf32>
    %261 = vector.extract_strided_slice %235 {offsets = [0, 2, 0], sizes = [16, 1, 32], strides = [1, 1, 1]} : vector<16x8x32xf32> to vector<16x1x32xf32>
    %cst_72 = arith.constant 0.866666674 : f32
    %262 = vector.broadcast %cst_72 : f32 to vector<16x1x32xf32>
    %263 = arith.mulf %262, %261 : vector<16x1x32xf32>
    %264 = arith.addf %260, %263 : vector<16x1x32xf32>
    %265 = vector.extract_strided_slice %235 {offsets = [0, 2, 0], sizes = [16, 1, 32], strides = [1, 1, 1]} : vector<16x8x32xf32> to vector<16x1x32xf32>
    %cst_73 = arith.constant 0.666666686 : f32
    %266 = vector.broadcast %cst_73 : f32 to vector<16x1x32xf32>
    %267 = arith.mulf %266, %265 : vector<16x1x32xf32>
    %268 = vector.extract_strided_slice %235 {offsets = [0, 3, 0], sizes = [16, 1, 32], strides = [1, 1, 1]} : vector<16x8x32xf32> to vector<16x1x32xf32>
    %cst_74 = arith.constant 0.333333343 : f32
    %269 = vector.broadcast %cst_74 : f32 to vector<16x1x32xf32>
    %270 = arith.mulf %269, %268 : vector<16x1x32xf32>
    %271 = arith.addf %267, %270 : vector<16x1x32xf32>
    %272 = vector.extract_strided_slice %235 {offsets = [0, 2, 0], sizes = [16, 1, 32], strides = [1, 1, 1]} : vector<16x8x32xf32> to vector<16x1x32xf32>
    %cst_75 = arith.constant 2.000000e-01 : f32
    %273 = vector.broadcast %cst_75 : f32 to vector<16x1x32xf32>
    %274 = arith.mulf %273, %272 : vector<16x1x32xf32>
    %275 = vector.extract_strided_slice %235 {offsets = [0, 3, 0], sizes = [16, 1, 32], strides = [1, 1, 1]} : vector<16x8x32xf32> to vector<16x1x32xf32>
    %cst_76 = arith.constant 8.000000e-01 : f32
    %276 = vector.broadcast %cst_76 : f32 to vector<16x1x32xf32>
    %277 = arith.mulf %276, %275 : vector<16x1x32xf32>
    %278 = arith.addf %274, %277 : vector<16x1x32xf32>
    %279 = vector.extract_strided_slice %235 {offsets = [0, 3, 0], sizes = [16, 1, 32], strides = [1, 1, 1]} : vector<16x8x32xf32> to vector<16x1x32xf32>
    %cst_77 = arith.constant 0.733333349 : f32
    %280 = vector.broadcast %cst_77 : f32 to vector<16x1x32xf32>
    %281 = arith.mulf %280, %279 : vector<16x1x32xf32>
    %282 = vector.extract_strided_slice %235 {offsets = [0, 4, 0], sizes = [16, 1, 32], strides = [1, 1, 1]} : vector<16x8x32xf32> to vector<16x1x32xf32>
    %cst_78 = arith.constant 0.266666681 : f32
    %283 = vector.broadcast %cst_78 : f32 to vector<16x1x32xf32>
    %284 = arith.mulf %283, %282 : vector<16x1x32xf32>
    %285 = arith.addf %281, %284 : vector<16x1x32xf32>
    %286 = vector.extract_strided_slice %235 {offsets = [0, 3, 0], sizes = [16, 1, 32], strides = [1, 1, 1]} : vector<16x8x32xf32> to vector<16x1x32xf32>
    %cst_79 = arith.constant 0.266666681 : f32
    %287 = vector.broadcast %cst_79 : f32 to vector<16x1x32xf32>
    %288 = arith.mulf %287, %286 : vector<16x1x32xf32>
    %289 = vector.extract_strided_slice %235 {offsets = [0, 4, 0], sizes = [16, 1, 32], strides = [1, 1, 1]} : vector<16x8x32xf32> to vector<16x1x32xf32>
    %cst_80 = arith.constant 0.733333349 : f32
    %290 = vector.broadcast %cst_80 : f32 to vector<16x1x32xf32>
    %291 = arith.mulf %290, %289 : vector<16x1x32xf32>
    %292 = arith.addf %288, %291 : vector<16x1x32xf32>
    %293 = vector.extract_strided_slice %235 {offsets = [0, 4, 0], sizes = [16, 1, 32], strides = [1, 1, 1]} : vector<16x8x32xf32> to vector<16x1x32xf32>
    %cst_81 = arith.constant 8.000000e-01 : f32
    %294 = vector.broadcast %cst_81 : f32 to vector<16x1x32xf32>
    %295 = arith.mulf %294, %293 : vector<16x1x32xf32>
    %296 = vector.extract_strided_slice %235 {offsets = [0, 5, 0], sizes = [16, 1, 32], strides = [1, 1, 1]} : vector<16x8x32xf32> to vector<16x1x32xf32>
    %cst_82 = arith.constant 2.000000e-01 : f32
    %297 = vector.broadcast %cst_82 : f32 to vector<16x1x32xf32>
    %298 = arith.mulf %297, %296 : vector<16x1x32xf32>
    %299 = arith.addf %295, %298 : vector<16x1x32xf32>
    %300 = vector.extract_strided_slice %235 {offsets = [0, 4, 0], sizes = [16, 1, 32], strides = [1, 1, 1]} : vector<16x8x32xf32> to vector<16x1x32xf32>
    %cst_83 = arith.constant 0.333333343 : f32
    %301 = vector.broadcast %cst_83 : f32 to vector<16x1x32xf32>
    %302 = arith.mulf %301, %300 : vector<16x1x32xf32>
    %303 = vector.extract_strided_slice %235 {offsets = [0, 5, 0], sizes = [16, 1, 32], strides = [1, 1, 1]} : vector<16x8x32xf32> to vector<16x1x32xf32>
    %cst_84 = arith.constant 0.666666686 : f32
    %304 = vector.broadcast %cst_84 : f32 to vector<16x1x32xf32>
    %305 = arith.mulf %304, %303 : vector<16x1x32xf32>
    %306 = arith.addf %302, %305 : vector<16x1x32xf32>
    %307 = vector.extract_strided_slice %235 {offsets = [0, 5, 0], sizes = [16, 1, 32], strides = [1, 1, 1]} : vector<16x8x32xf32> to vector<16x1x32xf32>
    %cst_85 = arith.constant 0.866666674 : f32
    %308 = vector.broadcast %cst_85 : f32 to vector<16x1x32xf32>
    %309 = arith.mulf %308, %307 : vector<16x1x32xf32>
    %310 = vector.extract_strided_slice %235 {offsets = [0, 6, 0], sizes = [16, 1, 32], strides = [1, 1, 1]} : vector<16x8x32xf32> to vector<16x1x32xf32>
    %cst_86 = arith.constant 0.13333334 : f32
    %311 = vector.broadcast %cst_86 : f32 to vector<16x1x32xf32>
    %312 = arith.mulf %311, %310 : vector<16x1x32xf32>
    %313 = arith.addf %309, %312 : vector<16x1x32xf32>
    %314 = vector.extract_strided_slice %235 {offsets = [0, 5, 0], sizes = [16, 1, 32], strides = [1, 1, 1]} : vector<16x8x32xf32> to vector<16x1x32xf32>
    %cst_87 = arith.constant 4.000000e-01 : f32
    %315 = vector.broadcast %cst_87 : f32 to vector<16x1x32xf32>
    %316 = arith.mulf %315, %314 : vector<16x1x32xf32>
    %317 = vector.extract_strided_slice %235 {offsets = [0, 6, 0], sizes = [16, 1, 32], strides = [1, 1, 1]} : vector<16x8x32xf32> to vector<16x1x32xf32>
    %cst_88 = arith.constant 6.000000e-01 : f32
    %318 = vector.broadcast %cst_88 : f32 to vector<16x1x32xf32>
    %319 = arith.mulf %318, %317 : vector<16x1x32xf32>
    %320 = arith.addf %316, %319 : vector<16x1x32xf32>
    %321 = vector.extract_strided_slice %235 {offsets = [0, 6, 0], sizes = [16, 1, 32], strides = [1, 1, 1]} : vector<16x8x32xf32> to vector<16x1x32xf32>
    %cst_89 = arith.constant 0.933333337 : f32
    %322 = vector.broadcast %cst_89 : f32 to vector<16x1x32xf32>
    %323 = arith.mulf %322, %321 : vector<16x1x32xf32>
    %324 = vector.extract_strided_slice %235 {offsets = [0, 7, 0], sizes = [16, 1, 32], strides = [1, 1, 1]} : vector<16x8x32xf32> to vector<16x1x32xf32>
    %cst_90 = arith.constant 0.0666666701 : f32
    %325 = vector.broadcast %cst_90 : f32 to vector<16x1x32xf32>
    %326 = arith.mulf %325, %324 : vector<16x1x32xf32>
    %327 = arith.addf %323, %326 : vector<16x1x32xf32>
    %328 = vector.extract_strided_slice %235 {offsets = [0, 6, 0], sizes = [16, 1, 32], strides = [1, 1, 1]} : vector<16x8x32xf32> to vector<16x1x32xf32>
    %cst_91 = arith.constant 0.466666669 : f32
    %329 = vector.broadcast %cst_91 : f32 to vector<16x1x32xf32>
    %330 = arith.mulf %329, %328 : vector<16x1x32xf32>
    %331 = vector.extract_strided_slice %235 {offsets = [0, 7, 0], sizes = [16, 1, 32], strides = [1, 1, 1]} : vector<16x8x32xf32> to vector<16x1x32xf32>
    %cst_92 = arith.constant 0.533333361 : f32
    %332 = vector.broadcast %cst_92 : f32 to vector<16x1x32xf32>
    %333 = arith.mulf %332, %331 : vector<16x1x32xf32>
    %334 = arith.addf %330, %333 : vector<16x1x32xf32>
    %335 = vector.extract_strided_slice %235 {offsets = [0, 7, 0], sizes = [16, 1, 32], strides = [1, 1, 1]} : vector<16x8x32xf32> to vector<16x1x32xf32>
    %336 = tpu.concatenate %236, %243, %250, %257, %264, %271, %278, %285, %292, %299, %306, %313, %320, %327, %334, %335 in 1 : vector<16x1x32xf32>, vector<16x1x32xf32>, vector<16x1x32xf32>, vector<16x1x32xf32>, vector<16x1x32xf32>, vector<16x1x32xf32>, vector<16x1x32xf32>, vector<16x1x32xf32>, vector<16x1x32xf32>, vector<16x1x32xf32>, vector<16x1x32xf32>, vector<16x1x32xf32>, vector<16x1x32xf32>, vector<16x1x32xf32>, vector<16x1x32xf32>, vector<16x1x32xf32> -> vector<16x16x32xf32>
    %337 = arith.addf %3, %336 : vector<16x16x32xf32>
    %c0_93 = arith.constant 0 : index
    %c0_94 = arith.constant 0 : index
    %c0_95 = arith.constant 0 : index
    %c0_96 = arith.constant 0 : index
    %338 = vector.load %arg12[%c0_93, %c0_94, %c0_95, %c0_96] : memref<1x16x16x32xf32, #tpu.memory_space<vmem>>, vector<1x16x16x32xf32>
    %339 = vector.shape_cast %338 : vector<1x16x16x32xf32> to vector<16x16x32xf32>
    %340 = vector.shape_cast %337 : vector<16x16x32xf32> to vector<1x16x16x32xf32>
    tpu.vector_store %arg12[%c0_93, %c0_94, %c0_95, %c0_96], %340 {strides = array<i32>} : memref<1x16x16x32xf32, #tpu.memory_space<vmem>>, vector<1x16x16x32xf32>,
    return
  }
  func.func @transform_0(%arg0: i32) -> (i32, i32, i32, i32) {
    %c0_i32 = arith.constant 0 : i32
    %c0_i32_0 = arith.constant 0 : i32
    %c0_i32_1 = arith.constant 0 : i32
    %c0_i32_2 = arith.constant 0 : i32
    return %arg0, %c0_i32, %c0_i32_0, %c0_i32_1 : i32, i32, i32, i32
  }
  func.func @transform_1(%arg0: i32) -> (i32, i32, i32, i32) {
    %c0_i32 = arith.constant 0 : i32
    %c0_i32_0 = arith.constant 0 : i32
    %c0_i32_1 = arith.constant 0 : i32
    %c0_i32_2 = arith.constant 0 : i32
    return %arg0, %c0_i32, %c0_i32_0, %c0_i32_1 : i32, i32, i32, i32
  }
  func.func @transform_2(%arg0: i32) -> (i32, i32) {
    %c0_i32 = arith.constant 0 : i32
    %c0_i32_0 = arith.constant 0 : i32
    %c0_i32_1 = arith.constant 0 : i32
    return %c0_i32, %c0_i32_0 : i32, i32
  }
  func.func @transform_3(%arg0: i32) -> (i32, i32) {
    %c0_i32 = arith.constant 0 : i32
    %c0_i32_0 = arith.constant 0 : i32
    %c0_i32_1 = arith.constant 0 : i32
    return %c0_i32, %c0_i32_0 : i32, i32
  }
  func.func @transform_4(%arg0: i32) -> (i32, i32) {
    %c0_i32 = arith.constant 0 : i32
    %c0_i32_0 = arith.constant 0 : i32
    %c0_i32_1 = arith.constant 0 : i32
    return %c0_i32, %c0_i32_0 : i32, i32
  }
  func.func @transform_5(%arg0: i32) -> (i32, i32) {
    %c0_i32 = arith.constant 0 : i32
    %c0_i32_0 = arith.constant 0 : i32
    %c0_i32_1 = arith.constant 0 : i32
    return %c0_i32, %c0_i32_0 : i32, i32
  }
  func.func @transform_6(%arg0: i32) -> (i32, i32) {
    %c0_i32 = arith.constant 0 : i32
    %c0_i32_0 = arith.constant 0 : i32
    %c0_i32_1 = arith.constant 0 : i32
    return %c0_i32, %c0_i32_0 : i32, i32
  }
  func.func @transform_7(%arg0: i32) -> (i32, i32) {
    %c0_i32 = arith.constant 0 : i32
    %c0_i32_0 = arith.constant 0 : i32
    %c0_i32_1 = arith.constant 0 : i32
    return %c0_i32, %c0_i32_0 : i32, i32
  }
  func.func @transform_8(%arg0: i32) -> (i32, i32) {
    %c0_i32 = arith.constant 0 : i32
    %c0_i32_0 = arith.constant 0 : i32
    %c0_i32_1 = arith.constant 0 : i32
    return %c0_i32, %c0_i32_0 : i32, i32
  }
  func.func @transform_9(%arg0: i32) -> (i32, i32) {
    %c0_i32 = arith.constant 0 : i32
    %c0_i32_0 = arith.constant 0 : i32
    %c0_i32_1 = arith.constant 0 : i32
    return %c0_i32, %c0_i32_0 : i32, i32
  }
  func.func @transform_10(%arg0: i32) -> (i32, i32, i32, i32) {
    %c0_i32 = arith.constant 0 : i32
    %c0_i32_0 = arith.constant 0 : i32
    %c0_i32_1 = arith.constant 0 : i32
    %c0_i32_2 = arith.constant 0 : i32
    return %arg0, %c0_i32, %c0_i32_0, %c0_i32_1 : i32, i32, i32, i32
  }
  func.func @transform_11(%arg0: i32) -> (i32, i32, i32, i32) {
    %c0_i32 = arith.constant 0 : i32
    %c0_i32_0 = arith.constant 0 : i32
    %c0_i32_1 = arith.constant 0 : i32
    %c0_i32_2 = arith.constant 0 : i32
    return %arg0, %c0_i32, %c0_i32_0, %c0_i32_1 : i32, i32, i32, i32
  }
}

</mosaic_0001>

<bundles_post_ra>
// kernel: frru_forward.1
= control target key start
LH: loop header
LB: loop body
LE: loop exit
PB: predicated region body
PF: predicated region fallthrough
CT: control target
= control target key end

     0   :  { %s10265_s0 = inlined_call_operand.vmem [shape: f32[2,8,8,16], index: 0, kind: input, shape index: {}]   ;;  %s10266_s1 = inlined_call_operand.vmem [shape: f32[2,16,16,32], index: 1, kind: input, shape index: {}]   ;;  %s10267_s2 = inlined_call_operand.vmem [shape: bf16[432,32], index: 2, kind: input, shape index: {}]   ;;  %s10268_s3 = inlined_call_operand.vmem [shape: f32[1,32], index: 3, kind: input, shape index: {}]   ;;  %s10269_s4 = inlined_call_operand.vmem [shape: f32[1,32], index: 4, kind: input, shape index: {}]   ;;  %s10270_s5 = inlined_call_operand.vmem [shape: bf16[288,32], index: 5, kind: input, shape index: {}]   ;;  %s10271_s6 = inlined_call_operand.vmem [shape: f32[1,32], index: 6, kind: input, shape index: {}]   ;;  %s10272_s7 = inlined_call_operand.vmem [shape: f32[1,32], index: 7, kind: input, shape index: {}]   ;;  %s10273_s8 = inlined_call_operand.vmem [shape: bf16[32,32], index: 8, kind: input, shape index: {}]   ;;  %s10274_s9 = inlined_call_operand.vmem [shape: f32[1,32], index: 9, kind: input, shape index: {}]   ;;  %s10275_s10 = inlined_call_operand.hbm [shape: f32[2,8,8,32], index: 10, kind: output, shape index: {0}]   ;;  %s10276_s11 = inlined_call_operand.hbm [shape: f32[2,16,16,32], index: 11, kind: output, shape index: {1}]  }
   0x1   :  { %10396 = sst [smem:[#allocation77_spill]] %s10265_s0 }
   0x2   :  { %10397 = sst [smem:[#allocation78_spill]] %s10266_s1 }
   0x3   :  { %10398 = sst [smem:[#allocation79_spill]] %s10267_s2 }
   0x4   :  { %17 = vsyncpa [#allocation3], 0 }
   0x5   :  { %19 = vsyncpa [#allocation3 + $0x1], 0 }
   0x6   :  { %20 = vsyncpa [#allocation5], 0 }
   0x7   :  { %22 = vsyncpa [#allocation5 + $0x1], 0  ;;  %s6715_s17 = smov 0   ;;  %s6717_s18 = smov 0  }
   0x8   :  { %s6719_s19 = smov 0   ;;  %s6721_s20 = smov 0  }
   0x9 LB: > { %s6736_s21 = sadd.s32 4294967295, %s6640_s20   ;;  %s6077_s22 = sadd.s32 4294967294, %s6640_s20   ;;  %s6640_s20 = sphi %s6721_s20, %s10783_s20   ;;  %s6636_s19 = sphi %s6719_s19, %s10782_s19   ;;  %s6632_s18 = sphi %s6717_s18, %s10781_s18   ;;  %s6628_s17 = sphi %s6715_s17, %s10780_s17  }
   0xa   : > { %s6740_s23 = sadd.s32 1, %s6640_s20   ;;  %s255_s24 = sadd.s32 1, %s6636_s19 }
   0xb   : > { %s252_s25 = ssub.s32 %s6640_s20, %s6740_s23  ;;  %p265_p0 = scmp.ne.s32.totalorder %s6636_s19, %s6632_s18 }
   0xc   : > { %p253_p1 = scmp.eq.s32.totalorder %s252_s25, 0  ;;  %p266_p2 = scmp.eq.s32.totalorder %s6736_s21, 1 }
   0xd   : > { %p271_p3 = scmp.ne.s32.totalorder %s6632_s18, %s6628_s17  ;;  %p272_p4 = scmp.eq.s32.totalorder %s6077_s22, 1 }
   0xe   : > { %s6751_s26 = scalar_select %p253_p1, %s6636_s19, %s255_s24  }
   0xf   : > { %p6753_p5 = por %p266_p2, %p265_p0  ;;  %p6757_p6 = por %p272_p4, %p271_p3 }
  0x10   : > { %p6080_p7 = scmp.ge.s32.totalorder %s6640_s20, 1  ;;  %p356_p8 = scmp.lt.s32.totalorder %s6640_s20, 3 }
  0x12   : > { %p357_p9 = pnand %p6080_p7, %p356_p8 }
  0x14   : > { %360 = sbr.rel (%p357_p9) target bundleno = 1723 (0x6bb), region = 60 }
  0x1b   : > { %v507_v0 = vlaneseq  ;;  %v6642_v1 = vmov 0   ;;  %p406_p10 = scmp.lt.s32.totalorder %s6736_s21, 1  ;;  %v6643_v3 = vmov 1983009808   ;;  %s10279_s29 = smov 96   ;;  %vm1063_vm0 = vcmask 1042434  }
  0x1c   : > { %v6764_v2 = vrot.slane %v6642_v1, 1  ;;  %v505_v4 = vunpack.c.l.s4 %v6643_v3  ;;  %2886 = vmatprep.subr.bf16.mxu1 %v6642_v1  ;;  %s10281_s12 = smov 32   ;;  %s10401_s1 = sld [smem:[#allocation78_spill]]  ;;  %vm1065_vm1 = vcmask 1043459   ;;  %vm1067_vm2 = vcmask 1044484  }
  0x1d   : > { %v508_v5 = vshrl.u32 %v507_v0, 7  ;;  %s6771_s30 = scalar_select %p406_p10, %s6736_s21, 1  ;;  %2373 = vrot.lane.b32.xlu1 %v6642_v1, %s10281_s12  ;;  %vm1069_vm3 = vcmask 1045509   ;;  %vm1071_vm4 = vcmask 1046534   ;;  %vm1073_vm5 = vcmask 1047559  }
  0x1e   : > { %2286 = vrot.lane.b32.xlu0 %v6764_v2, %s10279_s29  ;;  %v506_v6 = vunpack.c.0.s8 %v505_v4  ;;  %s10277_s22 = smov 48   ;;  %vm1125_vm6 = vcmask 1040384   ;;  %vm2014_vm7 = vcmask 1041409   ;;  %s6647_s24 = smov 16   ;;  %vm2095_vm8 = vcmask 130048  }
  0x1f   : > { %s6260_s13 = sshll.u32 %s6771_s30, 8  ;;  %v6797_v18 = vsub.s32 1, %v508_v5  ;;  %v6799_v19 = vsub.s32 0, %v508_v5  ;;  %s6259_s25 = sshll.u32 %s6771_s30, 6  ;;  %vm2177_vm9 = vsmask.f32 256 }
  0x20   : > { %v6781_v7 = vsub.s32 %v506_v6, %v508_v5  ;;  %s10402_s0 = sld [smem:[#allocation77_spill]]  ;;  %vm2187_vm10 = vcmask 1044480   ;;  %vm2188_vm11 = vsmask.f32 4352  ;;  %vm7445_vm12 = vmand %vm1125_vm6, %vm2177_vm9  ;;  %s10283_s30 = smov 112   ;;  %vm2391_vm14 = vcmask 392192  }
  0x21   : > { %vm7450_vm13 = vmand %vm2187_vm10, %vm2188_vm11  ;;  %s10407_s2 = sld [smem:[#allocation79_spill]]  ;;  %vm2441_vm15 = vcmask 523264   ;;  %vm5743_vm9 = vcmask 1046528  }
  0x22   : > { %s6779_s16 = scalar_lea.vmem %s10401_s1, %s6260_s13  ;;  %2254 = vrot.lane.b32.xlu0 %v6764_v2, %s10277_s22  ;;  %s6650_s22 = smov 80  }
  0x23   : > { %v425_v8 = vld [vmem:[%s6779_s16] sm:$0xff]  ;;  %v426_v9 = vld [vmem:[%s6779_s16 + $0x8] sm:$0xff]  ;;  %v427_v10 = vld [vmem:[%s6779_s16 + $0x10] sm:$0xff] }
  0x24   : > { %v428_v11 = vld [vmem:[%s6779_s16 + $0x18] sm:$0xff]  ;;  %v429_v12 = vld [vmem:[%s6779_s16 + $0x20] sm:$0xff]  ;;  %v430_v13 = vld [vmem:[%s6779_s16 + $0x28] sm:$0xff]  ;;  %v457_v14 = vmax.f32 %v425_v8, %v427_v10 }
  0x25   : > { %v6792_v15 = vld [vmem:[%s6779_s16 + $0x30] sm:$0xff]  ;;  %v6795_v16 = vld [vmem:[%s6779_s16 + $0x38] sm:$0xff]  ;;  %v458_v17 = vmax.f32 %v426_v9, %v428_v11  ;;  %v6802_v20 = vld [vmem:[%s6779_s16 + $0x40] sm:$0xff] }
  0x26   : > { %v459_v21 = vmax.f32 %v429_v12, %v6792_v15  ;;  %v460_v22 = vmax.f32 %v430_v13, %v6795_v16  ;;  %v503_v23 = vcombine.high %v457_v14, %v457_v14  ;;  %v6807_v24 = vrot.slane %v457_v14, %v6781_v7  ;;  %v6810_v25 = vld [vmem:[%s6779_s16 + $0x48] sm:$0xff]  ;;  %v6813_v26 = vld [vmem:[%s6779_s16 + $0x50] sm:$0xff]  ;;  %v6816_v27 = vld [vmem:[%s6779_s16 + $0x58] sm:$0xff]  ;;  %s7435_s15 = scalar_lea.vmem %s10402_s0, %s6259_s25  ;;  %s10409_s25 = smov 112  }
  0x27   : > { %v520_v28 = vcombine.high %v458_v17, %v458_v17  ;;  %v6819_v29 = vrot.slane %v458_v17, %v6781_v7  ;;  %v461_v30 = vmax.f32 %v6802_v20, %v6813_v26  ;;  %v462_v31 = vmax.f32 %v6810_v25, %v6816_v27 }
  0x28   : > { %v473_v32 = vmax.f32 %v459_v21, %v427_v10  ;;  %v474_v33 = vmax.f32 %v460_v22, %v428_v11  ;;  %v6826_v34 = vrot.slane %v503_v23, %v6781_v7  ;;  %v6830_v35 = vcombine.high %v6807_v24, %v6807_v24 }
  0x29   : > { %v6833_v36 = vrot.slane %v520_v28, %v6781_v7  ;;  %v6837_v37 = vcombine.high %v6819_v29, %v6819_v29  ;;  %v842_v38 = vrot.slane %v6807_v24, %v6797_v18  ;;  %v858_v39 = vrot.slane %v6819_v29, %v6797_v18 }
  0x2a   : > { %v519_v40 = vcombine.high %v6826_v34, %v6826_v34  ;;  %v537_v41 = vcombine.high %v473_v32, %v473_v32  ;;  %v6846_v42 = vrot.slane %v473_v32, %v6781_v7  ;;  %v554_v43 = vcombine.high %v474_v33, %v474_v33 }
  0x2b   : > { %v536_v44 = vcombine.high %v6833_v36, %v6833_v36  ;;  %v6851_v45 = vrot.slane %v474_v33, %v6781_v7  ;;  %v846_v46 = vrot.slane %v6830_v35, %v6797_v18  ;;  %v850_v47 = vrot.slane %v6826_v34, %v6797_v18 }
  0x2c   : > { %v551_v48 = vrot.slane %v537_v41, %v6781_v7  ;;  %v552_v49 = vcombine.high %v6846_v42, %v6846_v42  ;;  %v568_v50 = vrot.slane %v554_v43, %v6781_v7  ;;  %v854_v51 = vrot.slane %v519_v40, %v6797_v18 }
  0x2d   : > { %v569_v52 = vcombine.high %v6851_v45, %v6851_v45  ;;  %v862_v53 = vrot.slane %v6837_v37, %v6797_v18  ;;  %v866_v54 = vrot.slane %v6833_v36, %v6797_v18  ;;  %v870_v55 = vrot.slane %v6846_v42, %v6797_v18 }
  0x2e   : > { %v553_v56 = vcombine.high %v551_v48, %v551_v48  ;;  %v570_v57 = vcombine.high %v568_v50, %v568_v50  ;;  %v874_v58 = vrot.slane %v552_v49, %v6797_v18  ;;  %v878_v59 = vrot.slane %v551_v48, %v6797_v18 }
  0x2f   : > { %v886_v60 = vrot.slane %v6851_v45, %v6797_v18  ;;  %v890_v61 = vrot.slane %v569_v52, %v6797_v18  ;;  %v894_v62 = vrot.slane %v568_v50, %v6797_v18  ;;  %v1064_v63 = vsel %vm1063_vm0, %v846_v46, %v842_v38 }
  0x30   : > { %v882_v0 = vrot.slane %v553_v56, %v6797_v18  ;;  %v1066_v3 = vsel %vm1065_vm1, %v850_v47, %v1064_v63  ;;  %v1075_v4 = vsel %vm1063_vm0, %v874_v58, %v870_v55  ;;  %v6087_v5 = vrot.slane %v6807_v24, 9  ;;  %v6905_v63 = vld [vmem:[%s6779_s16 + $0x68] sm:$0xff] }
  0x31   : > { %v1068_v6 = vsel %vm1067_vm2, %v854_v51, %v1066_v3  ;;  %v1076_v8 = vsel %vm1065_vm1, %v878_v59, %v1075_v4  ;;  %v6088_v9 = vrot.slane %v6830_v35, 9  ;;  %v6089_v10 = vrot.slane %v6826_v34, 9 }
  0x32   : > { %v1070_v11 = vsel %vm1069_vm3, %v858_v39, %v1068_v6  ;;  %v1077_v12 = vsel %vm1067_vm2, %v882_v0, %v1076_v8  ;;  %v6090_v13 = vrot.slane %v519_v40, 9  ;;  %v6091_v14 = vrot.slane %v6819_v29, 9  ;;  %v6911_v0 = vld [vmem:[%s6779_s16 + $0x78] sm:$0xff] }
  0x33   : > { %v1072_v17 = vsel %vm1071_vm4, %v862_v53, %v1070_v11  ;;  %v1078_v21 = vsel %vm1069_vm3, %v886_v60, %v1077_v12  ;;  %v6092_v22 = vrot.slane %v6837_v37, 9  ;;  %v6093_v23 = vrot.slane %v6833_v36, 9 }
  0x34   : > { %v1074_v28 = vsel %vm1073_vm5, %v866_v54, %v1072_v17  ;;  %v1079_v32 = vsel %vm1071_vm4, %v890_v61, %v1078_v21  ;;  %v6094_v33 = vrot.slane %v536_v44, 9  ;;  %v6095_v38 = vrot.slane %v6846_v42, 9  ;;  %v6902_v61 = vld [vmem:[%s6779_s16 + $0x60] sm:$0xff] }
  0x35   : > { %v1080_v39 = vsel %vm1073_vm5, %v894_v62, %v1079_v32  ;;  %v1126_v41 = vsel %vm1125_vm6, -inf, %v1074_v28  ;;  %v6096_v43 = vrot.slane %v552_v49, 9  ;;  %v6097_v46 = vrot.slane %v551_v48, 9  ;;  %v6908_v62 = vld [vmem:[%s6779_s16 + $0x70] sm:$0xff] }
  0x36   : > { %v1127_v47 = vsel %vm1125_vm6, -inf, %v1080_v39  ;;  %v6098_v51 = vrot.slane %v553_v56, 9  ;;  %v6099_v53 = vrot.slane %v6851_v45, 9  ;;  %v6100_v54 = vrot.slane %v569_v52, 9 }
  0x37   : > { %v6101_v55 = vrot.slane %v568_v50, 9  ;;  %v6102_v58 = vrot.slane %v570_v57, 9  ;;  %v1326_v59 = vmax.f32 %v6807_v24, %v6087_v5  ;;  %v1327_v60 = vmax.f32 %v6830_v35, %v6088_v9 }
  0x38   : > { %v1328_v3 = vmax.f32 %v6826_v34, %v6089_v10  ;;  %v1329_v4 = vmax.f32 %v519_v40, %v6090_v13  ;;  %v1330_v6 = vmax.f32 %v6819_v29, %v6091_v14  ;;  %v1331_v8 = vmax.f32 %v6837_v37, %v6092_v22 }
  0x39   : > { %v1332_v11 = vmax.f32 %v6833_v36, %v6093_v23  ;;  %v1333_v24 = vmax.f32 %v536_v44, %v6094_v33  ;;  %v1334_v35 = vmax.f32 %v6846_v42, %v6095_v38  ;;  %v1335_v5 = vmax.f32 %v552_v49, %v6096_v43 }
  0x3a   : > { %v1336_v9 = vmax.f32 %v551_v48, %v6097_v46  ;;  %v1337_v12 = vmax.f32 %v553_v56, %v6098_v51  ;;  %v1338_v17 = vmax.f32 %v6851_v45, %v6099_v53  ;;  %v1339_v21 = vmax.f32 %v569_v52, %v6100_v54 }
  0x3b   : > { %v1340_v28 = vmax.f32 %v568_v50, %v6101_v55  ;;  %v1341_v32 = vmax.f32 %v570_v57, %v6102_v58  ;;  %v1398_v39 = vcombine.high %v1126_v41, %v1126_v41  ;;  %v1405_v34 = vrot.slane %v1126_v41, %v6781_v7 }
  0x3c   : > { %v1415_v40 = vcombine.high %v1127_v47, %v1127_v47  ;;  %v1422_v29 = vrot.slane %v1127_v47, %v6781_v7  ;;  %v463_v36 = vmax.f32 %v6902_v61, %v6908_v62  ;;  %v464_v37 = vmax.f32 %v6905_v63, %v6911_v0 }
  0x3d   : > { %v1412_v42 = vrot.slane %v1398_v39, %v6781_v7  ;;  %v1413_v44 = vcombine.high %v1405_v34, %v1405_v34  ;;  %v1534_v48 = vrot.slane %v1405_v34, 1  ;;  %v1630_v45 = vmax.f32 %v1326_v59, %v1405_v34 }
  0x3e   : > { %v1429_v49 = vrot.slane %v1415_v40, %v6781_v7  ;;  %v1430_v50 = vcombine.high %v1422_v29, %v1422_v29  ;;  %v1538_v52 = vrot.slane %v1422_v29, 1  ;;  %v1638_v56 = vmax.f32 %v1334_v35, %v1422_v29 }
  0x3f   : > { %v1414_v57 = vcombine.high %v1412_v42, %v1412_v42  ;;  %v1535_v10 = vrot.slane %v1413_v44, 1  ;;  %v1536_v13 = vrot.slane %v1412_v42, 1  ;;  %v1631_v14 = vmax.f32 %v1327_v60, %v1534_v48 }
  0x40   : > { %v1431_v22 = vcombine.high %v1429_v49, %v1429_v49  ;;  %v1539_v23 = vrot.slane %v1430_v50, 1  ;;  %v1540_v33 = vrot.slane %v1429_v49, 1  ;;  %v1632_v38 = vmax.f32 %v1328_v3, %v1413_v44 }
  0x41   : > { %v1537_v41 = vrot.slane %v1414_v57, 1  ;;  %v1633_v43 = vmax.f32 %v1329_v4, %v1535_v10  ;;  %v1634_v46 = vmax.f32 %v1330_v6, %v1412_v42  ;;  %v1635_v47 = vmax.f32 %v1331_v8, %v1536_v13 }
  0x42   : > { %v1541_v51 = vrot.slane %v1431_v22, 1  ;;  %v1636_v53 = vmax.f32 %v1332_v11, %v1414_v57  ;;  %v1639_v54 = vmax.f32 %v1335_v5, %v1538_v52  ;;  %v1640_v55 = vmax.f32 %v1336_v9, %v1430_v50 }
  0x43   : > { %v1637_v58 = vmax.f32 %v1333_v24, %v1537_v41  ;;  %v1641_v59 = vmax.f32 %v1337_v12, %v1539_v23  ;;  %v1642_v61 = vmax.f32 %v1338_v17, %v1429_v49  ;;  %v1643_v63 = vmax.f32 %v1339_v21, %v1540_v33 }
  0x44   : > { %v1644_v35 = vmax.f32 %v1340_v28, %v1431_v22  ;;  %v1645_v39 = vmax.f32 %v1341_v32, %v1541_v51  ;;  %v1761_v60 = vrot.slane %v1630_v45, %v6799_v19  ;;  %v1765_v34 = vrot.slane %v1631_v14, %v6799_v19 }
  0x45   : > { %v1769_v3 = vrot.slane %v1632_v38, %v6799_v19  ;;  %v1773_v4 = vrot.slane %v1633_v43, %v6799_v19  ;;  %v1777_v6 = vrot.slane %v1634_v46, %v6799_v19  ;;  %v1781_v8 = vrot.slane %v1635_v47, %v6799_v19 }
  0x46   : > { %v1785_v11 = vrot.slane %v1636_v53, %v6799_v19  ;;  %v1789_v24 = vrot.slane %v1637_v58, %v6799_v19  ;;  %v1793_v5 = vrot.slane %v1638_v56, %v6799_v19  ;;  %v1797_v9 = vrot.slane %v1639_v54, %v6799_v19 }
  0x47   : > { %v1801_v12 = vrot.slane %v1640_v55, %v6799_v19  ;;  %v1805_v17 = vrot.slane %v1641_v59, %v6799_v19  ;;  %v1809_v21 = vrot.slane %v1642_v61, %v6799_v19  ;;  %v1813_v28 = vrot.slane %v1643_v63, %v6799_v19 }
  0x48   : > { %v1817_v32 = vrot.slane %v1644_v35, %v6799_v19  ;;  %v1821_v40 = vrot.slane %v1645_v39, %v6799_v19  ;;  %v2015_v29 = vsel %vm2014_vm7, %v1765_v34, %v1761_v60  ;;  %v2022_v42 = vsel %vm2014_vm7, %v1797_v9, %v1793_v5 }
  0x49   : > { %v2016_v44 = vsel %vm1063_vm0, %v1769_v3, %v2015_v29  ;;  %v2023_v48 = vsel %vm1063_vm0, %v1801_v12, %v2022_v42  ;;  %v475_v45 = vmax.f32 %v461_v30, %v6792_v15  ;;  %v476_v49 = vmax.f32 %v462_v31, %v6795_v16 }
  0x4a   : > { %v2017_v50 = vsel %vm1065_vm1, %v1773_v4, %v2016_v44  ;;  %v2024_v52 = vsel %vm1065_vm1, %v1805_v17, %v2023_v48  ;;  %v477_v56 = vmax.f32 %v463_v36, %v6813_v26  ;;  %v478_v57 = vmax.f32 %v464_v37, %v6816_v27 }
  0x4b   : > { %v2018_v10 = vsel %vm1067_vm2, %v1777_v6, %v2017_v50  ;;  %v2025_v13 = vsel %vm1067_vm2, %v1809_v21, %v2024_v52  ;;  %v571_v14 = vcombine.high %v475_v45, %v475_v45  ;;  %v6962_v15 = vrot.slane %v475_v45, %v6781_v7 }
  0x4c   : > { %v2019_v20 = vsel %vm1069_vm3, %v1781_v8, %v2018_v10  ;;  %v2026_v16 = vsel %vm1069_vm3, %v1813_v28, %v2025_v13  ;;  %v588_v25 = vcombine.high %v476_v49, %v476_v49  ;;  %v6967_v30 = vrot.slane %v476_v49, %v6781_v7 }
  0x4d   : > { %v2020_v26 = vsel %vm1071_vm4, %v1785_v11, %v2019_v20  ;;  %v2027_v27 = vsel %vm1071_vm4, %v1817_v32, %v2026_v16  ;;  %v6972_v31 = vrot.slane %v571_v14, %v6781_v7  ;;  %v6976_v36 = vcombine.high %v6962_v15, %v6962_v15 }
  0x4e   : > { %v2021_v37 = vsel %vm1073_vm5, %v1789_v24, %v2020_v26  ;;  %v2028_v22 = vsel %vm1073_vm5, %v1821_v40, %v2027_v27  ;;  %v6981_v23 = vrot.slane %v588_v25, %v6781_v7  ;;  %v6985_v33 = vcombine.high %v6967_v30, %v6967_v30 }
  0x4f   : > { %v6446_v38 = vpack.i.bf16 %v2028_v22, %v2021_v37  ;;  %v587_v41 = vcombine.high %v6972_v31, %v6972_v31  ;;  %v605_v43 = vcombine.high %v477_v56, %v477_v56  ;;  %v6990_v46 = vrot.slane %v477_v56, %v6781_v7 }
  0x50   : > { %v6994_v47 = vcombine.high %v6981_v23, %v6981_v23  ;;  %v622_v51 = vcombine.high %v478_v57, %v478_v57  ;;  %v6997_v53 = vrot.slane %v478_v57, %v6781_v7  ;;  %v898_v54 = vrot.slane %v6962_v15, %v6797_v18 }
  0x51   : > { %6447 = vrot.lane.b32.xlu0 %v6446_v38, %s6647_s24  ;;  %v619_v55 = vrot.slane %v605_v43, %v6781_v7  ;;  %v620_v58 = vcombine.high %v6990_v46, %v6990_v46  ;;  %v902_v59 = vrot.slane %v6976_v36, %v6797_v18  ;;  %v906_v61 = vrot.slane %v6972_v31, %v6797_v18 }
  0x52   : > { %v7010_v63 = vrot.slane %v622_v51, %v6781_v7  ;;  %v7014_v35 = vcombine.high %v6997_v53, %v6997_v53  ;;  %v910_v39 = vrot.slane %v587_v41, %v6797_v18  ;;  %v914_v60 = vrot.slane %v6967_v30, %v6797_v18 }
  0x53   : > { %v621_v34 = vcombine.high %v619_v55, %v619_v55  ;;  %v918_v3 = vrot.slane %v6985_v33, %v6797_v18  ;;  %v922_v4 = vrot.slane %v6981_v23, %v6797_v18  ;;  %v926_v6 = vrot.slane %v6990_v46, %v6797_v18 }
  0x54   : > { %v638_v8 = vcombine.high %v7010_v63, %v7010_v63  ;;  %v930_v11 = vrot.slane %v620_v58, %v6797_v18  ;;  %v934_v24 = vrot.slane %v619_v55, %v6797_v18  ;;  %v942_v5 = vrot.slane %v6997_v53, %v6797_v18 }
  0x55   : > { %v938_v9 = vrot.slane %v621_v34, %v6797_v18  ;;  %v946_v12 = vrot.slane %v7014_v35, %v6797_v18  ;;  %v950_v17 = vrot.slane %v7010_v63, %v6797_v18  ;;  %v1081_v21 = vsel %vm1063_vm0, %v902_v59, %v898_v54 }
  0x56   : > { %v1082_v28 = vsel %vm1065_vm1, %v906_v61, %v1081_v21  ;;  %v1087_v32 = vsel %vm1063_vm0, %v930_v11, %v926_v6  ;;  %v6103_v40 = vrot.slane %v6962_v15, 9  ;;  %v6104_v29 = vrot.slane %v6976_v36, 9 }
  0x57   : > { %v1083_v42 = vsel %vm1067_vm2, %v910_v39, %v1082_v28  ;;  %v1088_v44 = vsel %vm1065_vm1, %v934_v24, %v1087_v32  ;;  %v6105_v48 = vrot.slane %v6972_v31, 9  ;;  %v6106_v45 = vrot.slane %v587_v41, 9 }
  0x58   : > { %v1084_v49 = vsel %vm1069_vm3, %v914_v60, %v1083_v42  ;;  %v1089_v50 = vsel %vm1067_vm2, %v938_v9, %v1088_v44  ;;  %v6107_v52 = vrot.slane %v6967_v30, 9  ;;  %v6108_v56 = vrot.slane %v6985_v33, 9  ;;  %v7071_v9 = vld [vmem:[%s6779_s16 + $0x88] sm:$0xff] }
  0x59   : > { %v1085_v57 = vsel %vm1071_vm4, %v918_v3, %v1084_v49  ;;  %v1090_v10 = vsel %vm1069_vm3, %v942_v5, %v1089_v50  ;;  %v6109_v13 = vrot.slane %v6981_v23, 9  ;;  %v6110_v14 = vrot.slane %v6994_v47, 9  ;;  %v7068_v5 = vld [vmem:[%s6779_s16 + $0x80] sm:$0xff] }
  0x5a   : > { %v1086_v20 = vsel %vm1073_vm5, %v922_v4, %v1085_v57  ;;  %v1091_v16 = vsel %vm1071_vm4, %v946_v12, %v1090_v10  ;;  %v6111_v25 = vrot.slane %v6990_v46, 9  ;;  %v6112_v26 = vrot.slane %v620_v58, 9  ;;  %v7074_v12 = vld [vmem:[%s6779_s16 + $0x90] sm:$0xff] }
  0x5b   : > { %v1092_v27 = vsel %vm1073_vm5, %v950_v17, %v1091_v16  ;;  %v1128_v37 = vsel %vm1125_vm6, -inf, %v1086_v20  ;;  %v6113_v22 = vrot.slane %v619_v55, 9  ;;  %v6114_v38 = vrot.slane %v621_v34, 9 }
  0x5c   : > { %v1129_v43 = vsel %vm1125_vm6, -inf, %v1092_v27  ;;  %v6115_v51 = vrot.slane %v6997_v53, 9  ;;  %v6116_v54 = vrot.slane %v7014_v35, 9  ;;  %v6117_v59 = vrot.slane %v7010_v63, 9 }
  0x5d   : > { %v6118_v61 = vrot.slane %v638_v8, 9  ;;  %v1342_v39 = vmax.f32 %v6962_v15, %v6103_v40  ;;  %v1343_v60 = vmax.f32 %v6976_v36, %v6104_v29  ;;  %v1344_v3 = vmax.f32 %v6972_v31, %v6105_v48  ;;  %v7079_v31 = vld [vmem:[%s6779_s16 + $0x98] sm:$0xff] }
  0x5e   : > { %v1345_v4 = vmax.f32 %v587_v41, %v6106_v45  ;;  %v1346_v6 = vmax.f32 %v6967_v30, %v6107_v52  ;;  %v1347_v11 = vmax.f32 %v6985_v33, %v6108_v56  ;;  %v1348_v24 = vmax.f32 %v6981_v23, %v6109_v13  ;;  %v7082_v41 = vld [vmem:[%s6779_s16 + $0xa0] sm:$0xff]  ;;  %v7085_v30 = vld [vmem:[%s6779_s16 + $0xb0] sm:$0xff] }
  0x5f   : > { %v1349_v15 = vmax.f32 %v6994_v47, %v6110_v14  ;;  %v1350_v17 = vmax.f32 %v6990_v46, %v6111_v25  ;;  %v1351_v36 = vmax.f32 %v620_v58, %v6112_v26  ;;  %v1352_v21 = vmax.f32 %v619_v55, %v6113_v22 }
  0x60   : > { %v1353_v33 = vmax.f32 %v621_v34, %v6114_v38  ;;  %v1354_v23 = vmax.f32 %v6997_v53, %v6115_v51  ;;  %v1355_v28 = vmax.f32 %v7014_v35, %v6116_v54  ;;  %v1356_v32 = vmax.f32 %v7010_v63, %v6117_v59 }
  0x61   : > { %v1357_v40 = vmax.f32 %v638_v8, %v6118_v61  ;;  %v1432_v29 = vcombine.high %v1128_v37, %v1128_v37  ;;  %v1439_v47 = vrot.slane %v1128_v37, %v6781_v7  ;;  %v1449_v46 = vcombine.high %v1129_v43, %v1129_v43 }
  0x62   : > { %v1456_v55 = vrot.slane %v1129_v43, %v6781_v7  ;;  %v465_v58 = vmax.f32 %v7068_v5, %v7074_v12  ;;  %v466_v42 = vmax.f32 %v7071_v9, %v7079_v31  ;;  %v467_v53 = vmax.f32 %v7082_v41, %v7085_v30  ;;  %v7112_v41 = vld [vmem:[%s6779_s16 + $0xb8] sm:$0xff] }
  0x63   : > { %v1446_v35 = vrot.slane %v1432_v29, %v6781_v7  ;;  %v1447_v34 = vcombine.high %v1439_v47, %v1439_v47  ;;  %v1463_v63 = vrot.slane %v1449_v46, %v6781_v7  ;;  %v1542_v8 = vrot.slane %v1439_v47, 1 }
  0x64   : > { %v1464_v44 = vcombine.high %v1456_v55, %v1456_v55  ;;  %v1546_v48 = vrot.slane %v1456_v55, 1  ;;  %v1646_v45 = vmax.f32 %v1342_v39, %v1439_v47  ;;  %v1654_v49 = vmax.f32 %v1350_v17, %v1456_v55 }
  0x65   : > { %v1448_v50 = vcombine.high %v1446_v35, %v1446_v35  ;;  %v1465_v52 = vcombine.high %v1463_v63, %v1463_v63  ;;  %v1543_v56 = vrot.slane %v1447_v34, 1  ;;  %v1544_v57 = vrot.slane %v1446_v35, 1 }
  0x66   : > { %v1547_v10 = vrot.slane %v1464_v44, 1  ;;  %v1548_v13 = vrot.slane %v1463_v63, 1  ;;  %v1647_v14 = vmax.f32 %v1343_v60, %v1542_v8  ;;  %v1648_v20 = vmax.f32 %v1344_v3, %v1447_v34 }
  0x67   : > { %v1545_v16 = vrot.slane %v1448_v50, 1  ;;  %v1549_v25 = vrot.slane %v1465_v52, 1  ;;  %v1649_v26 = vmax.f32 %v1345_v4, %v1543_v56  ;;  %v1650_v27 = vmax.f32 %v1346_v6, %v1446_v35 }
  0x68   : > { %v1651_v37 = vmax.f32 %v1347_v11, %v1544_v57  ;;  %v1652_v22 = vmax.f32 %v1348_v24, %v1448_v50  ;;  %v1655_v38 = vmax.f32 %v1351_v36, %v1546_v48  ;;  %v1656_v43 = vmax.f32 %v1352_v21, %v1464_v44  ;;  %v446_v21 = vld [vmem:[%s6779_s16 + $0xa8] sm:$0xff] }
  0x69   : > { %v1653_v51 = vmax.f32 %v1349_v15, %v1545_v16  ;;  %v1657_v54 = vmax.f32 %v1353_v33, %v1547_v10  ;;  %v1658_v59 = vmax.f32 %v1354_v23, %v1463_v63  ;;  %v1659_v61 = vmax.f32 %v1355_v28, %v1548_v13 }
  0x6a   : > { %v1660_v39 = vmax.f32 %v1356_v32, %v1465_v52  ;;  %v1661_v5 = vmax.f32 %v1357_v40, %v1549_v25  ;;  %v1825_v9 = vrot.slane %v1646_v45, %v6799_v19  ;;  %v1829_v60 = vrot.slane %v1647_v14, %v6799_v19 }
  0x6b   : > { %v1833_v3 = vrot.slane %v1648_v20, %v6799_v19  ;;  %v1837_v4 = vrot.slane %v1649_v26, %v6799_v19  ;;  %v1841_v6 = vrot.slane %v1650_v27, %v6799_v19  ;;  %v1845_v11 = vrot.slane %v1651_v37, %v6799_v19 }
  0x6c   : > { %v1849_v24 = vrot.slane %v1652_v22, %v6799_v19  ;;  %v1853_v15 = vrot.slane %v1653_v51, %v6799_v19  ;;  %v1857_v17 = vrot.slane %v1654_v49, %v6799_v19  ;;  %v1861_v36 = vrot.slane %v1655_v38, %v6799_v19 }
  0x6d   : > { %v1865_v33 = vrot.slane %v1656_v43, %v6799_v19  ;;  %v1869_v23 = vrot.slane %v1657_v54, %v6799_v19  ;;  %v1873_v28 = vrot.slane %v1658_v59, %v6799_v19  ;;  %v1877_v32 = vrot.slane %v1659_v61, %v6799_v19 }
  0x6e   : > { %v1881_v40 = vrot.slane %v1660_v39, %v6799_v19  ;;  %v1885_v29 = vrot.slane %v1661_v5, %v6799_v19  ;;  %v2029_v47 = vsel %vm2014_vm7, %v1829_v60, %v1825_v9  ;;  %v2036_v46 = vsel %vm2014_vm7, %v1861_v36, %v1857_v17 }
  0x6f   : > { %v2030_v55 = vsel %vm1063_vm0, %v1833_v3, %v2029_v47  ;;  %v2037_v35 = vsel %vm1063_vm0, %v1865_v33, %v2036_v46  ;;  %v468_v34 = vmax.f32 %v446_v21, %v7112_v41  ;;  %v479_v63 = vmax.f32 %v465_v58, %v6908_v62 }
  0x70   : > { %v2031_v8 = vsel %vm1065_vm1, %v1837_v4, %v2030_v55  ;;  %v2038_v44 = vsel %vm1065_vm1, %v1869_v23, %v2037_v35  ;;  %v480_v48 = vmax.f32 %v466_v42, %v6911_v0  ;;  %v481_v45 = vmax.f32 %v467_v53, %v7074_v12 }
  0x71   : > { %v2032_v49 = vsel %vm1067_vm2, %v1841_v6, %v2031_v8  ;;  %v2039_v50 = vsel %vm1067_vm2, %v1873_v28, %v2038_v44  ;;  %v482_v52 = vmax.f32 %v468_v34, %v7079_v31  ;;  %v639_v56 = vcombine.high %v479_v63, %v479_v63 }
  0x72   : > { %v2033_v57 = vsel %vm1069_vm3, %v1845_v11, %v2032_v49  ;;  %v2040_v10 = vsel %vm1069_vm3, %v1877_v32, %v2039_v50  ;;  %v7136_v62 = vrot.slane %v479_v63, %v6781_v7  ;;  %v656_v58 = vcombine.high %v480_v48, %v480_v48 }
  0x73   : > { %v2034_v13 = vsel %vm1071_vm4, %v1849_v24, %v2033_v57  ;;  %v2041_v0 = vsel %vm1071_vm4, %v1881_v40, %v2040_v10  ;;  %v7141_v12 = vrot.slane %v639_v56, %v6781_v7  ;;  %v7144_v42 = vrot.slane %v480_v48, %v6781_v7 }
  0x74   : > { %v2035_v31 = vsel %vm1073_vm5, %v1853_v15, %v2034_v13  ;;  %v2042_v53 = vsel %vm1073_vm5, %v1885_v29, %v2041_v0  ;;  %v654_v14 = vcombine.high %v7136_v62, %v7136_v62  ;;  %v7151_v20 = vrot.slane %v656_v58, %v6781_v7 }
  0x75   : > { %v6451_v16 = vpack.i.bf16 %v2042_v53, %v2035_v31  ;;  %v655_v25 = vcombine.high %v7141_v12, %v7141_v12  ;;  %v671_v26 = vcombine.high %v7144_v42, %v7144_v42  ;;  %v673_v27 = vcombine.high %v481_v45, %v481_v45 }
  0x76   : > { %v7159_v37 = vcombine.high %v7151_v20, %v7151_v20  ;;  %v7162_v22 = vrot.slane %v481_v45, %v6781_v7  ;;  %v690_v38 = vcombine.high %v482_v52, %v482_v52  ;;  %v7165_v43 = vrot.slane %v482_v52, %v6781_v7 }
  0x77   : > { %6452 = vrot.lane.b32.xlu0 %v6451_v16, %s6647_s24  ;;  %v7169_v51 = vrot.slane %v673_v27, %v6781_v7  ;;  %v954_v54 = vrot.slane %v7136_v62, %v6797_v18  ;;  %v958_v59 = vrot.slane %v654_v14, %v6797_v18  ;;  %v962_v61 = vrot.slane %v7141_v12, %v6797_v18 }
  0x78   : > { %v688_v39 = vcombine.high %v7162_v22, %v7162_v22  ;;  %v7179_v5 = vrot.slane %v690_v38, %v6781_v7  ;;  %v705_v9 = vcombine.high %v7165_v43, %v7165_v43  ;;  %v966_v60 = vrot.slane %v655_v25, %v6797_v18 }
  0x79   : > { %v689_v3 = vcombine.high %v7169_v51, %v7169_v51  ;;  %v970_v4 = vrot.slane %v7144_v42, %v6797_v18  ;;  %v974_v6 = vrot.slane %v671_v26, %v6797_v18  ;;  %v978_v11 = vrot.slane %v7151_v20, %v6797_v18 }
  0x7a   : > { %v706_v24 = vcombine.high %v7179_v5, %v7179_v5  ;;  %v982_v15 = vrot.slane %v7162_v22, %v6797_v18  ;;  %v986_v17 = vrot.slane %v688_v39, %v6797_v18  ;;  %v990_v36 = vrot.slane %v7169_v51, %v6797_v18 }
  0x7b   : > { %v994_v21 = vrot.slane %v689_v3, %v6797_v18  ;;  %v998_v33 = vrot.slane %v7165_v43, %v6797_v18  ;;  %v1002_v23 = vrot.slane %v705_v9, %v6797_v18  ;;  %v1006_v28 = vrot.slane %v7179_v5, %v6797_v18 }
  0x7c   : > { %v1093_v32 = vsel %vm1063_vm0, %v958_v59, %v954_v54  ;;  %v1099_v40 = vsel %vm1063_vm0, %v986_v17, %v982_v15  ;;  %v6119_v29 = vrot.slane %v7136_v62, 9  ;;  %v6120_v47 = vrot.slane %v654_v14, 9 }
  0x7d   : > { %v1094_v46 = vsel %vm1065_vm1, %v962_v61, %v1093_v32  ;;  %v1100_v55 = vsel %vm1065_vm1, %v990_v36, %v1099_v40  ;;  %v6121_v35 = vrot.slane %v7141_v12, 9  ;;  %v6122_v34 = vrot.slane %v655_v25, 9  ;;  %v7231_v36 = vld [vmem:[%s6779_s16 + $0xc0] sm:$0xff]  ;;  %v7237_v32 = vld [vmem:[%s6779_s16 + $0xc8] sm:$0xff]  ;;  %v7240_v40 = vld [vmem:[%s6779_s16 + $0xd0] sm:$0xff] }
  0x7e   : > { %v1095_v63 = vsel %vm1067_vm2, %v966_v60, %v1094_v46  ;;  %v1101_v8 = vsel %vm1067_vm2, %v994_v21, %v1100_v55  ;;  %v6123_v44 = vrot.slane %v7144_v42, 9  ;;  %v6124_v48 = vrot.slane %v671_v26, 9 }
  0x7f   : > { %v1096_v45 = vsel %vm1069_vm3, %v970_v4, %v1095_v63  ;;  %v1102_v49 = vsel %vm1069_vm3, %v998_v33, %v1101_v8  ;;  %v6125_v50 = vrot.slane %v7151_v20, 9  ;;  %v6126_v52 = vrot.slane %v7159_v37, 9 }
  0x80   : > { %v1097_v56 = vsel %vm1071_vm4, %v974_v6, %v1096_v45  ;;  %v1103_v57 = vsel %vm1071_vm4, %v1002_v23, %v1102_v49  ;;  %v6127_v10 = vrot.slane %v7162_v22, 9  ;;  %v6128_v58 = vrot.slane %v688_v39, 9 }
  0x81   : > { %v1098_v13 = vsel %vm1073_vm5, %v978_v11, %v1097_v56  ;;  %v1104_v0 = vsel %vm1073_vm5, %v1006_v28, %v1103_v57  ;;  %v6129_v31 = vrot.slane %v7169_v51, 9  ;;  %v6130_v53 = vrot.slane %v689_v3, 9 }
  0x82   : > { %v1130_v16 = vsel %vm1125_vm6, -inf, %v1098_v13  ;;  %v1131_v27 = vsel %vm1125_vm6, -inf, %v1104_v0  ;;  %v6131_v38 = vrot.slane %v7165_v43, 9  ;;  %v6132_v54 = vrot.slane %v705_v9, 9 }
  0x83   : > { %v6133_v59 = vrot.slane %v7179_v5, 9  ;;  %v6134_v61 = vrot.slane %v706_v24, 9  ;;  %v1358_v60 = vmax.f32 %v7136_v62, %v6119_v29  ;;  %v1359_v4 = vmax.f32 %v654_v14, %v6120_v47  ;;  %v7243_v62 = vld [vmem:[%s6779_s16 + $0xd8] sm:$0xff] }
  0x84   : > { %v1360_v6 = vmax.f32 %v7141_v12, %v6121_v35  ;;  %v1361_v11 = vmax.f32 %v655_v25, %v6122_v34  ;;  %v1362_v15 = vmax.f32 %v7144_v42, %v6123_v44  ;;  %v1363_v17 = vmax.f32 %v671_v26, %v6124_v48 }
  0x85   : > { %v1364_v21 = vmax.f32 %v7151_v20, %v6125_v50  ;;  %v1365_v33 = vmax.f32 %v7159_v37, %v6126_v52  ;;  %v1366_v23 = vmax.f32 %v7162_v22, %v6127_v10  ;;  %v1367_v28 = vmax.f32 %v688_v39, %v6128_v58 }
  0x86   : > { %v1368_v12 = vmax.f32 %v7169_v51, %v6129_v31  ;;  %v1369_v14 = vmax.f32 %v689_v3, %v6130_v53  ;;  %v1370_v42 = vmax.f32 %v7165_v43, %v6131_v38  ;;  %v1371_v25 = vmax.f32 %v705_v9, %v6132_v54 }
  0x87   : > { %v1372_v26 = vmax.f32 %v7179_v5, %v6133_v59  ;;  %v1373_v20 = vmax.f32 %v706_v24, %v6134_v61  ;;  %v1466_v29 = vcombine.high %v1130_v16, %v1130_v16  ;;  %v1473_v37 = vrot.slane %v1130_v16, %v6781_v7 }
  0x88   : > { %v1483_v22 = vcombine.high %v1131_v27, %v1131_v27  ;;  %v1490_v39 = vrot.slane %v1131_v27, %v6781_v7  ;;  %v469_v47 = vmax.f32 %v7231_v36, %v7240_v40  ;;  %v470_v46 = vmax.f32 %v7237_v32, %v7243_v62  ;;  %v455_v32 = vld [vmem:[%s6779_s16 + $0xf0] sm:$0xff] }
  0x89   : > { %v1480_v51 = vrot.slane %v1466_v29, %v6781_v7  ;;  %v1481_v3 = vcombine.high %v1473_v37, %v1473_v37  ;;  %v1550_v43 = vrot.slane %v1473_v37, 1  ;;  %v1662_v9 = vmax.f32 %v1358_v60, %v1473_v37 }
  0x8a   : > { %v1497_v5 = vrot.slane %v1483_v22, %v6781_v7  ;;  %v1498_v24 = vcombine.high %v1490_v39, %v1490_v39  ;;  %v1554_v55 = vrot.slane %v1490_v39, 1  ;;  %v1670_v35 = vmax.f32 %v1366_v23, %v1490_v39 }
  0x8b   : > { %v1482_v34 = vcombine.high %v1480_v51, %v1480_v51  ;;  %v1551_v63 = vrot.slane %v1481_v3, 1  ;;  %v1552_v8 = vrot.slane %v1480_v51, 1  ;;  %v1663_v44 = vmax.f32 %v1359_v4, %v1550_v43 }
  0x8c   : > { %v1499_v48 = vcombine.high %v1497_v5, %v1497_v5  ;;  %v1555_v45 = vrot.slane %v1498_v24, 1  ;;  %v1556_v49 = vrot.slane %v1497_v5, 1  ;;  %v1664_v50 = vmax.f32 %v1360_v6, %v1481_v3 }
  0x8d   : > { %v1553_v52 = vrot.slane %v1482_v34, 1  ;;  %v1665_v56 = vmax.f32 %v1361_v11, %v1551_v63  ;;  %v1666_v57 = vmax.f32 %v1362_v15, %v1480_v51  ;;  %v1667_v10 = vmax.f32 %v1363_v17, %v1552_v8  ;;  %v453_v17 = vld [vmem:[%s6779_s16 + $0xe0] sm:$0xff] }
  0x8e   : > { %v1557_v58 = vrot.slane %v1499_v48, 1  ;;  %v1668_v13 = vmax.f32 %v1364_v21, %v1482_v34  ;;  %v1671_v0 = vmax.f32 %v1367_v28, %v1554_v55  ;;  %v1672_v31 = vmax.f32 %v1368_v12, %v1498_v24  ;;  %v454_v28 = vld [vmem:[%s6779_s16 + $0xe8] sm:$0xff]  ;;  %v456_v12 = vld [vmem:[%s6779_s16 + $0xf8] sm:$0xff] }
  0x8f   : > { %v1669_v53 = vmax.f32 %v1365_v33, %v1553_v52  ;;  %v1673_v16 = vmax.f32 %v1369_v14, %v1555_v45  ;;  %v1674_v27 = vmax.f32 %v1370_v42, %v1497_v5  ;;  %v1675_v38 = vmax.f32 %v1371_v25, %v1556_v49 }
  0x90   : > { %v1676_v54 = vmax.f32 %v1372_v26, %v1499_v48  ;;  %v1677_v59 = vmax.f32 %v1373_v20, %v1557_v58  ;;  %v1889_v61 = vrot.slane %v1662_v9, %v6799_v19  ;;  %v1893_v60 = vrot.slane %v1663_v44, %v6799_v19 }
  0x91   : > { %v1897_v4 = vrot.slane %v1664_v50, %v6799_v19  ;;  %v1901_v6 = vrot.slane %v1665_v56, %v6799_v19  ;;  %v1905_v11 = vrot.slane %v1666_v57, %v6799_v19  ;;  %v1909_v15 = vrot.slane %v1667_v10, %v6799_v19 }
  0x92   : > { %v1913_v36 = vrot.slane %v1668_v13, %v6799_v19  ;;  %v1917_v21 = vrot.slane %v1669_v53, %v6799_v19  ;;  %v1921_v33 = vrot.slane %v1670_v35, %v6799_v19  ;;  %v1925_v23 = vrot.slane %v1671_v0, %v6799_v19 }
  0x93   : > { %v1929_v14 = vrot.slane %v1672_v31, %v6799_v19  ;;  %v1933_v42 = vrot.slane %v1673_v16, %v6799_v19  ;;  %v1937_v25 = vrot.slane %v1674_v27, %v6799_v19  ;;  %v1941_v26 = vrot.slane %v1675_v38, %v6799_v19 }
  0x94   : > { %v1945_v20 = vrot.slane %v1676_v54, %v6799_v19  ;;  %v1949_v29 = vrot.slane %v1677_v59, %v6799_v19  ;;  %v2043_v37 = vsel %vm2014_vm7, %v1893_v60, %v1889_v61  ;;  %v2050_v22 = vsel %vm2014_vm7, %v1925_v23, %v1921_v33 }
  0x95   : > { %v2044_v39 = vsel %vm1063_vm0, %v1897_v4, %v2043_v37  ;;  %v2051_v51 = vsel %vm1063_vm0, %v1929_v14, %v2050_v22  ;;  %v471_v3 = vmax.f32 %v453_v17, %v455_v32  ;;  %v472_v43 = vmax.f32 %v454_v28, %v456_v12 }
  0x96   : > { %v2045_v9 = vsel %vm1065_vm1, %v1901_v6, %v2044_v39  ;;  %v2052_v5 = vsel %vm1065_vm1, %v1933_v42, %v2051_v51  ;;  %v483_v24 = vmax.f32 %v469_v47, %v7085_v30  ;;  %v484_v55 = vmax.f32 %v470_v46, %v7112_v41 }
  0x97   : > { %v2046_v35 = vsel %vm1067_vm2, %v1905_v11, %v2045_v9  ;;  %v2053_v34 = vsel %vm1067_vm2, %v1937_v25, %v2052_v5  ;;  %v485_v63 = vmax.f32 %v471_v3, %v7240_v40  ;;  %v486_v8 = vmax.f32 %v472_v43, %v7243_v62 }
  0x98   : > { %v2047_v44 = vsel %vm1069_vm3, %v1909_v15, %v2046_v35  ;;  %v2054_v48 = vsel %vm1069_vm3, %v1941_v26, %v2053_v34  ;;  %v707_v45 = vcombine.high %v483_v24, %v483_v24  ;;  %v7291_v49 = vrot.slane %v483_v24, %v6781_v7 }
  0x99   : > { %v2048_v30 = vsel %vm1071_vm4, %v1913_v36, %v2047_v44  ;;  %v2055_v41 = vsel %vm1071_vm4, %v1945_v20, %v2054_v48  ;;  %v7296_v47 = vrot.slane %v484_v55, %v6781_v7  ;;  %v724_v56 = vcombine.high %v484_v55, %v484_v55 }
  0x9a   : > { %v2049_v46 = vsel %vm1073_vm5, %v1917_v21, %v2048_v30  ;;  %v2056_v40 = vsel %vm1073_vm5, %v1949_v29, %v2055_v41  ;;  %v7301_v62 = vrot.slane %v707_v45, %v6781_v7  ;;  %v7305_v50 = vcombine.high %v7291_v49, %v7291_v49 }
  0x9b   : > { %v6456_v52 = vpack.i.bf16 %v2056_v40, %v2049_v46  ;;  %v741_v57 = vcombine.high %v485_v63, %v485_v63  ;;  %v7310_v58 = vrot.slane %v485_v63, %v6781_v7  ;;  %v758_v13 = vcombine.high %v486_v8, %v486_v8 }
  0x9c   : > { %v723_v10 = vcombine.high %v7301_v62, %v7301_v62  ;;  %v7313_v0 = vrot.slane %v486_v8, %v6781_v7  ;;  %v739_v31 = vcombine.high %v7296_v47, %v7296_v47  ;;  %v1010_v38 = vrot.slane %v7291_v49, %v6797_v18 }
  0x9d   : > { %6457 = vrot.lane.b32.xlu1 %v6456_v52, %s6647_s24  ;;  %v7319_v53 = vrot.slane %v741_v57, %v6781_v7  ;;  %v7323_v16 = vcombine.high %v7310_v58, %v7310_v58  ;;  %v1014_v54 = vrot.slane %v7305_v50, %v6797_v18  ;;  %v738_v59 = vrot.slane %v724_v56, %v6781_v7 }
  0x9e   : > { %v7327_v27 = vcombine.high %v7313_v0, %v7313_v0  ;;  %v7337_v60 = vrot.slane %v758_v13, %v6781_v7  ;;  %v1018_v4 = vrot.slane %v7301_v62, %v6797_v18  ;;  %v1022_v6 = vrot.slane %v723_v10, %v6797_v18 }
  0x9f   : > { %v757_v61 = vcombine.high %v7319_v53, %v7319_v53  ;;  %v1038_v11 = vrot.slane %v7310_v58, %v6797_v18  ;;  %v1042_v15 = vrot.slane %v7323_v16, %v6797_v18  ;;  %v1026_v17 = vrot.slane %v7296_v47, %v6797_v18 }
  0xa0   : > { %v1046_v36 = vrot.slane %v7319_v53, %v6797_v18  ;;  %v1054_v33 = vrot.slane %v7313_v0, %v6797_v18  ;;  %v1030_v23 = vrot.slane %v739_v31, %v6797_v18  ;;  %v1058_v28 = vrot.slane %v7327_v27, %v6797_v18 }
  0xa1   : > { %v1050_v21 = vrot.slane %v757_v61, %v6797_v18  ;;  %v1105_v32 = vsel %vm1063_vm0, %v1014_v54, %v1010_v38  ;;  %v1111_v12 = vsel %vm1063_vm0, %v1042_v15, %v1038_v11  ;;  %v1034_v14 = vrot.slane %v738_v59, %v6797_v18 }
  0xa2   : > { %v1062_v42 = vrot.slane %v7337_v60, %v6797_v18  ;;  %v1106_v25 = vsel %vm1065_vm1, %v1018_v4, %v1105_v32  ;;  %v1112_v26 = vsel %vm1065_vm1, %v1046_v36, %v1111_v12  ;;  %v740_v37 = vcombine.high %v738_v59, %v738_v59 }
  0xa3   : > { %v1107_v20 = vsel %vm1067_vm2, %v1022_v6, %v1106_v25  ;;  %v1113_v29 = vsel %vm1067_vm2, %v1050_v21, %v1112_v26  ;;  %v774_v51 = vcombine.high %v7337_v60, %v7337_v60  ;;  %v6135_v43 = vrot.slane %v7291_v49, 9 }
  0xa4   : > { %v1108_v22 = vsel %vm1069_vm3, %v1026_v17, %v1107_v20  ;;  %v1114_v39 = vsel %vm1069_vm3, %v1054_v33, %v1113_v29  ;;  %v6136_v24 = vrot.slane %v7305_v50, 9  ;;  %v6137_v55 = vrot.slane %v7301_v62, 9 }
  0xa5   : > { %v1109_v3 = vsel %vm1071_vm4, %v1030_v23, %v1108_v22  ;;  %v1115_v18 = vsel %vm1071_vm4, %v1058_v28, %v1114_v39  ;;  %v6138_v35 = vrot.slane %v723_v10, 9  ;;  %v6139_v34 = vrot.slane %v7296_v47, 9 }
  0xa6   : > { %v1110_v9 = vsel %vm1073_vm5, %v1034_v14, %v1109_v3  ;;  %v1116_v5 = vsel %vm1073_vm5, %v1062_v42, %v1115_v18  ;;  %v6140_v63 = vrot.slane %v739_v31, 9  ;;  %v6141_v8 = vrot.slane %v738_v59, 9 }
  0xa7   : > { %v6142_v44 = vrot.slane %v740_v37, 9  ;;  %v6143_v48 = vrot.slane %v7310_v58, 9  ;;  %v6144_v45 = vrot.slane %v7323_v16, 9  ;;  %v6145_v30 = vrot.slane %v7319_v53, 9 }
  0xa8   : > { %v1132_v41 = vsel %vm1125_vm6, -inf, %v1110_v9  ;;  %v1133_v46 = vsel %vm1125_vm6, -inf, %v1116_v5  ;;  %v6146_v40 = vrot.slane %v757_v61, 9  ;;  %v6147_v52 = vrot.slane %v7313_v0, 9 }
  0xa9   : > { %v6148_v56 = vrot.slane %v7327_v27, 9  ;;  %v6149_v57 = vrot.slane %v7337_v60, 9  ;;  %v6150_v13 = vrot.slane %v774_v51, 9  ;;  %v1374_v38 = vmax.f32 %v7291_v49, %v6135_v43 }
  0xaa   : > { %v1375_v54 = vmax.f32 %v7305_v50, %v6136_v24  ;;  %v1376_v4 = vmax.f32 %v7301_v62, %v6137_v55  ;;  %v1377_v6 = vmax.f32 %v723_v10, %v6138_v35  ;;  %v1378_v11 = vmax.f32 %v7296_v47, %v6139_v34 }
  0xab   : > { %v1379_v15 = vmax.f32 %v739_v31, %v6140_v63  ;;  %v1380_v17 = vmax.f32 %v738_v59, %v6141_v8  ;;  %v1381_v36 = vmax.f32 %v740_v37, %v6142_v44  ;;  %v1500_v21 = vcombine.high %v1132_v41, %v1132_v41 }
  0xac   : > { %v1382_v33 = vmax.f32 %v7310_v58, %v6143_v48  ;;  %v1507_v23 = vrot.slane %v1132_v41, %v6781_v7  ;;  %v1517_v28 = vcombine.high %v1133_v46, %v1133_v46  ;;  %v1524_v32 = vrot.slane %v1133_v46, %v6781_v7 }
  0xad   : > { %v1383_v49 = vmax.f32 %v7323_v16, %v6144_v45  ;;  %v1384_v50 = vmax.f32 %v7319_v53, %v6145_v30  ;;  %v1385_v12 = vmax.f32 %v757_v61, %v6146_v40  ;;  %v1514_v62 = vrot.slane %v1500_v21, %v6781_v7 }
  0xae   : > { %v1515_v10 = vcombine.high %v1507_v23, %v1507_v23  ;;  %v1531_v47 = vrot.slane %v1517_v28, %v6781_v7  ;;  %v1532_v31 = vcombine.high %v1524_v32, %v1524_v32  ;;  %v1558_v59 = vrot.slane %v1507_v23, 1 }
  0xaf   : > { %v1386_v14 = vmax.f32 %v7313_v0, %v6147_v52  ;;  %v1387_v58 = vmax.f32 %v7327_v27, %v6148_v56  ;;  %v1516_v42 = vcombine.high %v1514_v62, %v1514_v62  ;;  %v1562_v25 = vrot.slane %v1524_v32, 1  ;;  %v7406_v52 = vpop.permute.xlu0 %2286 }
  0xb0   : > { %v1533_v26 = vcombine.high %v1531_v47, %v1531_v47  ;;  %v1559_v20 = vrot.slane %v1515_v10, 1  ;;  %v1560_v29 = vrot.slane %v1514_v62, 1  ;;  %v1563_v16 = vrot.slane %v1532_v31, 1 }
  0xb1   : > { %v1388_v53 = vmax.f32 %v7337_v60, %v6149_v57  ;;  %v1564_v61 = vrot.slane %v1531_v47, 1  ;;  %v1678_v37 = vmax.f32 %v1374_v38, %v1507_v23  ;;  %v1679_v22 = vmax.f32 %v1375_v54, %v1558_v59 }
  0xb2   : > { %v1389_v39 = vmax.f32 %v774_v51, %v6150_v13  ;;  %v1561_v3 = vrot.slane %v1516_v42, 1  ;;  %v1565_v7 = vrot.slane %v1533_v26, 1  ;;  %v1680_v18 = vmax.f32 %v1376_v4, %v1515_v10 }
  0xb3   : > { %v1681_v43 = vmax.f32 %v1377_v6, %v1559_v20  ;;  %v1686_v9 = vmax.f32 %v1382_v33, %v1524_v32  ;;  %v1687_v0 = vmax.f32 %v1383_v49, %v1562_v25  ;;  %v1688_v5 = vmax.f32 %v1384_v50, %v1532_v31 }
  0xb4   : > { %v1682_v27 = vmax.f32 %v1378_v11, %v1514_v62  ;;  %v1683_v24 = vmax.f32 %v1379_v15, %v1560_v29  ;;  %v1689_v55 = vmax.f32 %v1385_v12, %v1563_v16  ;;  %v1690_v35 = vmax.f32 %v1386_v14, %v1531_v47  ;;  %v7428_v62 = vpop.permute.xlu0 %2254 }
  0xb5   : > { %v1684_v34 = vmax.f32 %v1380_v17, %v1516_v42  ;;  %v1691_v63 = vmax.f32 %v1387_v58, %v1564_v61  ;;  %v1953_v8 = vrot.slane %v1678_v37, %v6799_v19  ;;  %v1957_v60 = vrot.slane %v1679_v22, %v6799_v19  ;;  %v417_v58 = vld [vmem:[%s7435_s15] sm:$0xff]  ;;  %v418_v42 = vld [vmem:[%s7435_s15 + $0x8] sm:$0xff] }
  0xb6   : > { %v1685_v44 = vmax.f32 %v1381_v36, %v1561_v3  ;;  %v1692_v48 = vmax.f32 %v1388_v53, %v1533_v26  ;;  %v1693_v51 = vmax.f32 %v1389_v39, %v1565_v7  ;;  %v1961_v45 = vrot.slane %v1680_v18, %v6799_v19 }
  0xb7   : > { %v1965_v30 = vrot.slane %v1681_v43, %v6799_v19  ;;  %v1985_v41 = vrot.slane %v1686_v9, %v6799_v19  ;;  %v1989_v46 = vrot.slane %v1687_v0, %v6799_v19  ;;  %v1993_v40 = vrot.slane %v1688_v5, %v6799_v19 }
  0xb8   : > { %v1969_v56 = vrot.slane %v1682_v27, %v6799_v19  ;;  %v1997_v57 = vrot.slane %v1689_v55, %v6799_v19  ;;  %v2001_v13 = vrot.slane %v1690_v35, %v6799_v19  ;;  %v1973_v38 = vrot.slane %v1683_v24, %v6799_v19 }
  0xb9   : > { %v2005_v54 = vrot.slane %v1691_v63, %v6799_v19  ;;  %v2057_v4 = vsel %vm2014_vm7, %v1957_v60, %v1953_v8  ;;  %v2064_v6 = vsel %vm2014_vm7, %v1989_v46, %v1985_v41  ;;  %v1977_v11 = vrot.slane %v1684_v34, %v6799_v19  ;;  %v419_v63 = vld [vmem:[%s7435_s15 + $0x10] sm:$0xff]  ;;  %v420_v8 = vld [vmem:[%s7435_s15 + $0x18] sm:$0xff] }
  0xba   : > { %v2009_v15 = vrot.slane %v1692_v48, %v6799_v19  ;;  %v2058_v17 = vsel %vm1063_vm0, %v1961_v45, %v2057_v4  ;;  %v2065_v36 = vsel %vm1063_vm0, %v1993_v40, %v2064_v6  ;;  %v1981_v21 = vrot.slane %v1685_v44, %v6799_v19 }
  0xbb   : > { %v2013_v33 = vrot.slane %v1693_v51, %v6799_v19  ;;  %v2059_v23 = vsel %vm1065_vm1, %v1965_v30, %v2058_v17  ;;  %v2066_v28 = vsel %vm1065_vm1, %v1997_v57, %v2065_v36  ;;  %vm2458_vm0 = vcmask 916480  }
  0xbc   : > { %v2060_v32 = vsel %vm1067_vm2, %v1969_v56, %v2059_v23  ;;  %v2067_v49 = vsel %vm1067_vm2, %v2001_v13, %v2066_v28  ;;  %v421_v28 = vld [vmem:[%s7435_s15 + $0x20] sm:$0xff]  ;;  %vm2408_vm1 = vcmask 785408   ;;  %vm2475_vm2 = vcmask 261120  }
  0xbd   : > { %v2061_v50 = vsel %vm1069_vm3, %v1973_v38, %v2060_v32  ;;  %v2068_v12 = vsel %vm1069_vm3, %v2005_v54, %v2067_v49  ;;  %v422_v32 = vld [vmem:[%s7435_s15 + $0x28] sm:$0xff]  ;;  %vm2492_vm3 = vcmask 654336   ;;  %vm5692_vm7 = vcmask 1043456  }
  0xbe   : > { %v2062_v10 = vsel %vm1071_vm4, %v1977_v11, %v2061_v50  ;;  %v2069_v47 = vsel %vm1071_vm4, %v2009_v15, %v2068_v12  ;;  %vm5658_vm4 = vcmask 1041408  }
  0xbf   : > { %v2063_v19 = vsel %vm1073_vm5, %v1981_v21, %v2062_v10  ;;  %v2070_v31 = vsel %vm1073_vm5, %v2013_v33, %v2069_v47  ;;  %v7508_v33 = vpop.permute.xlu1 %2373  ;;  %vm5675_vm5 = vcmask 1042432  }
  0xc0   : > { %v6461_v59 = vpack.i.bf16 %v2070_v31, %v2063_v19 }
  0xc2   : > { %6462 = vrot.lane.b32.xlu1 %v6461_v59, %s6647_s24 }
  0xc3   : > { %v6448_v14 = vpop.permute.xlu0 %6447 }
  0xc4   : > { %v6450_v25 = vunpack.i.h.bf16 %v6448_v14  ;;  %v6449_v26 = vunpack.i.l.bf16 %v6448_v14 }
  0xc6   : > { %v2096_v20 = vsel %vm2095_vm8, %v417_v58, %v6449_v26  ;;  %v2097_v29 = vsel %vm2095_vm8, %v418_v42, %v6450_v25 }
  0xc7   : > { %v2104_v16 = vpack.c.bf16 %v2096_v20, %v2096_v20  ;;  %v2105_v53 = vpack.c.bf16 %v2097_v29, %v2097_v29 }
  0xc9   : > { %v2113_v61 = vshrl.u32 %v2104_v16, 16  ;;  %v2120_v37 = vshrl.u32 %v2105_v53, 16  ;;  %v2116_v22 = vshll.u32 %v2104_v16, 16  ;;  %v2123_v18 = vshll.u32 %v2105_v53, 16 }
  0xcb   : > { %v2122_v39 = vrot.slane %v2120_v37, 7  ;;  %v2115_v3 = vrot.slane %v2113_v61, 7 }
  0xcd   : > { %v2118_v43 = vor.u32 %v2116_v22, %v2115_v3  ;;  %v2125_v5 = vor.u32 %v2123_v18, %v2122_v39  ;;  %v423_v18 = vld [vmem:[%s7435_s15 + $0x30] sm:$0xff] }
  0xcf   : > { %v2179_v0 = vsel %vm7445_vm12, 0, %v2118_v43  ;;  %v2180_v55 = vsel %vm7445_vm12, 0, %v2125_v5  ;;  %v424_v43 = vld [vmem:[%s7435_s15 + $0x38] sm:$0xff] }
  0xd0   : > { %v7458_v27 = vsel %vm7450_vm13, %v2179_v0, 0  ;;  %v7469_v35 = vsel %vm7450_vm13, %v2180_v55, 0 }
  0xd1   : > { %2303 = vrot.lane.b32.xlu0 %v7458_v27, %s6647_s24  ;;  %v2279_v24 = vrot.slane %v7458_v27, 1  ;;  %v7486_v11 = vrot.slane %v7469_v35, 1 }
  0xd3   : > { %2288 = vrot.lane.b32.xlu1 %v2279_v24, %s10279_s29  ;;  %s10410_s29 = smov 48  }
  0xd5   : > { %2343 = vrot.lane.b32.xlu0 %v2279_v24, %s10283_s30 }
  0xd7   : > { %2305 = vrot.lane.b32.xlu1 %v7469_v35, %s6647_s24 }
  0xd9   : > { %2359 = vrot.lane.b32.xlu0 %v7469_v35, %s10281_s12 }
  0xe9   : > { %v6453_v34 = vpop.permute.xlu0 %6452 }
  0xea   : > { %v6455_v60 = vunpack.i.h.bf16 %v6453_v34  ;;  %v6454_v44 = vunpack.i.l.bf16 %v6453_v34 }
  0xec   : > { %v2098_v48 = vsel %vm2095_vm8, %v419_v63, %v6454_v44  ;;  %v2099_v51 = vsel %vm2095_vm8, %v420_v8, %v6455_v60  ;;  %v6466_v8 = vld [vmem:[%s10407_s2 + $0x80] sm:$0xff]  }
  0xed   : > { %v2106_v45 = vpack.c.bf16 %v2098_v48, %v2098_v48  ;;  %v2107_v30 = vpack.c.bf16 %v2099_v51, %v2099_v51  ;;  %2887 = vmatpush1.bf16.msra.mxu1 %v6466_v8 }
  0xee   : > { %2888 = vmatprep.subr.bf16.mxu1 %v6642_v1 }
  0xef   : > { %v2127_v41 = vshrl.u32 %v2106_v45, 16  ;;  %v2130_v46 = vshll.u32 %v2106_v45, 16  ;;  %v2134_v40 = vshrl.u32 %v2107_v30, 16  ;;  %v2137_v56 = vshll.u32 %v2107_v30, 16 }
  0xf1   : > { %v2129_v57 = vrot.slane %v2127_v41, 7  ;;  %v2136_v13 = vrot.slane %v2134_v40, 7  ;;  %v6467_v41 = vld [vmem:[%s10407_s2 + $0x88] sm:$0xff]  }
  0xf2   : > { %2889 = vmatpush1.bf16.msra.mxu1 %v6467_v41 }
  0xf3   : > { %v2132_v38 = vor.u32 %v2130_v46, %v2129_v57  ;;  %v2139_v54 = vor.u32 %v2137_v56, %v2136_v13  ;;  %2890 = vmatprep.subr.bf16.mxu1 %v6642_v1 }
  0xf5   : > { %v2181_v4 = vsel %vm7445_vm12, 0, %v2132_v38  ;;  %v2182_v17 = vsel %vm7445_vm12, 0, %v2139_v54  ;;  %v6468_v38 = vld [vmem:[%s10407_s2 + $0x90] sm:$0xff]   ;;  %v6469_v54 = vld [vmem:[%s10407_s2 + $0x40] sm:$0xff]  }
  0xf6   : > { %v7483_v6 = vsel %vm7450_vm13, %v2181_v4, 0  ;;  %v7501_v21 = vsel %vm7450_vm13, %v2182_v17, 0  ;;  %v6470_v4 = vld [vmem:[%s10407_s2] sm:$0xff]   ;;  %2891 = vmatpush1.bf16.msra.mxu1 %v6468_v38  ;;  %6271 = vmatprep.subr.bf16.mxu0 %v6469_v54 }
  0xf7   : > { %v7489_v15 = vrot.slane %v7483_v6, 1  ;;  %2361 = vrot.lane.b32.xlu1 %v7483_v6, %s10281_s12  ;;  %2307 = vrot.lane.b32.xlu0 %v7483_v6, %s6647_s24  ;;  %v7517_v16 = vrot.slane %v7501_v21, 1  ;;  %v2222_v8 = vshll.u32 %v7483_v6, 16  ;;  %v2229_v41 = vshll.u32 %v7501_v21, 16 }
  0xf8   : > { %6272 = vmatpush3.bf16.msra.mxu0 %v6470_v4  ;;  %2892 = vmatprep.subr.bf16.mxu1 %v6642_v1 }
  0xf9   : > { %v6154_v36 = vcombine.low %v7486_v11, %v7489_v15 }
  0xfb   : > { %6194 = vmatprep.mubr.msk.bf16.mxu1 %vm2391_vm14, %v6154_v36  ;;  %2309 = vrot.lane.b32.xlu1 %v7501_v21, %s6647_s24 }
  0xfc   : > { %2363 = vrot.lane.b32.xlu0 %v7501_v21, %s10281_s12 }
 0x10f   : > { %v6458_v23 = vpop.permute.xlu1 %6457 }
 0x110   : > { %v6460_v49 = vunpack.i.h.bf16 %v6458_v23  ;;  %v6459_v50 = vunpack.i.l.bf16 %v6458_v23 }
 0x112   : > { %v2100_v12 = vsel %vm2095_vm8, %v421_v28, %v6459_v50  ;;  %v2101_v10 = vsel %vm2095_vm8, %v422_v32, %v6460_v49  ;;  %v6471_v32 = vld [vmem:[%s10407_s2 + $0x98] sm:$0xff]   ;;  %v6472_v49 = vld [vmem:[%s10407_s2 + $0x48] sm:$0xff]  }
 0x113   : > { %v2108_v47 = vpack.c.bf16 %v2100_v12, %v2100_v12  ;;  %v2109_v19 = vpack.c.bf16 %v2101_v10, %v2101_v10  ;;  %v6473_v50 = vld [vmem:[%s10407_s2 + $0x8] sm:$0xff]   ;;  %2893 = vmatpush1.bf16.msra.mxu1 %v6471_v32  ;;  %6273 = vmatprep.subr.bf16.mxu0 %v6472_v49  ;;  %v6474_v12 = vld [vmem:[%s10407_s2 + $0xa0] sm:$0xff]   ;;  %v6475_v10 = vld [vmem:[%s10407_s2 + $0x50] sm:$0xff]  }
 0x114   : > { %6274 = vmatpush3.bf16.msra.mxu0 %v6473_v50  ;;  %2894 = vmatprep.subr.bf16.mxu1 %v6642_v1 }
 0x115   : > { %v2141_v31 = vshrl.u32 %v2108_v47, 16  ;;  %v2144_v59 = vshll.u32 %v2108_v47, 16  ;;  %v2148_v14 = vshrl.u32 %v2109_v19, 16  ;;  %v2151_v58 = vshll.u32 %v2109_v19, 16  ;;  %v6476_v47 = vld [vmem:[%s10407_s2 + $0x10] sm:$0xff]   ;;  %6275 = vmatprep.subr.bf16.mxu0 %v6475_v10  ;;  %v6477_v19 = vld [vmem:[%s10407_s2 + $0xa8] sm:$0xff]  }
 0x117   : > { %v2143_v42 = vrot.slane %v2141_v31, 7  ;;  %v2150_v25 = vrot.slane %v2148_v14, 7  ;;  %2895 = vmatpush1.bf16.msra.mxu1 %v6474_v12  ;;  %v6478_v31 = vld [vmem:[%s10407_s2 + $0x58] sm:$0xff]   ;;  %v6481_v14 = vld [vmem:[%s10407_s2 + $0x60] sm:$0xff]  }
 0x118   : > { %6276 = vmatpush3.bf16.msra.mxu0 %v6476_v47  ;;  %2896 = vmatprep.subr.bf16.mxu1 %v6642_v1 }
 0x119   : > { %v2146_v26 = vor.u32 %v2144_v59, %v2143_v42  ;;  %v2153_v20 = vor.u32 %v2151_v58, %v2150_v25  ;;  %v6479_v59 = vld [vmem:[%s10407_s2 + $0x18] sm:$0xff]   ;;  %6277 = vmatprep.subr.bf16.mxu0 %v6478_v31  ;;  %v6482_v58 = vld [vmem:[%s10407_s2 + $0x20] sm:$0xff]   ;;  %v6484_v42 = vld [vmem:[%s10407_s2 + $0x68] sm:$0xff]  }
 0x11a   : > { %v6485_v25 = vld [vmem:[%s10407_s2 + $0x28] sm:$0xff]  }
 0x11b   : > { %v2183_v29 = vsel %vm7445_vm12, 0, %v2146_v26  ;;  %v2184_v61 = vsel %vm7445_vm12, 0, %v2153_v20  ;;  %2897 = vmatpush1.bf16.msra.mxu1 %v6477_v19  ;;  %v2208_v26 = vshll.u32 %v7458_v27, 16  ;;  %v6486_v20 = vld [vmem:[%s10407_s2 + $0xc0] sm:$0xff]  }
 0x11c   : > { %v7521_v53 = vsel %vm7450_vm13, %v2183_v29, 0  ;;  %v7536_v39 = vsel %vm7450_vm13, %v2184_v61, 0  ;;  %6278 = vmatpush3.bf16.msra.mxu0 %v6479_v59  ;;  %2898 = vmatprep.subr.bf16.mxu1 %v6642_v1  ;;  %v6487_v29 = vld [vmem:[%s10407_s2 + $0x70] sm:$0xff]  }
 0x11d   : > { %2365 = vrot.lane.b32.xlu1 %v7521_v53, %s10281_s12  ;;  %2311 = vrot.lane.b32.xlu0 %v7521_v53, %s6647_s24  ;;  %v7530_v37 = vrot.slane %v7521_v53, 1  ;;  %v7556_v57 = vrot.slane %v7536_v39, 1  ;;  %v6488_v61 = vld [vmem:[%s10407_s2 + $0x30] sm:$0xff]   ;;  %v2234_v54 = vshrl.u32 %v7521_v53, 16  ;;  %v2243_v32 = vshll.u32 %v7536_v39, 16 }
 0x11e   : > { %6279 = vmatprep.subr.bf16.mxu0 %v6481_v14  ;;  %v2241_v49 = vshrl.u32 %v7536_v39, 16 }
 0x11f   : > { %v6158_v22 = vcombine.low %v7517_v16, %v7530_v37  ;;  %v2245_v50 = vrot.slane %v2243_v32, 1 }
 0x120   : > { %6280 = vmatpush3.bf16.msra.mxu0 %v6482_v58 }
 0x121   : > { %2313 = vrot.lane.b32.xlu1 %v7536_v39, %s6647_s24  ;;  %2367 = vrot.lane.b32.xlu0 %v7536_v39, %s10281_s12  ;;  %v2246_v10 = vor.u32 %v2245_v50, %v2241_v49 }
 0x122   : > { %6281 = vmatprep.subr.bf16.mxu0 %v6484_v42 }
 0x124   : > { %6282 = vmatpush3.bf16.msra.mxu0 %v6485_v25 }
 0x125   : > { %6283 = vmatprep.subr.bf16.mxu0 %v6487_v29 }
 0x128   : > { %6284 = vmatpush3.bf16.msra.mxu0 %v6488_v61 }
 0x134   : > { %v6463_v3 = vpop.permute.xlu1 %6462 }
 0x135   : > { %v6465_v0 = vunpack.i.h.bf16 %v6463_v3  ;;  %v6464_v5 = vunpack.i.l.bf16 %v6463_v3  ;;  %v2210_v3 = vrot.slane %v2208_v26, 1 }
 0x137   : > { %v2102_v24 = vsel %vm2095_vm8, %v423_v18, %v6464_v5  ;;  %v2103_v55 = vsel %vm2095_vm8, %v424_v43, %v6465_v0  ;;  %v2215_v18 = vshll.u32 %v7469_v35, 16  ;;  %v6489_v43 = vld [vmem:[%s10407_s2 + $0xc8] sm:$0xff]   ;;  %v6490_v0 = vld [vmem:[%s10407_s2 + $0x78] sm:$0xff]   ;;  %v2206_v5 = vshrl.u32 %v7458_v27, 16 }
 0x138   : > { %v2110_v34 = vpack.c.bf16 %v2102_v24, %v2102_v24  ;;  %v2111_v63 = vpack.c.bf16 %v2103_v55, %v2103_v55  ;;  %v6491_v24 = vld [vmem:[%s10407_s2 + $0x38] sm:$0xff]   ;;  %6285 = vmatprep.subr.bf16.mxu0 %v6490_v0 }
 0x139   : > { %6286 = vmatpush3.bf16.msra.mxu0 %v6491_v24 }
 0x13a   : > { %v2155_v60 = vshrl.u32 %v2110_v34, 16  ;;  %v2158_v44 = vshll.u32 %v2110_v34, 16  ;;  %v2162_v48 = vshrl.u32 %v2111_v63, 16  ;;  %v2165_v51 = vshll.u32 %v2111_v63, 16 }
 0x13b   : > { %v2211_v34 = vor.u32 %v2210_v3, %v2206_v5  ;;  %v2217_v63 = vrot.slane %v2215_v18, 1 }
 0x13c   : > { %v2157_v45 = vrot.slane %v2155_v60, 7  ;;  %v2164_v30 = vrot.slane %v2162_v48, 7  ;;  %v2213_v60 = vshrl.u32 %v7469_v35, 16 }
 0x13e   : > { %v2160_v46 = vor.u32 %v2158_v44, %v2157_v45  ;;  %v2167_v40 = vor.u32 %v2165_v51, %v2164_v30  ;;  %v6492_v44 = vld [vmem:[%s10407_s2 + $0xd0] sm:$0xff]   ;;  %v2218_v48 = vor.u32 %v2217_v63, %v2213_v60  ;;  %v2220_v51 = vshrl.u32 %v7483_v6, 16 }
 0x13f   : > { %v2224_v45 = vrot.slane %v2222_v8, 1 }
 0x140   : > { %v2185_v56 = vsel %vm7445_vm12, 0, %v2160_v46  ;;  %v2186_v17 = vsel %vm7445_vm12, 0, %v2167_v40  ;;  %v2227_v46 = vshrl.u32 %v7501_v21, 16  ;;  %v2231_v40 = vrot.slane %v2229_v41, 1 }
 0x141   : > { %v7561_v13 = vsel %vm7450_vm13, %v2185_v56, 0  ;;  %v7586_v28 = vsel %vm7450_vm13, %v2186_v17, 0  ;;  %v2225_v30 = vor.u32 %v2224_v45, %v2220_v51  ;;  %v2236_v56 = vshll.u32 %v7521_v53, 16 }
 0x142   : > { %2369 = vrot.lane.b32.xlu1 %v7561_v13, %s10281_s12  ;;  %2315 = vrot.lane.b32.xlu0 %v7561_v13, %s6647_s24  ;;  %v7579_v36 = vrot.slane %v7561_v13, 1  ;;  %v10285_v55 = vrot.slane %v7586_v28, 1  ;;  %v2232_v38 = vor.u32 %v2231_v40, %v2227_v46  ;;  %v2250_v12 = vshll.u32 %v7561_v13, 16 }
 0x143   : > { %v2238_v4 = vrot.slane %v2236_v56, 1  ;;  %v2248_v47 = vshrl.u32 %v7561_v13, 16  ;;  %v2322_v59 = vshll.u32 %v7586_v28, 16 }
 0x144   : > { %v6162_v23 = vcombine.low %v7556_v57, %v7579_v36  ;;  %v2252_v19 = vrot.slane %v2250_v12, 1 }
 0x145   : > { %v2239_v17 = vor.u32 %v2238_v4, %v2234_v54  ;;  %v2324_v14 = vrot.slane %v2322_v59, 1  ;;  %v2289_v42 = vpop.permute.xlu1 %2288 }
 0x146   : > { %2317 = vrot.lane.b32.xlu1 %v7586_v28, %s6647_s24  ;;  %2371 = vrot.lane.b32.xlu0 %v7586_v28, %s10281_s12  ;;  %s10408_s24 = smov 96   ;;  %s6649_s12 = smov 64   ;;  %v2253_v31 = vor.u32 %v2252_v19, %v2248_v47  ;;  %v2393_v47 = vsel %vm2391_vm14, 0, %v7428_v62 }
 0x149   : > { %v2306_v26 = vpop.permute.xlu1 %2305 }
 0x14a   : > { %2345 = vrot.lane.b32.xlu1 %v7486_v11, %s10283_s30  ;;  %2290 = vrot.lane.b32.xlu0 %v7486_v11, %s10408_s24  ;;  %v6480_v11 = vld [vmem:[%s10407_s2 + $0xb0] sm:$0xff]   ;;  %v2428_v19 = vsel %vm2095_vm8, %v2289_v42, %v2306_v26 }
 0x14b   : > { %2899 = vmatpush1.bf16.msra.mxu1 %v6480_v11  ;;  %v2320_v11 = vshrl.u32 %v7586_v28, 16 }
 0x14c   : > { %2900 = vmatprep.subr.bf16.mxu1 %v6642_v1 }
 0x14d   : > { %v2325_v58 = vor.u32 %v2324_v14, %v2320_v11 }
 0x14e   : > { %2292 = vrot.lane.b32.xlu1 %v7489_v15, %s10408_s24  ;;  %2347 = vrot.lane.b32.xlu0 %v7489_v15, %s10283_s30  ;;  %v6483_v15 = vld [vmem:[%s10407_s2 + $0xb8] sm:$0xff]  }
 0x14f   : > { %2901 = vmatpush1.bf16.msra.mxu1 %v6483_v15  ;;  %v2304_v15 = vpop.permute.xlu0 %2303 }
 0x150   : > { %2902 = vmatprep.subr.bf16.mxu1 %v6642_v1  ;;  %v2426_v50 = vsel %vm2095_vm8, %v7406_v52, %v2304_v15  ;;  %v2410_v15 = vsel %vm2408_vm1, %v2393_v47, %v7406_v52 }
 0x152   : > { %2349 = vrot.lane.b32.xlu1 %v7517_v16, %s10283_s30  ;;  %2294 = vrot.lane.b32.xlu0 %v7517_v16, %s10408_s24 }
 0x153   : > { %2903 = vmatpush1.bf16.msra.mxu1 %v6486_v20  ;;  %v2344_v25 = vpop.permute.xlu0 %2343 }
 0x154   : > { %2904 = vmatprep.subr.bf16.mxu1 %v6642_v1 }
 0x156   : > { %2296 = vrot.lane.b32.xlu1 %v7530_v37, %s10408_s24  ;;  %2351 = vrot.lane.b32.xlu0 %v7530_v37, %s10283_s30 }
 0x157   : > { %2905 = vmatpush1.bf16.msra.mxu1 %v6489_v43  ;;  %v2360_v20 = vpop.permute.xlu0 %2359 }
 0x158   : > { %2906 = vmatprep.subr.bf16.mxu1 %v6642_v1  ;;  %v2477_v62 = vsel %vm2475_vm2, %v2344_v25, %v2360_v20 }
 0x15a   : > { %2353 = vrot.lane.b32.xlu1 %v7556_v57, %s10283_s30  ;;  %2298 = vrot.lane.b32.xlu0 %v7556_v57, %s10408_s24  ;;  %s6269_s30 = sshll.u32 %s6736_s21, 10 }
 0x15b   : > { %2907 = vmatpush1.bf16.msra.mxu1 %v6492_v44 }
 0x15e   : > { %2300 = vrot.lane.b32.xlu1 %v7579_v36, %s10408_s24  ;;  %2355 = vrot.lane.b32.xlu0 %v7579_v36, %s10409_s25 }
 0x162   : > { %2357 = vrot.lane.b32.xlu1 %v10285_v55, %s10409_s25  ;;  %2326 = vrot.lane.b32.xlu0 %v2211_v34, %s6649_s12  ;;  %s10411_s25 = smov 32  }
 0x166   : > { %2256 = vrot.lane.b32.xlu1 %v2211_v34, %s10410_s29  ;;  %2375 = vrot.lane.b32.xlu0 %v2218_v48, %s6650_s22 }
 0x169   : > { %v2362_v29 = vpop.permute.xlu1 %2361  ;;  %v2308_v61 = vpop.permute.xlu0 %2307 }
 0x16a   : > { %2328 = vrot.lane.b32.xlu1 %v2218_v48, %s6649_s12  ;;  %2330 = vrot.lane.b32.xlu0 %v2225_v30, %s6649_s12 }
 0x16d   : > { %v2310_v3 = vpop.permute.xlu1 %2309 }
 0x16e   : > { %2377 = vrot.lane.b32.xlu1 %v2225_v30, %s6650_s22  ;;  %2258 = vrot.lane.b32.xlu0 %v2218_v48, %s10410_s29  ;;  %v7739_v18 = vpop.permute.xlu0 %2363 }
 0x172   : > { %2332 = vrot.lane.b32.xlu1 %v2232_v38, %s6649_s12  ;;  %2379 = vrot.lane.b32.xlu0 %v2232_v38, %s6650_s22 }
 0x176   : > { %2260 = vrot.lane.b32.xlu1 %v2225_v30, %s10410_s29  ;;  %2334 = vrot.lane.b32.xlu0 %v2239_v17, %s6649_s12 }
 0x17a   : > { %2381 = vrot.lane.b32.xlu1 %v2239_v17, %s6650_s22  ;;  %2262 = vrot.lane.b32.xlu0 %v2232_v38, %s10410_s29 }
 0x17e   : > { %2336 = vrot.lane.b32.xlu1 %v2246_v10, %s6649_s12  ;;  %2383 = vrot.lane.b32.xlu0 %v2246_v10, %s6650_s22 }
 0x182   : > { %2264 = vrot.lane.b32.xlu1 %v2239_v17, %s10410_s29  ;;  %2338 = vrot.lane.b32.xlu0 %v2253_v31, %s6649_s12 }
 0x186   : > { %2385 = vrot.lane.b32.xlu1 %v2253_v31, %s6650_s22  ;;  %2266 = vrot.lane.b32.xlu0 %v2246_v10, %s10410_s29 }
 0x18a   : > { %2340 = vrot.lane.b32.xlu1 %v2325_v58, %s6649_s12  ;;  %2387 = vrot.lane.b32.xlu0 %v2325_v58, %s6650_s22 }
 0x18e   : > { %2268 = vrot.lane.b32.xlu1 %v2253_v31, %s10410_s29  ;;  %3142 = vrot.lane.b32.xlu0 %v6764_v2, %s10411_s25 }
 0x18f   : > { %v7741_v43 = vpop.permute.xlu1 %2365  ;;  %v7743_v0 = vpop.permute.xlu0 %2311 }
 0x192   : > { %2389 = vrot.lane.b32.xlu1 %v6764_v2, %s6650_s22  ;;  %3172 = vrot.lane.b32.xlu0 %v6764_v2, %s6649_s12  ;;  %s8229_s22 = sand.u32 1, %s6632_s18  }
 0x193   : > { %v7745_v5 = vpop.permute.xlu1 %2313  ;;  %v7747_v24 = vpop.permute.xlu0 %2367  ;;  %s6082_s13 = sshll.u32 %s8229_s22, 8 }
 0x194   : > { %s8479_s14 = scalar_lea.vmem [#allocation4], %s6082_s13 }
 0x196   : > { %3243 = vrot.lane.b32.xlu1 %v6642_v1, %s6649_s12 }
 0x1b4   : > { %v7749_v34 = vpop.permute.xlu1 %2369  ;;  %v7751_v63 = vpop.permute.xlu0 %2315 }
 0x1b8   : > { %v7753_v8 = vpop.permute.xlu1 %2317  ;;  %v7755_v1 = vpop.permute.xlu0 %2371 }
 0x1bc   : > { %v2346_v60 = vpop.permute.xlu1 %2345  ;;  %v2291_v44 = vpop.permute.xlu0 %2290 }
 0x1bd   : > { %v2479_v26 = vsel %vm2475_vm2, %v2346_v60, %v2362_v29 }
 0x1c0   : > { %v2293_v48 = vpop.permute.xlu1 %2292  ;;  %v2348_v51 = vpop.permute.xlu0 %2347 }
 0x1c1   : > { %v2432_v52 = vsel %vm2095_vm8, %v2293_v48, %v2310_v3 }
 0x1c4   : > { %v2350_v45 = vpop.permute.xlu1 %2349  ;;  %v7757_v30 = vpop.permute.xlu0 %2294 }
 0x1c8   : > { %v7759_v41 = vpop.permute.xlu1 %2296  ;;  %v7761_v46 = vpop.permute.xlu0 %2351 }
 0x1cc   : > { %v7763_v40 = vpop.permute.xlu1 %2353  ;;  %v7765_v56 = vpop.permute.xlu0 %2298 }
 0x1d0   : > { %v7767_v38 = vpop.permute.xlu1 %2300  ;;  %v7769_v54 = vpop.permute.xlu0 %2355 }
 0x1d4   : > { %v7771_v4 = vpop.permute.xlu1 %2357  ;;  %v2327_v17 = vpop.permute.xlu0 %2326 }
 0x1d5   : > { %v2443_v10 = vsel %vm2441_vm15, %v2426_v50, %v2327_v17 }
 0x1d6   : > { %v2460_v58 = vsel %vm2458_vm0, %v2443_v10, %v2344_v25  ;;  %v2430_v10 = vsel %vm2095_vm8, %v2291_v44, %v2308_v61 }
 0x1d8   : > { %v2257_v32 = vpop.permute.xlu1 %2256  ;;  %v2376_v49 = vpop.permute.xlu0 %2375 }
 0x1d9   : > { %v2395_v12 = vsel %vm2391_vm14, %v7458_v27, %v2257_v32 }
 0x1da   : > { %v2412_v11 = vsel %vm2408_vm1, %v2395_v12, %v2289_v42  ;;  %v2494_v42 = vsel %vm2492_vm3, %v2477_v62, %v2376_v49 }
 0x1db   : > { %v6151_v50 = vcombine.low %v2410_v15, %v2412_v11 }
 0x1dc   : > { %v2329_v31 = vpop.permute.xlu1 %2328  ;;  %v2331_v59 = vpop.permute.xlu0 %2330 }
 0x1dd   : > { %v2445_v14 = vsel %vm2441_vm15, %v2428_v19, %v2329_v31  ;;  %v2447_v31 = vsel %vm2441_vm15, %v2430_v10, %v2331_v59 }
 0x1de   : > { %v2462_v27 = vsel %vm2458_vm0, %v2445_v14, %v2346_v60  ;;  %v2464_v29 = vsel %vm2458_vm0, %v2447_v31, %v2348_v51 }
 0x1df   : > { %v6152_v17 = vcombine.low %v2460_v58, %v2462_v27  ;;  %v2483_v58 = vsel %vm2475_vm2, %v2350_v45, %v7741_v43 }
 0x1e0   : > { %v2378_v32 = vpop.permute.xlu1 %2377  ;;  %v2259_v55 = vpop.permute.xlu0 %2258 }
 0x1e1   : > { %v2496_v12 = vsel %vm2492_vm3, %v2479_v26, %v2378_v32  ;;  %2853 = vmatprep.mubr.bf16.mxu0 %v6152_v17  ;;  %v2397_v60 = vsel %vm2391_vm14, %v7469_v35, %v2259_v55 }
 0x1e2   : > { %v6153_v19 = vcombine.low %v2494_v42, %v2496_v12  ;;  %2854 = vmatmul.mubr.bf16.vlgmr.msra.gmra.mrb[0].mxu0 %v6151_v50  ;;  %v2414_v14 = vsel %vm2408_vm1, %v2397_v60, %v2291_v44  ;;  %v2485_v42 = vsel %vm2475_vm2, %v7761_v46, %v7747_v24 }
 0x1e4   : > { %v2333_v47 = vpop.permute.xlu1 %2332  ;;  %2919 = vmatmul.mubr.bf16.vlgmr.msra.gmra.mrb[0].mxu1 %v6153_v19  ;;  %v2380_v25 = vpop.permute.xlu0 %2379  ;;  %v10412_v19 = vrot.slane %v7586_v28, 1 }
 0x1e5   : > { %v2449_v20 = vsel %vm2441_vm15, %v2432_v52, %v2333_v47  ;;  %6195 = vmatprep.mubr.msk.bf16.mxu1 %vm2391_vm14, %v6158_v22  ;;  %v2481_v22 = vsel %vm2475_vm2, %v2348_v51, %v7739_v18  ;;  %v2436_v18 = vsel %vm2095_vm8, %v7759_v41, %v7745_v5 }
 0x1e6   : > { %v2466_v61 = vsel %vm2458_vm0, %v2449_v20, %v2350_v45  ;;  %v2498_v55 = vsel %vm2492_vm3, %v2481_v22, %v2380_v25  ;;  %v6166_v31 = vcombine.low %v10412_v19, %v6764_v2 }
 0x1e7   : > { %v6156_v49 = vcombine.low %v2464_v29, %v2466_v61 }
 0x1e8   : > { %v2261_v59 = vpop.permute.xlu1 %2260  ;;  %v2335_v3 = vpop.permute.xlu0 %2334 }
 0x1e9   : > { %v2399_v11 = vsel %vm2391_vm14, %v7483_v6, %v2261_v59  ;;  %2861 = vmatprep.mubr.bf16.mxu0 %v6156_v49  ;;  %v2434_v6 = vsel %vm2095_vm8, %v7757_v30, %v7743_v0  ;;  %v2489_v59 = vsel %vm2475_vm2, %v7769_v54, %v7755_v1  ;;  %v7885_v1 = vld [vmem:[%s10270_s5 + $0x88] sm:$0xff]  }
 0x1ea   : > { %v2416_v16 = vsel %vm2408_vm1, %v2399_v11, %v2293_v48  ;;  %v2451_v48 = vsel %vm2441_vm15, %v2434_v6, %v2335_v3 }
 0x1eb   : > { %v6155_v37 = vcombine.low %v2414_v14, %v2416_v16  ;;  %v2468_v0 = vsel %vm2458_vm0, %v2451_v48, %v7761_v46 }
 0x1ec   : > { %v2382_v27 = vpop.permute.xlu1 %2381  ;;  %v2263_v35 = vpop.permute.xlu0 %2262 }
 0x1ed   : > { %v2500_v15 = vsel %vm2492_vm3, %v2483_v58, %v2382_v27  ;;  %2862 = vmatmul.mubr.bf16.gmra.mrb[4].mxu0 %v6155_v37  ;;  %v2401_v62 = vsel %vm2391_vm14, %v7501_v21, %v2263_v35  ;;  %v2487_v21 = vsel %vm2475_vm2, %v7763_v40, %v7749_v34  ;;  %v2440_v34 = vsel %vm2095_vm8, %v7767_v38, %v7753_v8  ;;  %v7894_v37 = vld [vmem:[%s10268_s3] ss:$0 sm:$0xff] }
 0x1ee   : > { %v6157_v44 = vcombine.low %v2498_v55, %v2500_v15  ;;  %v2418_v57 = vsel %vm2408_vm1, %v2401_v62, %v7757_v30  ;;  %v2438_v30 = vsel %vm2095_vm8, %v7765_v56, %v7751_v63  ;;  %v7899_v15 = vld [vmem:[%s10269_s4] ss:$0 sm:$0xff]  ;;  %vm5726_vm8 = vcmask 1045504  }
 0x1f0   : > { %v2337_v51 = vpop.permute.xlu1 %2336  ;;  %2927 = vmatmul.mubr.bf16.gmra.mrb[4].mxu1 %v6157_v44  ;;  %v2384_v43 = vpop.permute.xlu0 %2383 }
 0x1f1   : > { %v2453_v45 = vsel %vm2441_vm15, %v2436_v18, %v2337_v51  ;;  %6196 = vmatprep.mubr.msk.bf16.mxu1 %vm2391_vm14, %v6162_v23 }
 0x1f2   : > { %v2470_v17 = vsel %vm2458_vm0, %v2453_v45, %v7763_v40 }
 0x1f3   : > { %v6160_v5 = vcombine.low %v2468_v0, %v2470_v17 }
 0x1f4   : > { %v2265_v26 = vpop.permute.xlu1 %2264  ;;  %v2339_v23 = vpop.permute.xlu0 %2338 }
 0x1f5   : > { %v2403_v32 = vsel %vm2391_vm14, %v7521_v53, %v2265_v26  ;;  %2869 = vmatprep.mubr.bf16.mxu0 %v6160_v5  ;;  %v2502_v53 = vsel %vm2492_vm3, %v2485_v42, %v2384_v43  ;;  %v2455_v24 = vsel %vm2441_vm15, %v2438_v30, %v2339_v23  ;;  %v6495_v42 = vld [vmem:[%s10270_s5 + $0x40] sm:$0xff]  }
 0x1f6   : > { %v2420_v36 = vsel %vm2408_vm1, %v2403_v32, %v7759_v41  ;;  %v2472_v63 = vsel %vm2458_vm0, %v2455_v24, %v7769_v54  ;;  %6311 = vmatprep.subr.bf16.mxu0 %v6495_v42 }
 0x1f7   : > { %v6159_v50 = vcombine.low %v2418_v57, %v2420_v36 }
 0x1f8   : > { %v2386_v12 = vpop.permute.xlu1 %2385  ;;  %v2267_v46 = vpop.permute.xlu0 %2266 }
 0x1f9   : > { %v2504_v10 = vsel %vm2492_vm3, %v2487_v21, %v2386_v12  ;;  %2870 = vmatmul.mubr.bf16.gmra.mrb[8].mxu0 %v6159_v50  ;;  %v2405_v47 = vsel %vm2391_vm14, %v7536_v39, %v2267_v46  ;;  %v2491_v39 = vsel %vm2475_vm2, %v7771_v4, %v7508_v33  ;;  %v6496_v21 = vld [vmem:[%s10270_s5] sm:$0xff]  }
 0x1fa   : > { %v6161_v41 = vcombine.low %v2502_v53, %v2504_v10  ;;  %v2422_v29 = vsel %vm2408_vm1, %v2405_v47, %v7765_v56  ;;  %6312 = vmatpush3.bf16.msra.mxu0 %v6496_v21 }
 0x1fc   : > { %v2341_v40 = vpop.permute.xlu1 %2340  ;;  %2935 = vmatmul.mubr.bf16.gmra.mrb[8].mxu1 %v6161_v41  ;;  %v2388_v61 = vpop.permute.xlu0 %2387 }
 0x1fd   : > { %v2457_v52 = vsel %vm2441_vm15, %v2440_v34, %v2341_v40  ;;  %6197 = vmatprep.mubr.msk.bf16.mxu1 %vm2391_vm14, %v6166_v31 }
 0x1fe   : > { %v2474_v28 = vsel %vm2458_vm0, %v2457_v52, %v7771_v4 }
 0x1ff   : > { %v6164_v25 = vcombine.low %v2472_v63, %v2474_v28 }
 0x200   : > { %v2269_v20 = vpop.permute.xlu1 %2268 }
 0x201   : > { %v2407_v8 = vsel %vm2391_vm14, %v7561_v13, %v2269_v20  ;;  %2877 = vmatprep.mubr.bf16.mxu0 %v6164_v25  ;;  %v2506_v13 = vsel %vm2492_vm3, %v2489_v59, %v2388_v61  ;;  %v6497_v25 = vld [vmem:[%s10270_s5 + $0x48] sm:$0xff]  }
 0x202   : > { %v2424_v60 = vsel %vm2408_vm1, %v2407_v8, %v7767_v38  ;;  %v7880_v38 = vld [vmem:[%s10270_s5 + $0x80] sm:$0xff]   ;;  %v6498_v20 = vld [vmem:[%s10270_s5 + $0x8] sm:$0xff]   ;;  %6313 = vmatprep.subr.bf16.mxu0 %v6497_v25 }
 0x203   : > { %v6163_v49 = vcombine.low %v2422_v29, %v2424_v60  ;;  %6387 = vmatprep.subr.bf16.mxu1 %v7880_v38  ;;  %6314 = vmatpush3.bf16.msra.mxu0 %v6498_v20 }
 0x204   : > { %v2390_v3 = vpop.permute.xlu1 %2389  ;;  %6389 = vmatpush3.bf16.msra.mxu1 %v7880_v38 }
 0x205   : > { %v2508_v11 = vsel %vm2492_vm3, %v2491_v39, %v2390_v3  ;;  %2878 = vmatmul.mubr.bf16.gmra.mrb[12].mxu0 %v6163_v49  ;;  %6388 = vmatprep.subr.bf16.mxu1 %v7885_v1 }
 0x206   : > { %v6165_v56 = vcombine.low %v2506_v13, %v2508_v11 }
 0x208   : > { %2943 = vmatmul.mubr.bf16.gmra.mrb[12].mxu1 %v6165_v56 }
 0x209   : > { %6390 = vmatpush3.bf16.msra.mxu1 %v7885_v1 }
 0x2b5   : > { %v6287_v33 = vpop.f32.mrb[0].mxu0 }
 0x2b6   : > { %v6288_v54 = vpop.f32.mrb[1].mxu0 }
 0x2b7   : > { %v6289_v4 = vadd.f32 %v6288_v54, %v6287_v33  ;;  %v6290_v14 = vpop.f32.mrb[2].mxu0  ;;  %v2920_v16 = vpop.f32.mrb[0].mxu1 }
 0x2b8   : > { %v6291_v22 = vpop.f32.mrb[3].mxu0  ;;  %v2922_v58 = vpop.f32.mrb[1].mxu1 }
 0x2b9   : > { %v2921_v27 = vadd.f32 %v6289_v4, %v2920_v16  ;;  %v6292_v35 = vadd.f32 %v6291_v22, %v6290_v14  ;;  %v2923_v55 = vpop.f32.mrb[2].mxu1 }
 0x2ba   : > { %v2925_v6 = vpop.f32.mrb[3].mxu1 }
 0x2bb   : > { %v2958_v44 = vmul.f32 %v7894_v37, %v2921_v27  ;;  %v2924_v48 = vadd.f32 %v6292_v35, %v2923_v55  ;;  %v6499_v35 = vld [vmem:[%s10270_s5 + $0x50] sm:$0xff]  }
 0x2bc   : > { %v6500_v55 = vld [vmem:[%s10270_s5 + $0x10] sm:$0xff]   ;;  %6315 = vmatprep.subr.bf16.mxu0 %v6499_v35 }
 0x2bd   : > { %v2973_v18 = vadd.f32 %v7899_v15, %v2958_v44  ;;  %v2959_v51 = vmul.f32 %v7894_v37, %v2924_v48  ;;  %6316 = vmatpush3.bf16.msra.mxu0 %v6500_v55 }
 0x2bf   : > { %v2981_v43 = vmax.f32 %v2973_v18, 0.0  ;;  %v2974_v45 = vadd.f32 %v7899_v15, %v2959_v51  ;;  %v6501_v51 = vld [vmem:[%s10270_s5 + $0x58] sm:$0xff]  }
 0x2c0   : > { %v6293_v0 = vpop.f32.mrb[4].mxu0  ;;  %6317 = vmatprep.subr.bf16.mxu0 %v6501_v51 }
 0x2c1   : > { %v6261_v17 = vpack.c.bf16 %v2981_v43, %v2981_v43  ;;  %v2982_v62 = vmax.f32 %v2974_v45, 0.0  ;;  %v6294_v5 = vpop.f32.mrb[5].mxu0 }
 0x2c2   : > { %v6295_v26 = vadd.f32 %v6294_v5, %v6293_v0  ;;  %v6296_v32 = vpop.f32.mrb[6].mxu0 }
 0x2c3   : > { %v3014_v57 = vshrl.u32 %v6261_v17, 16  ;;  %v6262_v36 = vpack.c.bf16 %v2982_v62, %v2982_v62  ;;  %v6297_v23 = vpop.f32.mrb[7].mxu0  ;;  %v2928_v50 = vpop.f32.mrb[4].mxu1  ;;  %v3017_v41 = vshll.u32 %v6261_v17, 16 }
 0x2c4   : > { %v6298_v12 = vadd.f32 %v6297_v23, %v6296_v32  ;;  %v2929_v53 = vadd.f32 %v6295_v26, %v2928_v50  ;;  %v2930_v10 = vpop.f32.mrb[5].mxu1  ;;  %v6502_v32 = vld [vmem:[%s10270_s5 + $0x18] sm:$0xff]   ;;  %v6503_v50 = vld [vmem:[%s10270_s5 + $0x60] sm:$0xff]  }
 0x2c5   : > { %v3016_v30 = vrot.slane %v3014_v57, 7  ;;  %v3021_v19 = vshrl.u32 %v6262_v36, 16  ;;  %v2931_v31 = vpop.f32.mrb[6].mxu1  ;;  %v3024_v52 = vshll.u32 %v6262_v36, 16  ;;  %6318 = vmatpush3.bf16.msra.mxu0 %v6502_v32 }
 0x2c6   : > { %v2960_v24 = vmul.f32 %v7894_v37, %v2929_v53  ;;  %v2932_v34 = vadd.f32 %v6298_v12, %v2931_v31  ;;  %v2933_v46 = vpop.f32.mrb[7].mxu1  ;;  %6319 = vmatprep.subr.bf16.mxu0 %v6503_v50 }
 0x2c7   : > { %v3023_v40 = vrot.slane %v3021_v19, 7  ;;  %v3019_v63 = vor.u32 %v3017_v41, %v3016_v30 }
 0x2c8   : > { %v2975_v28 = vadd.f32 %v7899_v15, %v2960_v24  ;;  %v2961_v47 = vmul.f32 %v7894_v37, %v2932_v34  ;;  %v6504_v24 = vld [vmem:[%s10270_s5 + $0x20] sm:$0xff]  }
 0x2c9   : > { %v3026_v8 = vor.u32 %v3024_v52, %v3023_v40  ;;  %v3077_v29 = vsel %vm7445_vm12, 0, %v3019_v63  ;;  %v6505_v63 = vld [vmem:[%s10270_s5 + $0x68] sm:$0xff]   ;;  %6320 = vmatpush3.bf16.msra.mxu0 %v6504_v24 }
 0x2ca   : > { %v2983_v61 = vmax.f32 %v2975_v28, 0.0  ;;  %v2976_v60 = vadd.f32 %v7899_v15, %v2961_v47  ;;  %v7925_v49 = vsel %vm7450_vm13, %v3077_v29, 0  ;;  %6321 = vmatprep.subr.bf16.mxu0 %v6505_v63 }
 0x2cb   : > { %3189 = vrot.lane.b32.xlu0 %v7925_v49, %s10408_s24  ;;  %v3165_v59 = vrot.slane %v7925_v49, 1  ;;  %v3078_v39 = vsel %vm7445_vm12, 0, %v3026_v8  ;;  %v3096_v27 = vshll.u32 %v7925_v49, 16  ;;  %v3094_v21 = vshrl.u32 %v7925_v49, 16 }
 0x2cc   : > { %v6263_v3 = vpack.c.bf16 %v2983_v61, %v2983_v61  ;;  %v2984_v13 = vmax.f32 %v2976_v60, 0.0  ;;  %v6299_v11 = vpop.f32.mrb[8].mxu0  ;;  %v7935_v16 = vsel %vm7450_vm13, %v3078_v39, 0 }
 0x2cd   : > { %3174 = vrot.lane.b32.xlu1 %v3165_v59, %s6649_s12  ;;  %v6300_v56 = vpop.f32.mrb[9].mxu0  ;;  %v3103_v17 = vshll.u32 %v7935_v16, 16  ;;  %v7958_v36 = vrot.slane %v7935_v16, 1  ;;  %v3098_v23 = vrot.slane %v3096_v27, 1  ;;  %v3101_v52 = vshrl.u32 %v7935_v16, 16 }
 0x2ce   : > { %v3028_v33 = vshrl.u32 %v6263_v3, 16  ;;  %v6264_v54 = vpack.c.bf16 %v2984_v13, %v2984_v13  ;;  %v6301_v4 = vadd.f32 %v6300_v56, %v6299_v11  ;;  %v6302_v14 = vpop.f32.mrb[10].mxu0  ;;  %v3031_v44 = vshll.u32 %v6263_v3, 16  ;;  %v6506_v3 = vld [vmem:[%s10270_s5 + $0x28] sm:$0xff]  }
 0x2cf   : > { %3213 = vrot.lane.b32.xlu0 %v3165_v59, %s10411_s25  ;;  %v6303_v22 = vpop.f32.mrb[11].mxu0  ;;  %v2936_v58 = vpop.f32.mrb[8].mxu1  ;;  %v3105_v30 = vrot.slane %v3103_v17, 1  ;;  %v7983_v40 = vor.u32 %v3098_v23, %v3094_v21  ;;  %6322 = vmatpush3.bf16.msra.mxu0 %v6506_v3  ;;  %v6510_v23 = vld [vmem:[%s10270_s5 + $0x38] sm:$0xff]  }
 0x2d0   : > { %v3030_v6 = vrot.slane %v3028_v33, 7  ;;  %v6304_v48 = vadd.f32 %v6303_v22, %v6302_v14  ;;  %v2938_v18 = vpop.f32.mrb[9].mxu1  ;;  %v3035_v43 = vshrl.u32 %v6264_v54, 16  ;;  %v2937_v45 = vadd.f32 %v6301_v4, %v2936_v58  ;;  %v6507_v22 = vld [vmem:[%s10270_s5 + $0x70] sm:$0xff]  }
 0x2d1   : > { %3191 = vrot.lane.b32.xlu1 %v7935_v16, %s10408_s24  ;;  %v2939_v0 = vpop.f32.mrb[10].mxu1  ;;  %v3038_v34 = vshll.u32 %v6264_v54, 16  ;;  %v7991_v29 = vor.u32 %v3105_v30, %v3101_v52  ;;  %v6508_v18 = vld [vmem:[%s10270_s5 + $0x30] sm:$0xff]   ;;  %6323 = vmatprep.subr.bf16.mxu0 %v6507_v22 }
 0x2d2   : > { %v3033_v62 = vor.u32 %v3031_v44, %v3030_v6  ;;  %v2940_v5 = vadd.f32 %v6304_v48, %v2939_v0  ;;  %v2941_v26 = vpop.f32.mrb[11].mxu1  ;;  %v2962_v57 = vmul.f32 %v7894_v37, %v2937_v45  ;;  %v3037_v53 = vrot.slane %v3035_v43, 7 }
 0x2d3   : > { %3229 = vrot.lane.b32.xlu0 %v7935_v16, %s6649_s12  ;;  %6324 = vmatpush3.bf16.msra.mxu0 %v6508_v18 }
 0x2d4   : > { %v2963_v42 = vmul.f32 %v7894_v37, %v2940_v5  ;;  %v3079_v12 = vsel %vm7445_vm12, 0, %v3033_v62  ;;  %v2977_v10 = vadd.f32 %v7899_v15, %v2962_v57  ;;  %v3040_v25 = vor.u32 %v3038_v34, %v3037_v53  ;;  %v6509_v5 = vld [vmem:[%s10270_s5 + $0x78] sm:$0xff]  }
 0x2d5   : > { %3215 = vrot.lane.b32.xlu1 %v7958_v36, %s10411_s25  ;;  %v7972_v41 = vsel %vm7450_vm13, %v3079_v12, 0  ;;  %6325 = vmatprep.subr.bf16.mxu0 %v6509_v5 }
 0x2d6   : > { %v2978_v19 = vadd.f32 %v7899_v15, %v2963_v42  ;;  %v7976_v31 = vrot.slane %v7972_v41, 1  ;;  %v2985_v46 = vmax.f32 %v2977_v10, 0.0  ;;  %v3080_v55 = vsel %vm7445_vm12, 0, %v3040_v25 }
 0x2d7   : > { %3176 = vrot.lane.b32.xlu0 %v7958_v36, %s6649_s12  ;;  %v8017_v17 = vsel %vm7450_vm13, %v3080_v55, 0  ;;  %v3110_v42 = vshll.u32 %v7972_v41, 16  ;;  %6326 = vmatpush3.bf16.msra.mxu0 %v6510_v23  ;;  %v3143_v23 = vpop.permute.xlu0 %3142 }
 0x2d8   : > { %v2986_v28 = vmax.f32 %v2978_v19, 0.0  ;;  %v6305_v47 = vpop.f32.mrb[12].mxu0  ;;  %v6265_v20 = vpack.c.bf16 %v2985_v46, %v2985_v46  ;;  %v6210_v61 = vcombine.low %v7958_v36, %v7976_v31  ;;  %v8037_v50 = vrot.slane %v8017_v17, 1  ;;  %6363 = vmatprep.subr.bf16.mxu0 %v7880_v38 }
 0x2d9   : > { %3144 = vrot.lane.b32.xlu1 %v7983_v40, %s10411_s25  ;;  %v6306_v8 = vpop.f32.mrb[13].mxu0  ;;  %v3112_v24 = vrot.slane %v3110_v42, 1 }
 0x2da   : > { %v6266_v60 = vpack.c.bf16 %v2986_v28, %v2986_v28  ;;  %v6307_v59 = vadd.f32 %v6306_v8, %v6305_v47  ;;  %v6308_v39 = vpop.f32.mrb[14].mxu0  ;;  %v3042_v13 = vshrl.u32 %v6265_v20, 16  ;;  %v3045_v27 = vshll.u32 %v6265_v20, 16 }
 0x2db   : > { %3245 = vrot.lane.b32.xlu0 %v7991_v29, %s10408_s24  ;;  %v6309_v11 = vpop.f32.mrb[15].mxu0  ;;  %v2944_v56 = vpop.f32.mrb[12].mxu1  ;;  %v3108_v28 = vshrl.u32 %v7972_v41, 16  ;;  %v3117_v47 = vshll.u32 %v8017_v17, 16 }
 0x2dc   : > { %v3049_v33 = vshrl.u32 %v6266_v60, 16  ;;  %v6310_v54 = vadd.f32 %v6309_v11, %v6308_v39  ;;  %v2945_v4 = vadd.f32 %v6307_v59, %v2944_v56  ;;  %v2946_v14 = vpop.f32.mrb[13].mxu1  ;;  %v3044_v58 = vrot.slane %v3042_v13, 7  ;;  %v3173_v42 = vpop.permute.xlu0 %3172 }
 0x2dd   : > { %3231 = vrot.lane.b32.xlu1 %v7972_v41, %s6649_s12  ;;  %v2947_v35 = vpop.f32.mrb[14].mxu1  ;;  %v3052_v26 = vshll.u32 %v6266_v60, 16  ;;  %v8062_v59 = vor.u32 %v3112_v24, %v3108_v28  ;;  %v3119_v11 = vrot.slane %v3117_v47, 1  ;;  %v3115_v14 = vshrl.u32 %v8017_v17, 16 }
 0x2de   : > { %v2964_v6 = vmul.f32 %v7894_v37, %v2945_v4  ;;  %v2948_v44 = vadd.f32 %v6310_v54, %v2947_v35  ;;  %v2949_v48 = vpop.f32.mrb[15].mxu1  ;;  %v3047_v51 = vor.u32 %v3045_v27, %v3044_v58  ;;  %v3051_v43 = vrot.slane %v3049_v33, 7 }
 0x2df   : > { %3146 = vrot.lane.b32.xlu0 %v7991_v29, %s10411_s25  ;;  %v8083_v27 = vor.u32 %v3119_v11, %v3115_v14 }
 0x2e0   : > { %v2979_v45 = vadd.f32 %v7899_v15, %v2964_v6  ;;  %v2965_v0 = vmul.f32 %v7894_v37, %v2948_v44  ;;  %v3081_v62 = vsel %vm7445_vm12, 0, %v3047_v51 }
 0x2e1   : > { %3178 = vrot.lane.b32.xlu1 %v7976_v31, %s6649_s12  ;;  %v8029_v37 = vsel %vm7450_vm13, %v3081_v62, 0 }
 0x2e2   : > { %v2987_v32 = vmax.f32 %v2979_v45, 0.0  ;;  %v2980_v57 = vadd.f32 %v7899_v15, %v2965_v0  ;;  %v8041_v21 = vrot.slane %v8029_v37, 1  ;;  %v3054_v15 = vor.u32 %v3052_v26, %v3051_v43 }
 0x2e3   : > { %3193 = vrot.lane.b32.xlu0 %v7972_v41, %s10408_s24  ;;  %v3124_v9 = vshll.u32 %v8029_v37, 16  ;;  %v3122_v55 = vshrl.u32 %v8029_v37, 16 }
 0x2e4   : > { %v6267_v12 = vpack.c.bf16 %v2987_v32, %v2987_v32  ;;  %v2988_v53 = vmax.f32 %v2980_v57, 0.0  ;;  %v6213_v10 = vcombine.low %v8037_v50, %v8041_v21  ;;  %v3082_v34 = vsel %vm7445_vm12, 0, %v3054_v15  ;;  %v8145_v15 = vpop.permute.xlu1 %3243 }
 0x2e5   : > { %3195 = vrot.lane.b32.xlu1 %v8017_v17, %s10408_s24  ;;  %v8058_v60 = vsel %vm7450_vm13, %v3082_v34, 0  ;;  %v3126_v35 = vrot.slane %v3124_v9, 1 }
 0x2e6   : > { %v3056_v30 = vshrl.u32 %v6267_v12, 16  ;;  %v6268_v19 = vpack.c.bf16 %v2988_v53, %v2988_v53  ;;  %v3059_v52 = vshll.u32 %v6267_v12, 16  ;;  %v3170_v33 = vrot.slane %v8058_v60, 1 }
 0x2e7   : > { %3217 = vrot.lane.b32.xlu0 %v7976_v31, %s10411_s25  ;;  %v3131_v6 = vshll.u32 %v8058_v60, 16  ;;  %v8108_v44 = vor.u32 %v3126_v35, %v3122_v55  ;;  %v3129_v18 = vshrl.u32 %v8058_v60, 16 }
 0x2e8   : > { %v3058_v46 = vrot.slane %v3056_v30, 7  ;;  %v3063_v63 = vshrl.u32 %v6268_v19, 16  ;;  %v3066_v8 = vshll.u32 %v6268_v19, 16 }
 0x2e9   : > { %3219 = vrot.lane.b32.xlu1 %v8037_v50, %s10411_s25  ;;  %v3133_v48 = vrot.slane %v3131_v6, 1 }
 0x2ea   : > { %v3061_v25 = vor.u32 %v3059_v52, %v3058_v46  ;;  %v3065_v20 = vrot.slane %v3063_v63, 7 }
 0x2eb   : > { %3233 = vrot.lane.b32.xlu0 %v8017_v17, %s6649_s12  ;;  %v8116_v51 = vor.u32 %v3133_v48, %v3129_v18 }
 0x2ec   : > { %v3083_v39 = vsel %vm7445_vm12, 0, %v3061_v25  ;;  %v3068_v3 = vor.u32 %v3066_v8, %v3065_v20 }
 0x2ed   : > { %v8068_v13 = vsel %vm7450_vm13, %v3083_v39, 0  ;;  %3247 = vrot.lane.b32.xlu1 %v8062_v59, %s10408_s24 }
 0x2ee   : > { %v3084_v56 = vsel %vm7445_vm12, 0, %v3068_v3  ;;  %v3171_v54 = vrot.slane %v8068_v13, 1  ;;  %v3138_v43 = vshll.u32 %v8068_v13, 16  ;;  %v3136_v62 = vshrl.u32 %v8068_v13, 16 }
 0x2ef   : > { %v3092_v4 = vsel %vm7450_vm13, %v3084_v56, 0  ;;  %3180 = vrot.lane.b32.xlu0 %v8037_v50, %s6649_s12  ;;  %v3262_v3 = vsel %vm2475_vm2, 0, %v3143_v23 }
 0x2f0   : > { %v3212_v22 = vrot.slane %v3092_v4, 1  ;;  %v6216_v58 = vcombine.low %v3170_v33, %v3171_v54  ;;  %v3208_v45 = vshll.u32 %v3092_v4, 16  ;;  %v3140_v0 = vrot.slane %v3138_v43, 1 }
 0x2f1   : > { %3148 = vrot.lane.b32.xlu1 %v8062_v59, %s10411_s25  ;;  %v3206_v32 = vshrl.u32 %v3092_v4, 16 }
 0x2f2   : > { %6371 = vmatprep.mubr.msk.bf16.mxu1 %vm2475_vm2, %v6216_v58  ;;  %v6219_v7 = vcombine.low %v3212_v22, %v6764_v2  ;;  %v3210_v5 = vrot.slane %v3208_v45, 1  ;;  %v8130_v26 = vor.u32 %v3140_v0, %v3136_v62 }
 0x2f3   : > { %3249 = vrot.lane.b32.xlu0 %v8083_v27, %s10408_s24 }
 0x2f4   : > { %6372 = vmatmul.mubr.msk.bf16.vlgmr.msra.gmra.mrb[16].mxu1 %vm2475_vm2, %v6219_v7  ;;  %v8134_v57 = vor.u32 %v3210_v5, %v3206_v32 }
 0x2f5   : > { %3235 = vrot.lane.b32.xlu1 %v8029_v37, %s6649_s12 }
 0x2f7   : > { %3150 = vrot.lane.b32.xlu0 %v8083_v27, %s10411_s25 }
 0x2f9   : > { %3182 = vrot.lane.b32.xlu1 %v8041_v21, %s6649_s12 }
 0x2fb   : > { %3197 = vrot.lane.b32.xlu0 %v8029_v37, %s10408_s24 }
 0x2fd   : > { %3199 = vrot.lane.b32.xlu1 %v8058_v60, %s10408_s24 }
 0x2ff   : > { %3221 = vrot.lane.b32.xlu0 %v8041_v21, %s10411_s25 }
 0x301   : > { %3223 = vrot.lane.b32.xlu1 %v3170_v33, %s10411_s25 }
 0x303   : > { %3237 = vrot.lane.b32.xlu0 %v8058_v60, %s6649_s12 }
 0x305   : > { %3251 = vrot.lane.b32.xlu1 %v8108_v44, %s10408_s24 }
 0x307   : > { %3184 = vrot.lane.b32.xlu0 %v3170_v33, %s6649_s12 }
 0x309   : > { %3152 = vrot.lane.b32.xlu1 %v8108_v44, %s10411_s25 }
 0x30b   : > { %3253 = vrot.lane.b32.xlu0 %v8116_v51, %s10408_s24 }
 0x30d   : > { %3239 = vrot.lane.b32.xlu1 %v8068_v13, %s6649_s12 }
 0x30f   : > { %3154 = vrot.lane.b32.xlu0 %v8116_v51, %s10411_s25 }
 0x311   : > { %3186 = vrot.lane.b32.xlu1 %v3171_v54, %s6649_s12 }
 0x313   : > { %3225 = vrot.lane.b32.xlu0 %v3171_v54, %s10411_s25  ;;  %v3278_v54 = vsel %vm2441_vm15, %v3262_v3, %v3173_v42 }
 0x315   : > { %3227 = vrot.lane.b32.xlu1 %v3212_v22, %s10411_s25 }
 0x317   : > { %3241 = vrot.lane.b32.xlu0 %v3092_v4, %s6649_s12 }
 0x319   : > { %3255 = vrot.lane.b32.xlu1 %v8130_v26, %s10408_s24 }
 0x31b   : > { %3257 = vrot.lane.b32.xlu0 %v8134_v57, %s10408_s24 }
 0x31d   : > { %3259 = vrot.lane.b32.xlu1 %v6764_v2, %s10408_s24 }
 0x31f   : > { %3201 = vrot.lane.b32.xlu0 %v8068_v13, %s10408_s24 }
 0x321   : > { %3156 = vrot.lane.b32.xlu1 %v8130_v26, %s10411_s25  ;;  %s9390_s25 = scalar_lea.hbm %s10275_s10, %s6269_s30 }
 0x325   : > { %3203 = vrot.lane.b32.xlu1 %v3092_v4, %s10408_s24  ;;  %s6081_s24 = sshll.u32 %s8229_s22, 6 }
 0x326   : > { %s8238_s12 = scalar_lea.vmem [#allocation2], %s6081_s24 }
 0x327   : > { %s5955_s15 = sshll.u32 %s8238_s12, 4  ;;  %s9392_s15 = int_to_ptr.vmem [resolvable:$true] %s5955_s15 }
 0x328   : > { %s6546_s24 = scalar_lea.vmem %s9392_s15, 1024 }
 0x329   : > { %p6547_p11 = scmp.ne.s32.totalorder %s9392_s15, %s6546_s24 }
 0x32b   : > { %p6548_p12 = pnand %p6547_p11, %p6753_p5 }
 0x32d   : > { %p6549_p13 = pneg %p6548_p12 }
 0x33d   : > { %v3190_v12 = vpop.permute.xlu0 %3189 }
 0x33e   : > { %v3294_v55 = vsel %vm2408_vm1, %v3278_v54, %v3190_v12 }
 0x33f   : > { %v3175_v53 = vpop.permute.xlu1 %3174 }
 0x341   : > { %v3214_v30 = vpop.permute.xlu0 %3213 }
 0x342   : > { %v3311_v4 = vsel %vm2475_vm2, %v7983_v40, %v3214_v30 }
 0x343   : > { %v3192_v19 = vpop.permute.xlu1 %3191 }
 0x345   : > { %v3230_v24 = vpop.permute.xlu0 %3229 }
 0x346   : > { %v3334_v22 = vsel %vm2441_vm15, %v3311_v4, %v3230_v24 }
 0x347   : > { %v3216_v34 = vpop.permute.xlu1 %3215 }
 0x348   : > { %v3314_v14 = vsel %vm2475_vm2, %v7991_v29, %v3216_v34 }
 0x349   : > { %v3177_v46 = vpop.permute.xlu0 %3176 }
 0x34b   : > { %v3145_v2 = vpop.permute.xlu1 %3144 }
 0x34c   : > { %v3264_v8 = vsel %vm2475_vm2, %v7925_v49, %v3145_v2 }
 0x34d   : > { %v3246_v52 = vpop.permute.xlu0 %3245  ;;  %v3280_v56 = vsel %vm2441_vm15, %v3264_v8, %v3175_v53 }
 0x34e   : > { %v3296_v58 = vsel %vm2408_vm1, %v3280_v56, %v3192_v19  ;;  %v3350_v9 = vsel %vm2408_vm1, %v3334_v22, %v3246_v52 }
 0x34f   : > { %v3232_v63 = vpop.permute.xlu1 %3231  ;;  %v6208_v18 = vcombine.low %v3294_v55, %v3296_v58 }
 0x350   : > { %v3336_v49 = vsel %vm2441_vm15, %v3314_v14, %v3232_v63 }
 0x351   : > { %v3147_v28 = vpop.permute.xlu0 %3146 }
 0x352   : > { %v3266_v53 = vsel %vm2475_vm2, %v7935_v16, %v3147_v28 }
 0x353   : > { %v3179_v47 = vpop.permute.xlu1 %3178  ;;  %v3282_v2 = vsel %vm2441_vm15, %v3266_v53, %v3177_v46 }
 0x355   : > { %v3194_v25 = vpop.permute.xlu0 %3193 }
 0x356   : > { %v3298_v63 = vsel %vm2408_vm1, %v3282_v2, %v3194_v25 }
 0x357   : > { %v3196_v20 = vpop.permute.xlu1 %3195 }
 0x359   : > { %v3218_v39 = vpop.permute.xlu0 %3217 }
 0x35a   : > { %v3317_v30 = vsel %vm2475_vm2, %v8062_v59, %v3218_v39 }
 0x35b   : > { %v3220_v11 = vpop.permute.xlu1 %3219 }
 0x35d   : > { %v3234_v33 = vpop.permute.xlu0 %3233 }
 0x35e   : > { %v3338_v19 = vsel %vm2441_vm15, %v3317_v30, %v3234_v33 }
 0x35f   : > { %v3248_v7 = vpop.permute.xlu1 %3247 }
 0x360   : > { %v3352_v35 = vsel %vm2408_vm1, %v3336_v49, %v3248_v7 }
 0x361   : > { %v6209_v6 = vcombine.low %v3350_v9, %v3352_v35  ;;  %v3181_v48 = vpop.permute.xlu0 %3180 }
 0x363   : > { %v3149_v40 = vpop.permute.xlu1 %3148  ;;  %3612 = vmatprep.mubr.bf16.mxu0 %v6209_v6 }
 0x364   : > { %3613 = vmatmul.mubr.bf16.vlgmr.msra.gmra.mrb[16].mxu0 %v6208_v18  ;;  %v3268_v32 = vsel %vm2475_vm2, %v7972_v41, %v3149_v40 }
 0x365   : > { %v3250_v29 = vpop.permute.xlu0 %3249  ;;  %6364 = vmatpush3.bf16.msra.mxu0 %v7880_v38  ;;  %v3284_v12 = vsel %vm2441_vm15, %v3268_v32, %v3179_v47 }
 0x366   : > { %6365 = vmatprep.subr.bf16.mxu0 %v7885_v1  ;;  %v3300_v41 = vsel %vm2408_vm1, %v3284_v12, %v3196_v20  ;;  %v3354_v52 = vsel %vm2408_vm1, %v3338_v19, %v3250_v29  ;;  %v6512_v19 = vld [vmem:[%s10273_s8 + $0x8] sm:$0xff]  }
 0x367   : > { %v3236_v43 = vpop.permute.xlu1 %3235  ;;  %v6211_v47 = vcombine.low %v3298_v63, %v3300_v41 }
 0x369   : > { %v3151_v45 = vpop.permute.xlu0 %3150  ;;  %6366 = vmatpush3.bf16.msra.mxu0 %v7885_v1  ;;  %v3320_v1 = vsel %vm2475_vm2, %v8083_v27, %v3220_v11 }
 0x36a   : > { %v3340_v24 = vsel %vm2441_vm15, %v3320_v1, %v3236_v43  ;;  %v3270_v25 = vsel %vm2475_vm2, %v8017_v17, %v3151_v45  ;;  %v6511_v1 = vld [vmem:[%s10273_s8] sm:$0xff]  }
 0x36b   : > { %v3183_v0 = vpop.permute.xlu1 %3182  ;;  %v3286_v7 = vsel %vm2441_vm15, %v3270_v25, %v3181_v48  ;;  %6375 = vmatprep.subr.bf16.mxu1 %v6511_v1 }
 0x36c   : > { %6376 = vmatpush3.bf16.msra.mxu1 %v6511_v1 }
 0x36d   : > { %v3198_v62 = vpop.permute.xlu0 %3197  ;;  %6377 = vmatprep.subr.bf16.mxu1 %v6512_v19 }
 0x36f   : > { %v3200_v5 = vpop.permute.xlu1 %3199 }
 0x370   : > { %6378 = vmatpush3.bf16.msra.mxu1 %v6512_v19 }
 0x371   : > { %v3222_v23 = vpop.permute.xlu0 %3221 }
 0x372   : > { %v3323_v4 = vsel %vm2475_vm2, %v8108_v44, %v3222_v23  ;;  %v3302_v44 = vsel %vm2408_vm1, %v3286_v7, %v3198_v62 }
 0x373   : > { %v3224_v42 = vpop.permute.xlu1 %3223 }
 0x374   : > { %v3326_v14 = vsel %vm2475_vm2, %v8116_v51, %v3224_v42 }
 0x375   : > { %v3238_v38 = vpop.permute.xlu0 %3237 }
 0x376   : > { %v3342_v22 = vsel %vm2441_vm15, %v3323_v4, %v3238_v38 }
 0x377   : > { %v3252_v34 = vpop.permute.xlu1 %3251 }
 0x378   : > { %v3356_v16 = vsel %vm2408_vm1, %v3340_v24, %v3252_v34 }
 0x379   : > { %v6212_v28 = vcombine.low %v3354_v52, %v3356_v16  ;;  %v3185_v59 = vpop.permute.xlu0 %3184 }
 0x37b   : > { %v3153_v8 = vpop.permute.xlu1 %3152  ;;  %3620 = vmatprep.mubr.bf16.mxu0 %v6212_v28 }
 0x37c   : > { %3621 = vmatmul.mubr.bf16.gmra.mrb[20].mxu0 %v6211_v47  ;;  %v3272_v20 = vsel %vm2475_vm2, %v8029_v37, %v3153_v8  ;;  %v6242_v8 = vld [vmem:[%s10271_s6] ss:$0 sm:$0xff] }
 0x37d   : > { %v3254_v27 = vpop.permute.xlu0 %3253  ;;  %v3288_v33 = vsel %vm2441_vm15, %v3272_v20, %v3183_v0 }
 0x37e   : > { %v3304_v37 = vsel %vm2408_vm1, %v3288_v33, %v3200_v5  ;;  %v3358_v9 = vsel %vm2408_vm1, %v3342_v22, %v3254_v27 }
 0x37f   : > { %v3240_v39 = vpop.permute.xlu1 %3239  ;;  %v6214_v18 = vcombine.low %v3302_v44, %v3304_v37 }
 0x380   : > { %v3344_v58 = vsel %vm2441_vm15, %v3326_v14, %v3240_v39 }
 0x381   : > { %v3155_v3 = vpop.permute.xlu0 %3154 }
 0x382   : > { %v3274_v62 = vsel %vm2475_vm2, %v8058_v60, %v3155_v3 }
 0x383   : > { %v3187_v11 = vpop.permute.xlu1 %3186  ;;  %v3290_v32 = vsel %vm2441_vm15, %v3274_v62, %v3185_v59 }
 0x385   : > { %v3226_v46 = vpop.permute.xlu0 %3225 }
 0x386   : > { %v3329_v6 = vsel %vm2475_vm2, %v8130_v26, %v3226_v46 }
 0x387   : > { %v3228_v56 = vpop.permute.xlu1 %3227 }
 0x388   : > { %v3332_v17 = vsel %vm2475_vm2, %v8134_v57, %v3228_v56 }
 0x389   : > { %v3242_v54 = vpop.permute.xlu0 %3241  ;;  %v3348_v48 = vsel %vm2441_vm15, %v3332_v17, %v8145_v15 }
 0x38a   : > { %v3346_v40 = vsel %vm2441_vm15, %v3329_v6, %v3242_v54 }
 0x38b   : > { %v3256_v49 = vpop.permute.xlu1 %3255 }
 0x38c   : > { %v3360_v35 = vsel %vm2408_vm1, %v3344_v58, %v3256_v49 }
 0x38d   : > { %v6215_v55 = vcombine.low %v3358_v9, %v3360_v35  ;;  %v3258_v51 = vpop.permute.xlu0 %3257 }
 0x38e   : > { %v3362_v43 = vsel %vm2408_vm1, %v3346_v40, %v3258_v51 }
 0x38f   : > { %v3260_v29 = vpop.permute.xlu1 %3259  ;;  %3628 = vmatprep.mubr.bf16.mxu0 %v6215_v55 }
 0x390   : > { %v3364_v57 = vsel %vm2408_vm1, %v3348_v48, %v3260_v29  ;;  %3629 = vmatmul.mubr.bf16.gmra.mrb[24].mxu0 %v6214_v18 }
 0x391   : > { %v6218_v45 = vcombine.low %v3362_v43, %v3364_v57  ;;  %v3202_v5 = vpop.permute.xlu0 %3201 }
 0x392   : > { %v3306_v42 = vsel %vm2408_vm1, %v3290_v32, %v3202_v5 }
 0x393   : > { %v3157_v0 = vpop.permute.xlu1 %3156  ;;  %3636 = vmatprep.mubr.bf16.mxu0 %v6218_v45 }
 0x394   : > { %v3276_v26 = vsel %vm2475_vm2, %v8068_v13, %v3157_v0 }
 0x395   : > { %v3292_v15 = vsel %vm2441_vm15, %v3276_v26, %v3187_v11  ;;  %v6243_v11 = vld [vmem:[%s10272_s7] ss:$0 sm:$0xff] }
 0x397   : > { %v3204_v23 = vpop.permute.xlu1 %3203 }
 0x398   : > { %v3308_v12 = vsel %vm2408_vm1, %v3292_v15, %v3204_v23 }
 0x399   : > { %v6217_v53 = vcombine.low %v3306_v42, %v3308_v12 }
 0x39b   : > { %3637 = vmatmul.mubr.bf16.gmra.mrb[28].mxu0 %v6217_v53 }
 0x39c   : > { %6367 = vmatprep.mubr.msk.bf16.mxu0 %vm2475_vm2, %v6210_v61 }
 0x3a3   : > { %6368 = vmatmul.mubr.msk.bf16.vlgmr.msra.gmra.mrb[32].mxu0 %vm2475_vm2, %v6213_v10 }
 0x3c7   : > { %v6373_v60 = vpop.f32.mrb[16].mxu1 }
 0x3c8   : > { %v3695_v13 = vpop.f32.mrb[17].mxu1 }
 0x3c9   : > { %v6374_v38 = vpop.f32.mrb[18].mxu1 }
 0x3ca   : > { %v3698_v30 = vpop.f32.mrb[19].mxu1 }
 0x437   : > { %v6327_v36 = vpop.f32.mrb[16].mxu0 }
 0x438   : > { %v6328_v31 = vpop.f32.mrb[17].mxu0 }
 0x439   : > { %v6329_v61 = vadd.f32 %v6328_v31, %v6327_v36  ;;  %v6330_v50 = vpop.f32.mrb[18].mxu0 }
 0x43a   : > { %v6331_v21 = vpop.f32.mrb[19].mxu0 }
 0x43b   : > { %v6332_v10 = vadd.f32 %v6331_v21, %v6330_v50 }
 0x44f   : > { %v6333_v24 = vpop.f32.mrb[20].mxu0 }
 0x450   : > { %v6334_v34 = vpop.f32.mrb[21].mxu0 }
 0x451   : > { %v6335_v41 = vadd.f32 %v6334_v34, %v6333_v24  ;;  %v6336_v2 = vpop.f32.mrb[22].mxu0 }
 0x452   : > { %v6337_v52 = vpop.f32.mrb[23].mxu0 }
 0x453   : > { %v6338_v16 = vadd.f32 %v6337_v52, %v6336_v2 }
 0x463   : > { %v6339_v63 = vpop.f32.mrb[24].mxu0 }
 0x464   : > { %v6340_v28 = vpop.f32.mrb[25].mxu0 }
 0x465   : > { %v6341_v59 = vadd.f32 %v6340_v28, %v6339_v63  ;;  %v6342_v47 = vpop.f32.mrb[26].mxu0 }
 0x466   : > { %v6343_v27 = vpop.f32.mrb[27].mxu0 }
 0x467   : > { %v3696_v39 = vadd.f32 %v6341_v59, %v3695_v13  ;;  %v6344_v3 = vadd.f32 %v6343_v27, %v6342_v47 }
 0x469   : > { %v3721_v20 = vmul.f32 %v6242_v8, %v3696_v39  ;;  %v3699_v46 = vadd.f32 %v6344_v3, %v3698_v30 }
 0x46b   : > { %v3736_v56 = vadd.f32 %v6243_v11, %v3721_v20  ;;  %v3722_v33 = vmul.f32 %v6242_v8, %v3699_v46 }
 0x46d   : > { %v3744_v25 = vmax.f32 %v3736_v56, 0.0  ;;  %v3737_v54 = vadd.f32 %v6243_v11, %v3722_v33 }
 0x46e   : > { %v6345_v4 = vpop.f32.mrb[28].mxu0 }
 0x46f   : > { %3752 = vst.msk [vmem:[%s8238_s12 + $0x20] sm:$0xff] %vm2475_vm2, %v3744_v25  ;;  %v3745_v14 = vmax.f32 %v3737_v54, 0.0  ;;  %v6346_v22 = vpop.f32.mrb[29].mxu0 }
 0x470   : > { %v6347_v58 = vadd.f32 %v6346_v22, %v6345_v4  ;;  %v6348_v49 = vpop.f32.mrb[30].mxu0 }
 0x471   : > { %3753 = vst.msk [vmem:[%s8238_s12 + $0x28] sm:$0xff] %vm2475_vm2, %v3745_v14  ;;  %v6349_v37 = vpop.f32.mrb[31].mxu0  ;;  %v3758_v7 = vpack.c.bf16 %v3745_v14, %v3744_v25 }
 0x472   : > { %v3704_v9 = vadd.f32 %v6373_v60, %v6347_v58  ;;  %v6350_v17 = vadd.f32 %v6349_v37, %v6348_v49 }
 0x474   : > { %v3723_v35 = vmul.f32 %v6242_v8, %v3704_v9  ;;  %v3707_v44 = vadd.f32 %v6374_v38, %v6350_v17 }
 0x476   : > { %v3738_v55 = vadd.f32 %v6243_v11, %v3723_v35  ;;  %v3724_v51 = vmul.f32 %v6242_v8, %v3707_v44  ;;  %v6369_v6 = vpop.f32.mrb[32].mxu0 }
 0x477   : > { %v3688_v18 = vadd.f32 %v6369_v6, %v6335_v41  ;;  %v3679_v40 = vpop.f32.mrb[33].mxu0 }
 0x478   : > { %v3746_v48 = vmax.f32 %v3738_v55, 0.0  ;;  %v3739_v29 = vadd.f32 %v6243_v11, %v3724_v51  ;;  %v3680_v43 = vadd.f32 %v6329_v61, %v3679_v40  ;;  %v6370_v57 = vpop.f32.mrb[34].mxu0  ;;  %v8263_v61 = vld [vmem:[%s10274_s9] ss:$0 sm:$0xff] }
 0x479   : > { %v3719_v45 = vmul.f32 %v6242_v8, %v3688_v18  ;;  %v3691_v0 = vadd.f32 %v6370_v57, %v6338_v16  ;;  %v3682_v62 = vpop.f32.mrb[35].mxu0  ;;  %10413 = vst [vmem:[#allocation8_spill] sm:$0xff] %v8263_v61 }
 0x47a   : > { %3754 = vst.msk [vmem:[%s8238_s12 + $0x30] sm:$0xff] %vm2475_vm2, %v3746_v48  ;;  %v3747_v26 = vmax.f32 %v3739_v29, 0.0  ;;  %v3717_v5 = vmul.f32 %v6242_v8, %v3680_v43  ;;  %v3683_v32 = vadd.f32 %v6332_v10, %v3682_v62 }
 0x47b   : > { %v3734_v15 = vadd.f32 %v6243_v11, %v3719_v45  ;;  %v3720_v23 = vmul.f32 %v6242_v8, %v3691_v0 }
 0x47c   : > { %3755 = vst.msk [vmem:[%s8238_s12 + $0x38] sm:$0xff] %vm2475_vm2, %v3747_v26  ;;  %v3732_v42 = vadd.f32 %v6243_v11, %v3717_v5  ;;  %v3718_v12 = vmul.f32 %v6242_v8, %v3683_v32  ;;  %v3759_v53 = vpack.c.bf16 %v3747_v26, %v3746_v48 }
 0x47d   : > { %v3742_v60 = vmax.f32 %v3734_v15, 0.0  ;;  %v3735_v13 = vadd.f32 %v6243_v11, %v3720_v23 }
 0x47e   : > { %v3740_v38 = vmax.f32 %v3732_v42, 0.0  ;;  %v3733_v30 = vadd.f32 %v6243_v11, %v3718_v12 }
 0x47f   : > { %3750 = vst.msk [vmem:[%s8238_s12 + $0x10] sm:$0xff] %vm2475_vm2, %v3742_v60  ;;  %v3743_v1 = vmax.f32 %v3735_v13, 0.0 }
 0x480   : > { %3748 = vst.msk [vmem:[%s8238_s12] sm:$0xff] %vm2475_vm2, %v3740_v38  ;;  %v3741_v19 = vmax.f32 %v3733_v30, 0.0 }
 0x481   : > { %3751 = vst.msk [vmem:[%s8238_s12 + $0x18] sm:$0xff] %vm2475_vm2, %v3743_v1  ;;  %v3757_v36 = vpack.c.bf16 %v3743_v1, %v3742_v60 }
 0x482   : > { %3749 = vst.msk [vmem:[%s8238_s12 + $0x8] sm:$0xff] %vm2475_vm2, %v3741_v19  ;;  %v3756_v31 = vpack.c.bf16 %v3741_v19, %v3740_v38  ;;  %s6651_s12 = smov [#allocation2]  }
 0x483   : > { %s6550_s29 = sshll.u32 %s6651_s12, 4  ;;  %s6551_s29 = int_to_ptr.vmem [resolvable:$false] %s6550_s29 }
 0x484   : > { %6379 = vmatprep.mubr.msk.bf16.mxu1 %vm2475_vm2, %v3756_v31  ;;  %s6552_s13 = scalar_lea.vmem %s6551_s29, 2048  ;;  %p6553_p0 = scmp.lt.s32.totalorder %s9392_s15, %s6551_s29 }
 0x485   : > { %6380 = vmatmul.mubr.msk.bf16.vlgmr.msra.gmra.mrb[20].mxu1 %vm2475_vm2, %v3757_v36  ;;  %p6554_p1 = scmp.lt.s32.totalorder %s6552_s13, %s6546_s24 }
 0x486   : > { %6383 = vmatprep.mubr.msk.bf16.mxu1 %vm2475_vm2, %v3758_v7 }
 0x487   : > { %p6555_p2 = por %p6554_p1, %p6553_p0 }
 0x489   : > { %p6556_p3 = pnand %p6555_p2, %p6549_p13 }
 0x48d   : > { %6384 = vmatmul.mubr.msk.bf16.gmra.mrb[24].mxu1 %vm2475_vm2, %v3759_v53 }
 0x558   : > { %v6381_v50 = vpop.f32.mrb[20].mxu1 }
 0x559   : > { %v3838_v21 = vadd.f32 %v6381_v50, %v8263_v61  ;;  %v3829_v10 = vpop.f32.mrb[21].mxu1 }
 0x55a   : > { %v8267_v24 = vadd.f32 %v8263_v61, %v3829_v10  ;;  %v6382_v34 = vpop.f32.mrb[22].mxu1 }
 0x55b   : > { %v8269_v41 = vmul.f32 0.4, %v3838_v21  ;;  %v8271_v2 = vmul.f32 0.8666667, %v3838_v21  ;;  %v3872_v52 = vmul.f32 0.6666667, %v3838_v21  ;;  %v3841_v16 = vadd.f32 %v6382_v34, %v8263_v61 }
 0x55c   : > { %10414 = vst [vmem:[#allocation9_spill] sm:$0xff] %v8267_v24  ;;  %v3875_v63 = vmul.f32 0.2, %v3838_v21  ;;  %v3832_v28 = vpop.f32.mrb[23].mxu1  ;;  %v8275_v59 = vmul.f32 0.53333336, %v8267_v24 }
 0x55d   : > { %10415 = vst [vmem:[#allocation10_spill] sm:$0xff] %v8271_v2  ;;  %v3873_v47 = vmul.f32 0.33333334, %v3841_v16  ;;  %v3876_v8 = vmul.f32 0.8, %v3841_v16  ;;  %v3833_v39 = vadd.f32 %v8263_v61, %v3832_v28 }
 0x55e   : > { %10416 = vst [vmem:[#allocation11_spill] sm:$0xff] %v8275_v59  ;;  %v8277_v27 = vmul.f32 0.73333335, %v3841_v16  ;;  %v8280_v3 = vmul.f32 0.26666668, %v3841_v16 }
 0x55f   : > { %v8283_v11 = vmul.f32 0.06666667, %v8267_v24  ;;  %v8286_v20 = vmul.f32 0.46666667, %v8267_v24  ;;  %v8288_v46 = vadd.f32 %v3873_v47, %v3872_v52  ;;  %v8290_v56 = vadd.f32 %v3876_v8, %v3875_v63 }
 0x560   : > { %10417 = vst [vmem:[#allocation12_spill] sm:$0xff] %v8277_v27  ;;  %10418 = vst [vmem:[#allocation13_spill] sm:$0xff] %v8280_v3  ;;  %v3861_v33 = vmul.f32 0.46666667, %v3833_v39  ;;  %v3864_v25 = vmul.f32 0.93333334, %v3833_v39 }
 0x561   : > { %10419 = vst [vmem:[#allocation14_spill] sm:$0xff] %v8283_v11  ;;  %10420 = vst [vmem:[#allocation15_spill] sm:$0xff] %v8286_v20  ;;  %v8292_v54 = vmul.f32 0.6, %v3833_v39  ;;  %v8294_v4 = vmul.f32 0.13333334, %v3833_v39 }
 0x562   : > { %v8299_v58 = vmul.f32 0.53333336, %v8288_v46  ;;  %v8302_v49 = vmul.f32 0.53333336, %v8290_v56  ;;  %v8305_v37 = vmul.f32 0.46666667, %v8288_v46  ;;  %v8308_v7 = vadd.f32 %v3861_v33, %v8275_v59 }
 0x563   : > { %v8311_v9 = vmul.f32 0.46666667, %v8290_v56  ;;  %v8314_v17 = vmul.f32 0.06666667, %v8288_v46  ;;  %v8317_v35 = vmul.f32 0.06666667, %v8290_v56  ;;  %v8320_v44 = vadd.f32 %v3864_v25, %v8283_v11 }
 0x564   : > { %10421 = vst [vmem:[#allocation16_spill] sm:$0xff] %v8308_v7  ;;  %v3953_v55 = vrot.slane %v8305_v37, 1  ;;  %v8324_v51 = vmul.f32 0.93333334, %v8288_v46  ;;  %v8327_v6 = vmul.f32 0.93333334, %v8290_v56 }
 0x565   : > { %10422 = vst [vmem:[#allocation17_spill] sm:$0xff] %v8320_v44  ;;  %v3954_v40 = vrot.slane %v8311_v9, 1  ;;  %v8332_v48 = vmul.f32 0.6, %v8288_v46  ;;  %v8335_v29 = vmul.f32 0.6, %v8290_v56 }
 0x566   : > { %v8339_v57 = vadd.f32 %v3953_v55, %v8299_v58  ;;  %v4047_v45 = vrot.slane %v8324_v51, 1  ;;  %v4048_v0 = vrot.slane %v8327_v6, 1  ;;  %v8344_v62 = vmul.f32 0.4, %v8288_v46  ;;  %v8346_v26 = vpop.f32.mrb[24].mxu1 }
 0x567   : > { %10423 = vst [vmem:[#allocation18_spill] sm:$0xff] %v8346_v26  ;;  %v8349_v5 = vadd.f32 %v3954_v40, %v8302_v49  ;;  %v4112_v32 = vmul.f32 0.4, %v8290_v56  ;;  %v4191_v15 = vmul.f32 0.13333334, %v8288_v46  ;;  %v8362_v13 = vpop.f32.mrb[25].mxu1 }
 0x568   : > { %v4192_v23 = vmul.f32 0.13333334, %v8290_v56  ;;  %v8355_v42 = vadd.f32 %v4047_v45, %v8314_v17  ;;  %v8358_v12 = vadd.f32 %v4048_v0, %v8317_v35  ;;  %v4143_v53 = vrot.slane %v8344_v62, 1  ;;  %10424 = vst [vmem:[#allocation19_spill] sm:$0xff] %v8362_v13 }
 0x569   : > { %v4207_v60 = vmul.f32 0.8666667, %v8288_v46  ;;  %v4144_v38 = vrot.slane %v4112_v32, 1  ;;  %v4208_v30 = vmul.f32 0.8666667, %v8290_v56  ;;  %v4783_v19 = vrot.slane %v4191_v15, 1 }
 0x56a   : > { %v4287_v1 = vmul.f32 0.6666667, %v8288_v46  ;;  %v8367_v36 = vadd.f32 %v4143_v53, %v8332_v48  ;;  %v4288_v50 = vmul.f32 0.6666667, %v8290_v56  ;;  %v4303_v21 = vmul.f32 0.33333334, %v8288_v46 }
 0x56b   : > { %v4239_v31 = vrot.slane %v4207_v60, 1  ;;  %v8372_v10 = vadd.f32 %v4144_v38, %v8335_v29  ;;  %v4240_v34 = vrot.slane %v4208_v30, 1  ;;  %v4304_v52 = vmul.f32 0.33333334, %v8290_v56 }
 0x56c   : > { %v4383_v16 = vmul.f32 0.2, %v8288_v46  ;;  %v4335_v28 = vrot.slane %v4303_v21, 1  ;;  %v4384_v47 = vmul.f32 0.2, %v8290_v56  ;;  %v4720_v59 = vrot.slane %v4288_v50, 1 }
 0x56d   : > { %v8376_v63 = vadd.f32 %v4239_v31, %v4191_v15  ;;  %v4399_v8 = vmul.f32 0.8, %v8288_v46  ;;  %v8380_v39 = vadd.f32 %v4240_v34, %v4192_v23  ;;  %v4336_v33 = vrot.slane %v4304_v52, 1 }
 0x56e   : > { %v4400_v25 = vmul.f32 0.8, %v8290_v56  ;;  %v4479_v55 = vmul.f32 0.73333335, %v8288_v46  ;;  %v8384_v40 = vadd.f32 %v4335_v28, %v4287_v1  ;;  %v4480_v0 = vmul.f32 0.73333335, %v8290_v56 }
 0x56f   : > { %v4431_v45 = vrot.slane %v4399_v8, 1  ;;  %v4495_v15 = vmul.f32 0.26666668, %v8288_v46  ;;  %v8388_v53 = vadd.f32 %v4336_v33, %v4288_v50  ;;  %v4496_v31 = vmul.f32 0.26666668, %v8290_v56 }
 0x570   : > { %v4432_v38 = vrot.slane %v4400_v25, 1  ;;  %v4591_v22 = vrot.slane %v4479_v55, 1  ;;  %v4592_v18 = vrot.slane %v4480_v0, 1  ;;  %v4655_v43 = vrot.slane %v4383_v16, 1 }
 0x571   : > { %v8391_v34 = vadd.f32 %v4431_v45, %v4383_v16  ;;  %v4527_v14 = vrot.slane %v4495_v15, 1  ;;  %v4528_v28 = vrot.slane %v4496_v31, 1  ;;  %v4656_v13 = vrot.slane %v4384_v47, 1  ;;  %v8399_v45 = vpop.f32.mrb[26].mxu1 }
 0x572   : > { %v8393_v3 = vadd.f32 %v4432_v38, %v4384_v47  ;;  %v4623_v27 = vadd.f32 %v4591_v22, %v4495_v15  ;;  %v4624_v24 = vadd.f32 %v4592_v18, %v4496_v31  ;;  %v4687_v26 = vadd.f32 %v4655_v43, %v4399_v8 }
 0x573   : > { %v8395_v11 = vadd.f32 %v4527_v14, %v4479_v55  ;;  %v4719_v33 = vrot.slane %v4287_v1, 1  ;;  %v8397_v61 = vadd.f32 %v4528_v28, %v4480_v0  ;;  %v4688_v20 = vadd.f32 %v4656_v13, %v4400_v25 }
 0x574   : > { %v4784_v44 = vrot.slane %v4192_v23, 1  ;;  %v4815_v2 = vadd.f32 %v4783_v19, %v4207_v60  ;;  %v4847_v16 = vrot.slane %v8332_v48, 1  ;;  %v4848_v38 = vrot.slane %v8335_v29, 1 }
 0x575   : > { %v4751_v7 = vadd.f32 %v4719_v33, %v4303_v21  ;;  %v4752_v22 = vadd.f32 %v4720_v59, %v4304_v52  ;;  %v4912_v14 = vrot.slane %v8317_v35, 1  ;;  %v10425_v18 = vrot.slane %v8314_v17, 1 }
 0x576   : > { %v4816_v47 = vadd.f32 %v4784_v44, %v4208_v30  ;;  %v4879_v13 = vadd.f32 %v4847_v16, %v8344_v62  ;;  %v4880_v1 = vadd.f32 %v4848_v38, %v4112_v32  ;;  %v4976_v23 = vrot.slane %v8302_v49, 1 }
 0x577   : > { %v4943_v43 = vadd.f32 %v10425_v18, %v8324_v51  ;;  %v10426_v60 = vrot.slane %v8299_v58, 1  ;;  %v4944_v48 = vadd.f32 %v4912_v14, %v8327_v6  ;;  %v5039_v59 = vrot.slane %v8339_v57, 7 }
 0x578   : > { %v5040_v35 = vrot.slane %v8349_v5, 7  ;;  %v5087_v44 = vrot.slane %v8355_v42, 6  ;;  %v5008_v17 = vadd.f32 %v4976_v23, %v8311_v9  ;;  %v5088_v51 = vrot.slane %v8358_v12, 6 }
 0x579   : > { %v5007_v19 = vadd.f32 %v10426_v60, %v8305_v37  ;;  %v5135_v49 = vrot.slane %v8367_v36, 6  ;;  %v5136_v29 = vrot.slane %v8372_v10, 6  ;;  %v5183_v58 = vrot.slane %v8376_v63, 5  ;;  %v6513_v60 = vld [vmem:[%s6779_s16 + $0x50] sm:$0xff] }
 0x57a   : > { %v5184_v37 = vrot.slane %v8380_v39, 5  ;;  %v5231_v6 = vrot.slane %v8384_v40, 5  ;;  %v5232_v57 = vrot.slane %v8388_v53, 5  ;;  %v5279_v62 = vrot.slane %v8391_v34, 4 }
 0x57b   : > { %v5280_v5 = vrot.slane %v8393_v3, 4  ;;  %v5327_v9 = vrot.slane %v8395_v11, 4  ;;  %v5328_v32 = vrot.slane %v8397_v61, 4  ;;  %v5375_v42 = vrot.slane %v4623_v27, 3 }
 0x57c   : > { %v5376_v12 = vrot.slane %v4624_v24, 3  ;;  %v5423_v30 = vrot.slane %v4687_v26, 3  ;;  %v5424_v36 = vrot.slane %v4688_v20, 3  ;;  %v5471_v50 = vrot.slane %v4751_v7, 2 }
 0x57d   : > { %v5472_v21 = vrot.slane %v4752_v22, 2  ;;  %v5519_v10 = vrot.slane %v4815_v2, 2  ;;  %v5520_v52 = vrot.slane %v4816_v47, 2  ;;  %v5567_v63 = vrot.slane %v4879_v13, 1 }
 0x57e   : > { %v5568_v8 = vrot.slane %v4880_v1, 1  ;;  %v5615_v39 = vrot.slane %v4943_v43, 1  ;;  %v5616_v25 = vrot.slane %v4944_v48, 1  ;;  %v5647_v3 = vsel %vm1125_vm6, %v8288_v46, %v5039_v59  ;;  %v6514_v59 = vld [vmem:[%s6779_s16 + $0x58] sm:$0xff] }
 0x57f   : > { %v5648_v61 = vsel %vm1125_vm6, %v8290_v56, %v5040_v35  ;;  %v5765_v27 = vsel %vm1125_vm6, %v5375_v42, %v5423_v30  ;;  %v5766_v24 = vsel %vm1125_vm6, %v5376_v12, %v5424_v36  ;;  %v5664_v11 = vsel %vm5658_vm4, %v5647_v3, %v5087_v44  ;;  %v6515_v44 = vld [vmem:[%s6779_s16 + $0x60] sm:$0xff]  ;;  %v10444_v36 = vld [vmem:[#allocation18_spill] sm:$0xff] }
 0x580   : > { %v5665_v2 = vsel %vm5658_vm4, %v5648_v61, %v5088_v51  ;;  %v5781_v20 = vsel %vm5658_vm4, %v5765_v27, %v5471_v50  ;;  %v5782_v7 = vsel %vm5658_vm4, %v5766_v24, %v5472_v21  ;;  %v5681_v26 = vsel %vm5675_vm5, %v5664_v11, %v5135_v49  ;;  %v6516_v49 = vld [vmem:[%s6779_s16 + $0x68] sm:$0xff]  ;;  %v10443_v30 = vld [vmem:[#allocation8_spill] sm:$0xff] }
 0x581   : > { %v5682_v55 = vsel %vm5675_vm5, %v5665_v2, %v5136_v29  ;;  %v5797_v40 = vsel %vm5675_vm5, %v5781_v20, %v5519_v10  ;;  %v5798_v0 = vsel %vm5675_vm5, %v5782_v7, %v5520_v52  ;;  %v5698_v15 = vsel %vm5692_vm7, %v5681_v26, %v5183_v58  ;;  %v10428_v29 = vld [vmem:[#allocation10_spill] sm:$0xff]  ;;  %v10452_v11 = vld [vmem:[#allocation9_spill] sm:$0xff] }
 0x582   : > { %v5699_v53 = vsel %vm5692_vm7, %v5682_v55, %v5184_v37  ;;  %v5813_v31 = vsel %vm5692_vm7, %v5797_v40, %v5567_v63  ;;  %v5814_v34 = vsel %vm5692_vm7, %v5798_v0, %v5568_v8  ;;  %v5715_v28 = vsel %vm2187_vm10, %v5698_v15, %v5231_v6 }
 0x583   : > { %v5716_v33 = vsel %vm2187_vm10, %v5699_v53, %v5232_v57  ;;  %v5829_v16 = vsel %vm2187_vm10, %v5813_v31, %v5615_v39  ;;  %v5830_v38 = vsel %vm2187_vm10, %v5814_v34, %v5616_v25  ;;  %v5732_v22 = vsel %vm5726_vm8, %v5715_v28, %v5279_v62  ;;  %v10437_v57 = vld [vmem:[#allocation15_spill] sm:$0xff] }
 0x584   : > { %v5733_v47 = vsel %vm5726_vm8, %v5716_v33, %v5280_v5  ;;  %v5845_v14 = vsel %vm5726_vm8, %v5829_v16, %v5007_v19  ;;  %v5846_v18 = vsel %vm5726_vm8, %v5830_v38, %v5008_v17  ;;  %v5749_v43 = vsel %vm5743_vm9, %v5732_v22, %v5327_v9  ;;  %v10458_v38 = vld [vmem:[#allocation14_spill] sm:$0xff] }
 0x585   : > { %v5750_v13 = vsel %vm5743_vm9, %v5733_v47, %v5328_v32  ;;  %v5861_v1 = vsel %vm5743_vm9, %v5845_v14, %v8288_v46  ;;  %v5862_v23 = vsel %vm5743_vm9, %v5846_v18, %v8290_v56  ;;  %v5882_v48 = vadd.f32 %v6513_v60, %v5749_v43  ;;  %v10430_v46 = vld [vmem:[#allocation16_spill] sm:$0xff]  ;;  %v10432_v56 = vld [vmem:[#allocation17_spill] sm:$0xff] }
 0x586   : > { %v5883_v35 = vadd.f32 %v6514_v59, %v5861_v1  ;;  %v5884_v51 = vadd.f32 %v6515_v44, %v5750_v13  ;;  %v5885_v19 = vadd.f32 %v6516_v49, %v5862_v23  ;;  %v8467_v17 = vadd.f32 %v8269_v41, %v8292_v54 }
 0x587   : > { %v8471_v58 = vadd.f32 %v10428_v29, %v8294_v4  ;;  %v8474_v37 = vmul.f32 0.53333336, %v10430_v46  ;;  %v8477_v6 = vmul.f32 0.53333336, %v10432_v56  ;;  %5914 = vst.msk [vmem:[%s8479_s14 + $0x50] sm:$0xff] %vm2475_vm2, %v5882_v48  ;;  %v10436_v4 = vld [vmem:[#allocation11_spill] sm:$0xff]  ;;  %v8514_v50 = vadd.f32 %v10444_v36, %v10443_v30 }
 0x588   : > { %10427 = vst [vmem:[#allocation20_spill] sm:$0xff] %v8467_v17  ;;  %5915 = vst.msk [vmem:[%s8479_s14 + $0x58] sm:$0xff] %vm2475_vm2, %v5883_v35  ;;  %v8490_v41 = vmul.f32 0.46666667, %v10430_v46  ;;  %v8493_v54 = vmul.f32 0.46666667, %v10432_v56 }
 0x589   : > { %10429 = vst [vmem:[#allocation10_spill] sm:$0xff] %v8471_v58  ;;  %10431 = vst [vmem:[#allocation21_spill] sm:$0xff] %v8474_v37  ;;  %v10438_v62 = vrot.slane %v10437_v57, 1  ;;  %v8501_v9 = vmul.f32 0.06666667, %v10430_v46  ;;  %v10467_v49 = vrot.slane %v10458_v38, 1 }
 0x58a   : > { %10433 = vst [vmem:[#allocation22_spill] sm:$0xff] %v8477_v6  ;;  %5916 = vst.msk [vmem:[%s8479_s14 + $0x60] sm:$0xff] %vm2475_vm2, %v5884_v51  ;;  %v8504_v32 = vmul.f32 0.53333336, %v8467_v17  ;;  %v8507_v42 = vmul.f32 0.53333336, %v8471_v58 }
 0x58b   : > { %5917 = vst.msk [vmem:[%s8479_s14 + $0x68] sm:$0xff] %vm2475_vm2, %v5885_v19  ;;  %10434 = vst [vmem:[#allocation23_spill] sm:$0xff] %v8490_v41  ;;  %v8498_v5 = vadd.f32 %v10438_v62, %v10436_v4  ;;  %v8510_v12 = vmul.f32 0.46666667, %v8467_v17  ;;  %v8517_v21 = vmul.f32 0.46666667, %v8471_v58 }
 0x58c   : > { %10435 = vst [vmem:[#allocation24_spill] sm:$0xff] %v8493_v54  ;;  %10440 = vst [vmem:[#allocation26_spill] sm:$0xff] %v8504_v32  ;;  %v3949_v10 = vrot.slane %v8490_v41, 1  ;;  %v3950_v52 = vrot.slane %v8493_v54, 1  ;;  %v8522_v63 = vmul.f32 0.06666667, %v10432_v56 }
 0x58d   : > { %10439 = vst [vmem:[#allocation25_spill] sm:$0xff] %v8498_v5  ;;  %10441 = vst [vmem:[#allocation27_spill] sm:$0xff] %v8507_v42  ;;  %v3951_v8 = vrot.slane %v8510_v12, 1  ;;  %v8526_v39 = vmul.f32 0.06666667, %v8467_v17  ;;  %v4907_v3 = vrot.slane %v8501_v9, 1 }
 0x58e   : > { %10442 = vst [vmem:[#allocation28_spill] sm:$0xff] %v8510_v12  ;;  %10445 = vst [vmem:[#allocation8_spill] sm:$0xff] %v8514_v50  ;;  %v8529_v25 = vmul.f32 0.06666667, %v8471_v58  ;;  %v3952_v61 = vrot.slane %v8517_v21, 1  ;;  %v8534_v27 = vadd.f32 %v3949_v10, %v8474_v37  ;;  %v8537_v24 = vadd.f32 %v3950_v52, %v8477_v6 }
 0x58f   : > { %10446 = vst [vmem:[#allocation18_spill] sm:$0xff] %v8517_v21  ;;  %10447 = vst [vmem:[#allocation29_spill] sm:$0xff] %v8522_v63  ;;  %v4010_v2 = vmul.f32 0.93333334, %v10452_v11  ;;  %v8541_v20 = vadd.f32 %v3951_v8, %v8504_v32  ;;  %v4011_v7 = vmul.f32 0.93333334, %v10430_v46 }
 0x590   : > { %10448 = vst [vmem:[#allocation30_spill] sm:$0xff] %v8526_v39  ;;  %10449 = vst [vmem:[#allocation31_spill] sm:$0xff] %v8529_v25  ;;  %v8545_v26 = vmul.f32 0.93333334, %v10432_v56  ;;  %v8548_v55 = vmul.f32 0.93333334, %v8467_v17  ;;  %v8551_v40 = vadd.f32 %v3952_v61, %v8507_v42 }
 0x591   : > { %10450 = vst [vmem:[#allocation32_spill] sm:$0xff] %v8534_v27  ;;  %10451 = vst [vmem:[#allocation33_spill] sm:$0xff] %v8537_v24  ;;  %v8554_v0 = vmul.f32 0.93333334, %v8471_v58  ;;  %v4042_v15 = vrot.slane %v4010_v2, 1  ;;  %v4043_v31 = vrot.slane %v4011_v7, 1  ;;  %v8609_v19 = vadd.f32 %v10467_v49, %v4010_v2 }
 0x592   : > { %10453 = vst [vmem:[#allocation34_spill] sm:$0xff] %v8541_v20  ;;  %10454 = vst [vmem:[#allocation35_spill] sm:$0xff] %v8545_v26  ;;  %v8557_v53 = vmul.f32 0.6, %v10452_v11  ;;  %v4044_v34 = vrot.slane %v8545_v26, 1  ;;  %v4045_v28 = vrot.slane %v8548_v55, 1 }
 0x593   : > { %10455 = vst [vmem:[#allocation36_spill] sm:$0xff] %v8548_v55  ;;  %10456 = vst [vmem:[#allocation37_spill] sm:$0xff] %v8551_v40  ;;  %v8562_v33 = vmul.f32 0.6, %v10430_v46  ;;  %v4046_v16 = vrot.slane %v8554_v0, 1  ;;  %v8566_v22 = vadd.f32 %v4042_v15, %v10458_v38  ;;  %v8575_v18 = vadd.f32 %v4043_v31, %v8501_v9 }
 0x594   : > { %10457 = vst [vmem:[#allocation38_spill] sm:$0xff] %v8554_v0  ;;  %v8569_v47 = vmul.f32 0.6, %v10432_v56  ;;  %v8572_v14 = vmul.f32 0.6, %v8467_v17  ;;  %v8578_v43 = vadd.f32 %v4044_v34, %v8522_v63  ;;  %v8581_v13 = vadd.f32 %v4045_v28, %v8526_v39  ;;  %10468 = vst [vmem:[#allocation46_spill] sm:$0xff] %v8609_v19 }
 0x595   : > { %10459 = vst [vmem:[#allocation14_spill] sm:$0xff] %v8566_v22  ;;  %10460 = vst [vmem:[#allocation39_spill] sm:$0xff] %v8575_v18  ;;  %v8584_v1 = vmul.f32 0.6, %v8471_v58  ;;  %v8587_v23 = vadd.f32 %v4046_v16, %v8529_v25  ;;  %v8590_v60 = vmul.f32 0.4, %v10452_v11 }
 0x596   : > { %10461 = vst [vmem:[#allocation40_spill] sm:$0xff] %v8578_v43  ;;  %10462 = vst [vmem:[#allocation41_spill] sm:$0xff] %v8581_v13  ;;  %v8593_v48 = vmul.f32 0.4, %v10430_v46  ;;  %v8596_v59 = vmul.f32 0.4, %v10432_v56 }
 0x597   : > { %10463 = vst [vmem:[#allocation42_spill] sm:$0xff] %v8587_v23  ;;  %v8599_v35 = vmul.f32 0.4, %v8467_v17  ;;  %v8602_v44 = vmul.f32 0.4, %v8471_v58  ;;  %v4138_v29 = vrot.slane %v8590_v60, 1 }
 0x598   : > { %10464 = vst [vmem:[#allocation43_spill] sm:$0xff] %v8596_v59  ;;  %v8605_v51 = vmul.f32 0.13333334, %v10452_v11  ;;  %v4139_v62 = vrot.slane %v8593_v48, 1  ;;  %v4140_v9 = vrot.slane %v8596_v59, 1  ;;  %v10480_v22 = vld [vmem:[#allocation19_spill] sm:$0xff] }
 0x599   : > { %10465 = vst [vmem:[#allocation44_spill] sm:$0xff] %v8599_v35  ;;  %10466 = vst [vmem:[#allocation45_spill] sm:$0xff] %v8602_v44  ;;  %v8615_v36 = vmul.f32 0.13333334, %v10430_v46  ;;  %v4141_v10 = vrot.slane %v8599_v35, 1  ;;  %v4142_v52 = vrot.slane %v8602_v44, 1  ;;  %v8626_v2 = vadd.f32 %v4138_v29, %v8557_v53 }
 0x59a   : > { %v8620_v8 = vmul.f32 0.13333334, %v10432_v56  ;;  %v8623_v61 = vmul.f32 0.13333334, %v8467_v17  ;;  %v8629_v15 = vadd.f32 %v4139_v62, %v8562_v33  ;;  %v8632_v31 = vadd.f32 %v4140_v9, %v8569_v47 }
 0x59b   : > { %10469 = vst [vmem:[#allocation47_spill] sm:$0xff] %v8626_v2  ;;  %v8635_v34 = vmul.f32 0.13333334, %v8471_v58  ;;  %v8638_v28 = vadd.f32 %v4141_v10, %v8572_v14  ;;  %v8641_v16 = vadd.f32 %v4142_v52, %v8584_v1  ;;  %v8644_v38 = vmul.f32 0.8666667, %v10452_v11 }
 0x59c   : > { %10470 = vst [vmem:[#allocation48_spill] sm:$0xff] %v8629_v15  ;;  %10471 = vst [vmem:[#allocation49_spill] sm:$0xff] %v8632_v31  ;;  %v8647_v49 = vmul.f32 0.8666667, %v10430_v46  ;;  %v8650_v29 = vmul.f32 0.8666667, %v10432_v56  ;;  %v8658_v10 = vadd.f32 %v4907_v3, %v4011_v7 }
 0x59d   : > { %10472 = vst [vmem:[#allocation50_spill] sm:$0xff] %v8638_v28  ;;  %10473 = vst [vmem:[#allocation51_spill] sm:$0xff] %v8641_v16  ;;  %v8653_v62 = vmul.f32 0.8666667, %v8467_v17  ;;  %v8656_v9 = vmul.f32 0.8666667, %v8471_v58 }
 0x59e   : > { %10474 = vst [vmem:[#allocation52_spill] sm:$0xff] %v8658_v10  ;;  %v4234_v52 = vrot.slane %v8644_v38, 1  ;;  %v4235_v50 = vrot.slane %v8647_v49, 1  ;;  %v4282_v19 = vmul.f32 0.6666667, %v10452_v11  ;;  %v4236_v28 = vrot.slane %v8650_v29, 1 }
 0x59f   : > { %v8664_v16 = vmul.f32 0.6666667, %v10430_v46  ;;  %v4237_v31 = vrot.slane %v8653_v62, 1  ;;  %v4238_v15 = vrot.slane %v8656_v9, 1  ;;  %v8670_v2 = vmul.f32 0.6666667, %v10432_v56 }
 0x5a0   : > { %v8673_v3 = vadd.f32 %v4234_v52, %v8605_v51  ;;  %v8676_v7 = vadd.f32 %v4235_v50, %v8615_v36  ;;  %v8679_v10 = vmul.f32 0.6666667, %v8467_v17  ;;  %v8682_v23 = vmul.f32 0.6666667, %v8471_v58 }
 0x5a1   : > { %v8685_v13 = vadd.f32 %v4236_v28, %v8620_v8  ;;  %v8688_v43 = vadd.f32 %v4237_v31, %v8623_v61  ;;  %v8691_v18 = vadd.f32 %v4238_v15, %v8635_v34  ;;  %v4298_v52 = vmul.f32 0.33333334, %v10452_v11 }
 0x5a2   : > { %10475 = vst [vmem:[#allocation53_spill] sm:$0xff] %v8673_v3  ;;  %10476 = vst [vmem:[#allocation54_spill] sm:$0xff] %v8676_v7  ;;  %v8695_v50 = vmul.f32 0.33333334, %v10430_v46  ;;  %v8698_v7 = vmul.f32 0.33333334, %v10432_v56  ;;  %v8705_v28 = vadd.f32 %v10443_v30, %v10480_v22 }
 0x5a3   : > { %10477 = vst [vmem:[#allocation55_spill] sm:$0xff] %v8685_v13  ;;  %10478 = vst [vmem:[#allocation56_spill] sm:$0xff] %v8688_v43  ;;  %v8701_v3 = vmul.f32 0.33333334, %v8467_v17  ;;  %v8708_v31 = vmul.f32 0.33333334, %v8471_v58 }
 0x5a4   : > { %10479 = vst [vmem:[#allocation57_spill] sm:$0xff] %v8691_v18  ;;  %10481 = vst [vmem:[#allocation19_spill] sm:$0xff] %v8705_v28  ;;  %v4330_v15 = vrot.slane %v4298_v52, 1  ;;  %v8711_v18 = vmul.f32 0.2, %v10452_v11  ;;  %v4714_v43 = vrot.slane %v4282_v19, 1 }
 0x5a5   : > { %v4331_v13 = vrot.slane %v8695_v50, 1  ;;  %v4332_v40 = vrot.slane %v8698_v7, 1  ;;  %v4333_v20 = vrot.slane %v8701_v3, 1  ;;  %v8717_v21 = vmul.f32 0.2, %v10430_v46 }
 0x5a6   : > { %v4334_v22 = vrot.slane %v8708_v31, 1  ;;  %v8720_v28 = vadd.f32 %v4330_v15, %v4282_v19  ;;  %v8723_v24 = vmul.f32 0.2, %v10432_v56  ;;  %v8726_v27 = vmul.f32 0.2, %v8467_v17 }
 0x5a7   : > { %v8729_v12 = vadd.f32 %v4331_v13, %v8664_v16  ;;  %v8732_v54 = vadd.f32 %v4332_v40, %v8670_v2  ;;  %v8735_v5 = vadd.f32 %v4333_v20, %v8679_v10  ;;  %v8738_v41 = vmul.f32 0.2, %v8471_v58 }
 0x5a8   : > { %10482 = vst [vmem:[#allocation58_spill] sm:$0xff] %v8720_v28  ;;  %v8741_v19 = vadd.f32 %v4334_v22, %v8682_v23  ;;  %v4394_v15 = vmul.f32 0.8, %v10452_v11  ;;  %v4395_v28 = vmul.f32 0.8, %v10430_v46  ;;  %v8749_v20 = vadd.f32 %v4714_v43, %v4298_v52 }
 0x5a9   : > { %10483 = vst [vmem:[#allocation59_spill] sm:$0xff] %v8729_v12  ;;  %10484 = vst [vmem:[#allocation60_spill] sm:$0xff] %v8732_v54  ;;  %v4396_v57 = vmul.f32 0.8, %v10432_v56  ;;  %v4397_v13 = vmul.f32 0.8, %v8467_v17 }
 0x5aa   : > { %10485 = vst [vmem:[#allocation61_spill] sm:$0xff] %v8735_v5  ;;  %10486 = vst [vmem:[#allocation62_spill] sm:$0xff] %v8741_v19  ;;  %v4398_v40 = vmul.f32 0.8, %v8471_v58  ;;  %v4474_v54 = vmul.f32 0.73333335, %v10452_v11 }
 0x5ab   : > { %10487 = vst [vmem:[#allocation63_spill] sm:$0xff] %v8749_v20  ;;  %v4426_v5 = vrot.slane %v4394_v15, 1  ;;  %v4427_v12 = vrot.slane %v4395_v28, 1  ;;  %v4428_v42 = vrot.slane %v4396_v57, 1  ;;  %v4475_v22 = vmul.f32 0.73333335, %v10430_v46 }
 0x5ac   : > { %v4429_v19 = vrot.slane %v4397_v13, 1  ;;  %v4430_v32 = vrot.slane %v4398_v40, 1  ;;  %v4476_v6 = vmul.f32 0.73333335, %v10432_v56  ;;  %v4477_v0 = vmul.f32 0.73333335, %v8467_v17 }
 0x5ad   : > { %v8755_v55 = vadd.f32 %v4426_v5, %v8711_v18  ;;  %v8758_v37 = vadd.f32 %v4427_v12, %v8717_v21  ;;  %v8761_v43 = vadd.f32 %v4428_v42, %v8723_v24  ;;  %v4478_v52 = vmul.f32 0.73333335, %v8471_v58 }
 0x5ae   : > { %v8765_v20 = vadd.f32 %v4429_v19, %v8726_v27  ;;  %v8768_v4 = vadd.f32 %v4430_v32, %v8738_v41  ;;  %v4490_v26 = vmul.f32 0.26666668, %v10452_v11  ;;  %v4491_v44 = vmul.f32 0.26666668, %v10430_v46 }
 0x5af   : > { %10488 = vst [vmem:[#allocation64_spill] sm:$0xff] %v8755_v55  ;;  %10489 = vst [vmem:[#allocation65_spill] sm:$0xff] %v8758_v37  ;;  %v4492_v5 = vmul.f32 0.26666668, %v10432_v56  ;;  %v4493_v12 = vmul.f32 0.26666668, %v8467_v17  ;;  %v8777_v42 = vadd.f32 %v8399_v45, %v10443_v30 }
 0x5b0   : > { %10490 = vst [vmem:[#allocation66_spill] sm:$0xff] %v8761_v43  ;;  %10491 = vst [vmem:[#allocation67_spill] sm:$0xff] %v8765_v20  ;;  %v4494_v37 = vmul.f32 0.26666668, %v8471_v58  ;;  %v4522_v43 = vrot.slane %v4490_v26, 1  ;;  %v4523_v19 = vrot.slane %v4491_v44, 1 }
 0x5b1   : > { %10492 = vst [vmem:[#allocation68_spill] sm:$0xff] %v8768_v4  ;;  %10493 = vst [vmem:[#allocation69_spill] sm:$0xff] %v8777_v42  ;;  %v4586_v20 = vrot.slane %v4474_v54, 1  ;;  %v4587_v55 = vrot.slane %v4475_v22, 1  ;;  %v4524_v32 = vrot.slane %v4492_v5, 1  ;;  %v4525_v4 = vrot.slane %v4493_v12, 1 }
 0x5b2   : > { %v4526_v25 = vrot.slane %v4494_v37, 1  ;;  %v4588_v11 = vrot.slane %v4476_v6, 1  ;;  %v8779_v39 = vadd.f32 %v4522_v43, %v4474_v54  ;;  %v8781_v46 = vadd.f32 %v4523_v19, %v4475_v22  ;;  %v8799_v22 = vpop.f32.mrb[27].mxu1  ;;  %v10509_v19 = vld [vmem:[#allocation21_spill] sm:$0xff] }
 0x5b3   : > { %v4589_v56 = vrot.slane %v4477_v0, 1  ;;  %v4590_v17 = vrot.slane %v4478_v52, 1  ;;  %v8783_v35 = vadd.f32 %v4524_v32, %v4476_v6  ;;  %v8785_v58 = vadd.f32 %v4525_v4, %v4477_v0  ;;  %10500 = vst [vmem:[#allocation76_spill] sm:$0xff] %v8799_v22 }
 0x5b4   : > { %v8787_v45 = vadd.f32 %v4526_v25, %v4478_v52  ;;  %v8789_v30 = vadd.f32 %v4586_v20, %v4490_v26  ;;  %v8791_v42 = vadd.f32 %v4587_v55, %v4491_v44  ;;  %v8793_v59 = vadd.f32 %v4588_v11, %v4492_v5  ;;  %v10505_v20 = vld [vmem:[#allocation31_spill] sm:$0xff]  ;;  %v10506_v52 = vld [vmem:[#allocation45_spill] sm:$0xff] }
 0x5b5   : > { %v8795_v63 = vadd.f32 %v4589_v56, %v4493_v12  ;;  %v8797_v54 = vadd.f32 %v4590_v17, %v4494_v37  ;;  %v4650_v43 = vrot.slane %v8711_v18, 1  ;;  %v4651_v6 = vrot.slane %v8717_v21, 1 }
 0x5b6   : > { %10494 = vst [vmem:[#allocation70_spill] sm:$0xff] %v8787_v45  ;;  %10495 = vst [vmem:[#allocation71_spill] sm:$0xff] %v8789_v30  ;;  %v4652_v4 = vrot.slane %v8723_v24, 1  ;;  %v4653_v25 = vrot.slane %v8726_v27, 1  ;;  %v4654_v26 = vrot.slane %v8738_v41, 1  ;;  %v4715_v55 = vrot.slane %v8664_v16, 1 }
 0x5b7   : > { %10496 = vst [vmem:[#allocation72_spill] sm:$0xff] %v8791_v42  ;;  %10497 = vst [vmem:[#allocation73_spill] sm:$0xff] %v8793_v59  ;;  %v4716_v11 = vrot.slane %v8670_v2, 1  ;;  %v4717_v56 = vrot.slane %v8679_v10, 1  ;;  %v8809_v17 = vadd.f32 %v4650_v43, %v4394_v15  ;;  %v8811_v37 = vadd.f32 %v4651_v6, %v4395_v28  ;;  %v10502_v15 = vld [vmem:[#allocation43_spill] sm:$0xff]  ;;  %v10510_v43 = vld [vmem:[#allocation36_spill] sm:$0xff] }
 0x5b8   : > { %10498 = vst [vmem:[#allocation74_spill] sm:$0xff] %v8795_v63  ;;  %10499 = vst [vmem:[#allocation75_spill] sm:$0xff] %v8797_v54  ;;  %v8813_v0 = vadd.f32 %v4652_v4, %v4396_v57  ;;  %v8815_v18 = vadd.f32 %v4653_v25, %v4397_v13  ;;  %v8817_v21 = vadd.f32 %v4654_v26, %v4398_v40  ;;  %v4718_v27 = vrot.slane %v8682_v23, 1  ;;  %v10503_v13 = vld [vmem:[#allocation44_spill] sm:$0xff]  ;;  %v10504_v40 = vld [vmem:[#allocation30_spill] sm:$0xff] }
 0x5b9   : > { %v8821_v41 = vadd.f32 %v4715_v55, %v8695_v50  ;;  %v8824_v24 = vadd.f32 %v4716_v11, %v8698_v7  ;;  %v8827_v44 = vadd.f32 %v4717_v56, %v8701_v3  ;;  %v4778_v2 = vrot.slane %v8605_v51, 1  ;;  %v10511_v4 = vld [vmem:[#allocation38_spill] sm:$0xff]  ;;  %v10555_v45 = vld [vmem:[#allocation63_spill] sm:$0xff]  ;;  %v10557_v63 = vld [vmem:[#allocation52_spill] sm:$0xff] }
 0x5ba   : > { %v4779_v57 = vrot.slane %v8615_v36, 1  ;;  %v4780_v16 = vrot.slane %v8620_v8, 1  ;;  %v8833_v10 = vadd.f32 %v4718_v27, %v8708_v31  ;;  %v4781_v23 = vrot.slane %v8623_v61, 1  ;;  %v10501_v31 = vld [vmem:[#allocation29_spill] sm:$0xff]  ;;  %v10512_v26 = vld [vmem:[#allocation22_spill] sm:$0xff]  ;;  %v10514_v27 = vld [vmem:[#allocation27_spill] sm:$0xff] }
 0x5bb   : > { %v4782_v50 = vrot.slane %v8635_v34, 1  ;;  %v4842_v28 = vrot.slane %v8557_v53, 1  ;;  %v8839_v7 = vadd.f32 %v4778_v2, %v8644_v38  ;;  %v4843_v36 = vrot.slane %v8562_v33, 1  ;;  %v10513_v11 = vld [vmem:[#allocation26_spill] sm:$0xff]  ;;  %v10559_v59 = vld [vmem:[#allocation9_spill] sm:$0xff] }
 0x5bc   : > { %v8842_v3 = vadd.f32 %v4779_v57, %v8647_v49  ;;  %v8845_v51 = vadd.f32 %v4780_v16, %v8650_v29  ;;  %v8849_v8 = vadd.f32 %v4781_v23, %v8653_v62  ;;  %v4844_v34 = vrot.slane %v8569_v47, 1  ;;  %v10515_v57 = vld [vmem:[#allocation15_spill] sm:$0xff]  ;;  %v10552_v22 = vld [vmem:[#allocation66_spill] sm:$0xff]  ;;  %v10563_v42 = vld [vmem:[#allocation17_spill] sm:$0xff] }
 0x5bd   : > { %v8852_v61 = vadd.f32 %v4782_v50, %v8656_v9  ;;  %v4845_v53 = vrot.slane %v8572_v14, 1  ;;  %v4846_v38 = vrot.slane %v8584_v1, 1  ;;  %v8858_v49 = vadd.f32 %v4842_v28, %v8590_v60  ;;  %v10507_v60 = vld [vmem:[#allocation35_spill] sm:$0xff]  ;;  %v10519_v28 = vld [vmem:[#allocation25_spill] sm:$0xff]  ;;  %v10556_v54 = vld [vmem:[#allocation46_spill] sm:$0xff] }
 0x5be   : > { %v8861_v29 = vadd.f32 %v4843_v36, %v8593_v48  ;;  %v4908_v33 = vrot.slane %v10501_v31, 1  ;;  %v8865_v62 = vadd.f32 %v4844_v34, %v10502_v15  ;;  %v4909_v47 = vrot.slane %v10504_v40, 1  ;;  %v10508_v48 = vld [vmem:[#allocation11_spill] sm:$0xff]  ;;  %v10520_v34 = vld [vmem:[#allocation24_spill] sm:$0xff]  ;;  %v10549_v40 = vld [vmem:[#allocation62_spill] sm:$0xff] }
 0x5bf   : > { %v8868_v9 = vadd.f32 %v4845_v53, %v10503_v13  ;;  %v4910_v14 = vrot.slane %v10505_v20, 1  ;;  %v8873_v1 = vadd.f32 %v4846_v38, %v10506_v52  ;;  %v4970_v12 = vrot.slane %v10508_v48, 1  ;;  %v10517_v23 = vld [vmem:[#allocation23_spill] sm:$0xff]  ;;  %v10522_v38 = vld [vmem:[#allocation28_spill] sm:$0xff]  ;;  %v10525_v13 = vld [vmem:[#allocation33_spill] sm:$0xff] }
 0x5c0   : > { %v8876_v5 = vadd.f32 %v4908_v33, %v10507_v60  ;;  %v4971_v32 = vrot.slane %v10509_v19, 1  ;;  %v8881_v6 = vadd.f32 %v4909_v47, %v10510_v43  ;;  %v4972_v55 = vrot.slane %v10512_v26, 1  ;;  %v10524_v33 = vld [vmem:[#allocation32_spill] sm:$0xff]  ;;  %v10526_v47 = vld [vmem:[#allocation18_spill] sm:$0xff]  ;;  %v10529_v60 = vld [vmem:[#allocation37_spill] sm:$0xff] }
 0x5c1   : > { %v8884_v25 = vadd.f32 %v4910_v14, %v10511_v4  ;;  %v4973_v56 = vrot.slane %v10513_v11, 1  ;;  %v4974_v2 = vrot.slane %v10514_v27, 1  ;;  %v8890_v16 = vadd.f32 %v4970_v12, %v10515_v57  ;;  %v10528_v14 = vld [vmem:[#allocation34_spill] sm:$0xff]  ;;  %v10532_v4 = vld [vmem:[#allocation40_spill] sm:$0xff]  ;;  %v10535_v57 = vld [vmem:[#allocation47_spill] sm:$0xff] }
 0x5c2   : > { %v8893_v50 = vadd.f32 %v4971_v32, %v10517_v23  ;;  %v8897_v53 = vadd.f32 %v4972_v55, %v10520_v34  ;;  %v10530_v12 = vld [vmem:[#allocation14_spill] sm:$0xff]  ;;  %v10531_v32 = vld [vmem:[#allocation39_spill] sm:$0xff]  ;;  %v10533_v55 = vld [vmem:[#allocation41_spill] sm:$0xff]  ;;  %v5418_v23 = vrot.slane %v8809_v17, 3  ;;  %v5421_v52 = vrot.slane %v8815_v18, 3 }
 0x5c3   : > { %10516 = vst [vmem:[#allocation29_spill] sm:$0xff] %v8890_v16  ;;  %v8900_v31 = vadd.f32 %v4973_v56, %v10522_v38  ;;  %v8905_v20 = vadd.f32 %v4974_v2, %v10526_v47  ;;  %v10534_v56 = vld [vmem:[#allocation42_spill] sm:$0xff]  ;;  %v10546_v16 = vld [vmem:[#allocation59_spill] sm:$0xff]  ;;  %v10547_v34 = vld [vmem:[#allocation60_spill] sm:$0xff]  ;;  %v5419_v38 = vrot.slane %v8811_v37, 3  ;;  %v5420_v47 = vrot.slane %v8813_v0, 3 }
 0x5c4   : > { %10518 = vst [vmem:[#allocation43_spill] sm:$0xff] %v8893_v50  ;;  %10521 = vst [vmem:[#allocation44_spill] sm:$0xff] %v8897_v53  ;;  %v10544_v53 = vld [vmem:[#allocation57_spill] sm:$0xff]  ;;  %v10545_v50 = vld [vmem:[#allocation58_spill] sm:$0xff]  ;;  %v5422_v48 = vrot.slane %v8817_v21, 3  ;;  %v5466_v19 = vrot.slane %v10555_v45, 2 }
 0x5c5   : > { %10523 = vst [vmem:[#allocation30_spill] sm:$0xff] %v8900_v31  ;;  %10527 = vst [vmem:[#allocation31_spill] sm:$0xff] %v8905_v20  ;;  %v10548_v2 = vld [vmem:[#allocation61_spill] sm:$0xff]  ;;  %v10550_v15 = vld [vmem:[#allocation64_spill] sm:$0xff]  ;;  %v5467_v43 = vrot.slane %v8821_v41, 2  ;;  %v5468_v26 = vrot.slane %v8824_v24, 2 }
 0x5c6   : > { %v10551_v36 = vld [vmem:[#allocation65_spill] sm:$0xff]  ;;  %v10553_v20 = vld [vmem:[#allocation67_spill] sm:$0xff]  ;;  %v10554_v31 = vld [vmem:[#allocation68_spill] sm:$0xff]  ;;  %v5469_v11 = vrot.slane %v8827_v44, 2  ;;  %v5470_v27 = vrot.slane %v8833_v10, 2  ;;  %v5514_v17 = vrot.slane %v8839_v7, 2 }
 0x5c7   : > { %v5515_v37 = vrot.slane %v8842_v3, 2  ;;  %v5516_v0 = vrot.slane %v8845_v51, 2  ;;  %v5517_v18 = vrot.slane %v8849_v8, 2  ;;  %v5518_v21 = vrot.slane %v8852_v61, 2  ;;  %v10567_v30 = vld [vmem:[#allocation10_spill] sm:$0xff] }
 0x5c8   : > { %v5562_v45 = vrot.slane %v8858_v49, 1  ;;  %v5563_v41 = vrot.slane %v8861_v29, 1  ;;  %v5564_v24 = vrot.slane %v8865_v62, 1  ;;  %v5565_v44 = vrot.slane %v8868_v9, 1  ;;  %v10561_v9 = vld [vmem:[#allocation16_spill] sm:$0xff] }
 0x5c9   : > { %v5566_v10 = vrot.slane %v8873_v1, 1  ;;  %v5610_v7 = vrot.slane %v10556_v54, 1  ;;  %v5611_v3 = vrot.slane %v10557_v63, 1  ;;  %v5612_v51 = vrot.slane %v8876_v5, 1 }
 0x5ca   : > { %v5613_v8 = vrot.slane %v8881_v6, 1  ;;  %v5614_v61 = vrot.slane %v8884_v25, 1  ;;  %v10558_v49 = vrot.slane %v10519_v28, 7  ;;  %v10560_v62 = vrot.slane %v10524_v33, 7  ;;  %v10565_v6 = vld [vmem:[#allocation20_spill] sm:$0xff] }
 0x5cb   : > { %v10562_v54 = vrot.slane %v10525_v13, 7  ;;  %v10564_v5 = vrot.slane %v10528_v14, 7  ;;  %v10566_v28 = vrot.slane %v10529_v60, 7  ;;  %v10568_v33 = vrot.slane %v10530_v12, 6 }
 0x5cc   : > { %v5642_v29 = vsel %vm1125_vm6, %v10559_v59, %v10558_v49  ;;  %v5643_v1 = vsel %vm1125_vm6, %v10561_v9, %v10560_v62  ;;  %v10569_v62 = vrot.slane %v10531_v32, 6  ;;  %v10572_v60 = vrot.slane %v10534_v56, 6 }
 0x5cd   : > { %v5644_v63 = vsel %vm1125_vm6, %v10563_v42, %v10562_v54  ;;  %v5645_v25 = vsel %vm1125_vm6, %v10565_v6, %v10564_v5  ;;  %v5646_v49 = vsel %vm1125_vm6, %v10567_v30, %v10566_v28  ;;  %v5659_v59 = vsel %vm5658_vm4, %v5642_v29, %v10568_v33  ;;  %v10574_v33 = vld [vmem:[#allocation48_spill] sm:$0xff] }
 0x5ce   : > { %v5660_v13 = vsel %vm5658_vm4, %v5643_v1, %v10569_v62  ;;  %v10570_v54 = vrot.slane %v10532_v4, 6  ;;  %v10571_v42 = vrot.slane %v10533_v55, 6  ;;  %v5663_v28 = vsel %vm5658_vm4, %v5646_v49, %v10572_v60  ;;  %v10576_v62 = vld [vmem:[#allocation49_spill] sm:$0xff] }
 0x5cf   : > { %v10573_v12 = vrot.slane %v10535_v57, 6  ;;  %v10575_v32 = vrot.slane %v10574_v33, 6  ;;  %v10577_v4 = vrot.slane %v10576_v62, 6  ;;  %v10582_v60 = vld [vmem:[#allocation53_spill] sm:$0xff] }
 0x5d0   : > { %v5661_v14 = vsel %vm5658_vm4, %v5644_v63, %v10570_v54  ;;  %v5662_v5 = vsel %vm5658_vm4, %v5645_v25, %v10571_v42  ;;  %v10578_v54 = vld [vmem:[#allocation50_spill] sm:$0xff]  ;;  %v10580_v25 = vld [vmem:[#allocation51_spill] sm:$0xff]  ;;  %v10583_v57 = vrot.slane %v10582_v60, 5  ;;  %v10593_v60 = vrot.slane %v10547_v34, 5 }
 0x5d1   : > { %v5676_v29 = vsel %vm5675_vm5, %v5659_v59, %v10573_v12  ;;  %v5677_v1 = vsel %vm5675_vm5, %v5660_v13, %v10575_v32  ;;  %v5678_v63 = vsel %vm5675_vm5, %v5661_v14, %v10577_v4  ;;  %v10579_v55 = vrot.slane %v10578_v54, 6  ;;  %v10584_v12 = vld [vmem:[#allocation54_spill] sm:$0xff]  ;;  %v10586_v32 = vld [vmem:[#allocation55_spill] sm:$0xff]  ;;  %v10588_v4 = vld [vmem:[#allocation56_spill] sm:$0xff] }
 0x5d2   : > { %v10581_v56 = vrot.slane %v10580_v25, 6  ;;  %v5693_v59 = vsel %vm5692_vm7, %v5676_v29, %v10583_v57  ;;  %v10585_v33 = vrot.slane %v10584_v12, 5  ;;  %v10587_v62 = vrot.slane %v10586_v32, 5 }
 0x5d3   : > { %v5679_v42 = vsel %vm5675_vm5, %v5662_v5, %v10579_v55  ;;  %v10589_v54 = vrot.slane %v10588_v4, 5  ;;  %v10590_v55 = vrot.slane %v10544_v53, 5  ;;  %v10591_v25 = vrot.slane %v10545_v50, 5 }
 0x5d4   : > { %v5680_v49 = vsel %vm5675_vm5, %v5663_v28, %v10581_v56  ;;  %v5694_v13 = vsel %vm5692_vm7, %v5677_v1, %v10585_v33  ;;  %v5695_v14 = vsel %vm5692_vm7, %v5678_v63, %v10587_v62  ;;  %v10592_v56 = vrot.slane %v10546_v16, 5 }
 0x5d5   : > { %v5696_v5 = vsel %vm5692_vm7, %v5679_v42, %v10589_v54  ;;  %v5697_v28 = vsel %vm5692_vm7, %v5680_v49, %v10590_v55  ;;  %v5710_v29 = vsel %vm2187_vm10, %v5693_v59, %v10591_v25  ;;  %v5712_v63 = vsel %vm2187_vm10, %v5695_v14, %v10593_v60 }
 0x5d6   : > { %v5711_v1 = vsel %vm2187_vm10, %v5694_v13, %v10592_v56  ;;  %v10594_v57 = vrot.slane %v10548_v2, 5  ;;  %v10595_v53 = vrot.slane %v10549_v40, 5  ;;  %v10596_v50 = vrot.slane %v10550_v15, 4 }
 0x5d7   : > { %v10597_v16 = vrot.slane %v10551_v36, 4  ;;  %v10598_v34 = vrot.slane %v10552_v22, 4  ;;  %v10599_v2 = vrot.slane %v10553_v20, 4  ;;  %v10600_v40 = vrot.slane %v10554_v31, 4 }
 0x5d8   : > { %v5713_v42 = vsel %vm2187_vm10, %v5696_v5, %v10594_v57  ;;  %v5714_v49 = vsel %vm2187_vm10, %v5697_v28, %v10595_v53  ;;  %v5727_v59 = vsel %vm5726_vm8, %v5710_v29, %v10596_v50  ;;  %v10601_v15 = vrot.slane %v8779_v39, 4  ;;  %v10605_v5 = vld [vmem:[#allocation70_spill] sm:$0xff]  ;;  %v10607_v28 = vld [vmem:[#allocation71_spill] sm:$0xff]  ;;  %v10609_v29 = vld [vmem:[#allocation72_spill] sm:$0xff] }
 0x5d9   : > { %v5728_v12 = vsel %vm5726_vm8, %v5711_v1, %v10597_v16  ;;  %v5729_v33 = vsel %vm5726_vm8, %v5712_v63, %v10598_v34  ;;  %v5730_v13 = vsel %vm5726_vm8, %v5713_v42, %v10599_v2  ;;  %v5731_v32 = vsel %vm5726_vm8, %v5714_v49, %v10600_v40  ;;  %v10611_v1 = vld [vmem:[#allocation73_spill] sm:$0xff]  ;;  %v10613_v63 = vld [vmem:[#allocation74_spill] sm:$0xff]  ;;  %v10615_v42 = vld [vmem:[#allocation75_spill] sm:$0xff] }
 0x5da   : > { %v5744_v62 = vsel %vm5743_vm9, %v5727_v59, %v10601_v15  ;;  %v10602_v36 = vrot.slane %v8781_v46, 4  ;;  %v10603_v22 = vrot.slane %v8783_v35, 4  ;;  %v10604_v20 = vrot.slane %v8785_v58, 4  ;;  %v10622_v2 = vld [vmem:[#allocation9_spill] sm:$0xff] }
 0x5db   : > { %v10606_v31 = vrot.slane %v10605_v5, 4  ;;  %v10608_v39 = vrot.slane %v10607_v28, 3  ;;  %v10610_v46 = vrot.slane %v10609_v29, 3  ;;  %v10612_v35 = vrot.slane %v10611_v1, 3  ;;  %v10623_v40 = vld [vmem:[#allocation17_spill] sm:$0xff]  ;;  %v6519_v28 = vld [vmem:[%s6779_s16 + $0x10] sm:$0xff] }
 0x5dc   : > { %v5745_v14 = vsel %vm5743_vm9, %v5728_v12, %v10602_v36  ;;  %v5746_v4 = vsel %vm5743_vm9, %v5729_v33, %v10603_v22  ;;  %v5747_v54 = vsel %vm5743_vm9, %v5730_v13, %v10604_v20  ;;  %v10614_v58 = vrot.slane %v10613_v63, 3  ;;  %v10620_v33 = vld [vmem:[#allocation30_spill] sm:$0xff]  ;;  %v6517_v22 = vld [vmem:[%s6779_s16] sm:$0xff]  ;;  %v6518_v5 = vld [vmem:[%s6779_s16 + $0x8] sm:$0xff] }
 0x5dd   : > { %v5748_v55 = vsel %vm5743_vm9, %v5731_v32, %v10606_v31  ;;  %v5760_v25 = vsel %vm1125_vm6, %v10608_v39, %v5418_v23  ;;  %v5761_v56 = vsel %vm1125_vm6, %v10610_v46, %v5419_v38  ;;  %v5762_v60 = vsel %vm1125_vm6, %v10612_v35, %v5420_v47  ;;  %v6520_v39 = vld [vmem:[%s6779_s16 + $0x18] sm:$0xff]  ;;  %v6521_v29 = vld [vmem:[%s6779_s16 + $0x20] sm:$0xff]  ;;  %v6522_v46 = vld [vmem:[%s6779_s16 + $0x28] sm:$0xff] }
 0x5de   : > { %v5763_v57 = vsel %vm1125_vm6, %v10614_v58, %v5421_v52  ;;  %v10616_v53 = vrot.slane %v10615_v42, 3  ;;  %v5776_v50 = vsel %vm5658_vm4, %v5760_v25, %v5466_v19  ;;  %v5777_v23 = vsel %vm5658_vm4, %v5761_v56, %v5467_v43  ;;  %v6523_v56 = vld [vmem:[%s6779_s16 + $0x30] sm:$0xff]  ;;  %v6524_v1 = vld [vmem:[%s6779_s16 + $0x38] sm:$0xff]  ;;  %v6526_v63 = vld [vmem:[%s6779_s16 + $0x48] sm:$0xff] }
 0x5df   : > { %v5778_v59 = vsel %vm5658_vm4, %v5762_v60, %v5468_v26  ;;  %v5779_v38 = vsel %vm5658_vm4, %v5763_v57, %v5469_v11  ;;  %v5792_v47 = vsel %vm5675_vm5, %v5776_v50, %v5514_v17  ;;  %v5793_v12 = vsel %vm5675_vm5, %v5777_v23, %v5515_v37  ;;  %v6525_v60 = vld [vmem:[%s6779_s16 + $0x40] sm:$0xff] }
 0x5e0   : > { %v5764_v49 = vsel %vm1125_vm6, %v10616_v53, %v5422_v48  ;;  %v5794_v52 = vsel %vm5675_vm5, %v5778_v59, %v5516_v0  ;;  %v5795_v34 = vsel %vm5675_vm5, %v5779_v38, %v5517_v18  ;;  %v5808_v19 = vsel %vm5692_vm7, %v5792_v47, %v5562_v45  ;;  %v10617_v45 = vld [vmem:[#allocation29_spill] sm:$0xff]  ;;  %v10627_v53 = vld [vmem:[#allocation19_spill] sm:$0xff] }
 0x5e1   : > { %v5780_v16 = vsel %vm5658_vm4, %v5764_v49, %v5470_v27  ;;  %v5809_v43 = vsel %vm5692_vm7, %v5793_v12, %v5563_v41  ;;  %v5810_v26 = vsel %vm5692_vm7, %v5794_v52, %v5564_v24  ;;  %v5811_v11 = vsel %vm5692_vm7, %v5795_v34, %v5565_v44  ;;  %v10618_v24 = vld [vmem:[#allocation43_spill] sm:$0xff]  ;;  %v10630_v38 = vld [vmem:[#allocation69_spill] sm:$0xff]  ;;  %v10633_v12 = vld [vmem:[#allocation12_spill] sm:$0xff] }
 0x5e2   : > { %v5796_v48 = vsel %vm5675_vm5, %v5780_v16, %v5518_v21  ;;  %v5824_v17 = vsel %vm2187_vm10, %v5808_v19, %v5610_v7  ;;  %v5825_v37 = vsel %vm2187_vm10, %v5809_v43, %v5611_v3  ;;  %v5826_v0 = vsel %vm2187_vm10, %v5810_v26, %v5612_v51  ;;  %v10621_v51 = vld [vmem:[#allocation31_spill] sm:$0xff]  ;;  %v10634_v34 = vld [vmem:[#allocation13_spill] sm:$0xff] }
 0x5e3   : > { %v5812_v27 = vsel %vm5692_vm7, %v5796_v48, %v5566_v10  ;;  %v5827_v18 = vsel %vm2187_vm10, %v5811_v11, %v5613_v8  ;;  %v5840_v41 = vsel %vm5726_vm8, %v5824_v17, %v10617_v45  ;;  %v5841_v44 = vsel %vm5726_vm8, %v5825_v37, %v10618_v24  ;;  %v10619_v10 = vld [vmem:[#allocation44_spill] sm:$0xff] }
 0x5e4   : > { %v5828_v21 = vsel %vm2187_vm10, %v5812_v27, %v5614_v61  ;;  %v5842_v7 = vsel %vm5726_vm8, %v5826_v0, %v10619_v10  ;;  %v5843_v3 = vsel %vm5726_vm8, %v5827_v18, %v10620_v33  ;;  %v5856_v61 = vsel %vm5743_vm9, %v5840_v41, %v10622_v2 }
 0x5e5   : > { %v5844_v8 = vsel %vm5726_vm8, %v5828_v21, %v10621_v51  ;;  %v5857_v13 = vsel %vm5743_vm9, %v5841_v44, %v10561_v9  ;;  %v5858_v32 = vsel %vm5743_vm9, %v5842_v7, %v10623_v40  ;;  %v5859_v15 = vsel %vm5743_vm9, %v5843_v3, %v10565_v6 }
 0x5e6   : > { %v5860_v36 = vsel %vm5743_vm9, %v5844_v8, %v10567_v30  ;;  %v5872_v20 = vadd.f32 %v6517_v22, %v5744_v62  ;;  %v5873_v31 = vadd.f32 %v6518_v5, %v5856_v61  ;;  %v5874_v9 = vadd.f32 %v6519_v28, %v5745_v14 }
 0x5e7   : > { %v5875_v25 = vadd.f32 %v6520_v39, %v5857_v13  ;;  %v5876_v6 = vadd.f32 %v6521_v29, %v5746_v4  ;;  %v5877_v30 = vadd.f32 %v6522_v46, %v5858_v32  ;;  %v5878_v62 = vadd.f32 %v6523_v56, %v5747_v54  ;;  %v10624_v4 = vld [vmem:[#allocation8_spill] sm:$0xff] }
 0x5e8   : > { %v5879_v35 = vadd.f32 %v6524_v1, %v5859_v15  ;;  %v5880_v14 = vadd.f32 %v6525_v60, %v5748_v55  ;;  %v5881_v58 = vadd.f32 %v6526_v63, %v5860_v36  ;;  %5904 = vst.msk [vmem:[%s8479_s14] sm:$0xff] %vm2475_vm2, %v5872_v20  ;;  %5905 = vst.msk [vmem:[%s8479_s14 + $0x8] sm:$0xff] %vm2475_vm2, %v5873_v31  ;;  %v9151_v57 = vmul.f32 0.13333334, %v10624_v4 }
 0x5e9   : > { %5906 = vst.msk [vmem:[%s8479_s14 + $0x10] sm:$0xff] %vm2475_vm2, %v5874_v9  ;;  %5907 = vst.msk [vmem:[%s8479_s14 + $0x18] sm:$0xff] %vm2475_vm2, %v5875_v25  ;;  %v9162_v54 = vmul.f32 0.6, %v10624_v4  ;;  %v3896_v55 = vmul.f32 0.93333334, %v10624_v4 }
 0x5ea   : > { %10625 = vst [vmem:[#allocation45_spill] sm:$0xff] %v9151_v57  ;;  %5908 = vst.msk [vmem:[%s8479_s14 + $0x20] sm:$0xff] %vm2475_vm2, %v5876_v6  ;;  %v3899_v42 = vmul.f32 0.46666667, %v10624_v4  ;;  %v3879_v49 = vmul.f32 0.26666668, %v10627_v53 }
 0x5eb   : > { %5909 = vst.msk [vmem:[%s8479_s14 + $0x28] sm:$0xff] %vm2475_vm2, %v5877_v30  ;;  %5910 = vst.msk [vmem:[%s8479_s14 + $0x30] sm:$0xff] %vm2475_vm2, %v5878_v62  ;;  %v3882_v50 = vmul.f32 0.73333335, %v10627_v53  ;;  %v9175_v23 = vmul.f32 0.8, %v10627_v53 }
 0x5ec   : > { %10626 = vst [vmem:[#allocation35_spill] sm:$0xff] %v9162_v54  ;;  %5911 = vst.msk [vmem:[%s8479_s14 + $0x38] sm:$0xff] %vm2475_vm2, %v5879_v35  ;;  %v9178_v59 = vmul.f32 0.33333334, %v10627_v53  ;;  %v9181_v16 = vmul.f32 0.06666667, %v10630_v38  ;;  %v9187_v52 = vadd.f32 %v3879_v49, %v10633_v12 }
 0x5ed   : > { %5912 = vst.msk [vmem:[%s8479_s14 + $0x40] sm:$0xff] %vm2475_vm2, %v5880_v14  ;;  %5913 = vst.msk [vmem:[%s8479_s14 + $0x48] sm:$0xff] %vm2475_vm2, %v5881_v58  ;;  %v9184_v47 = vmul.f32 0.53333336, %v10630_v38  ;;  %v9190_v48 = vadd.f32 %v3882_v50, %v10634_v34  ;;  %v9193_v19 = vmul.f32 0.46666667, %v10630_v38 }
 0x5ee   : > { %10628 = vst [vmem:[#allocation11_spill] sm:$0xff] %v9175_v23  ;;  %10629 = vst [vmem:[#allocation21_spill] sm:$0xff] %v9178_v59  ;;  %v9196_v43 = vmul.f32 0.93333334, %v10630_v38  ;;  %v9199_v26 = vadd.f32 %v9181_v16, %v3896_v55  ;;  %v9205_v27 = vmul.f32 0.6, %v10630_v38 }
 0x5ef   : > { %10631 = vst [vmem:[#allocation36_spill] sm:$0xff] %v9181_v16  ;;  %10632 = vst [vmem:[#allocation38_spill] sm:$0xff] %v9184_v47  ;;  %v9202_v11 = vadd.f32 %v9184_v47, %v3899_v42  ;;  %v9208_v17 = vmul.f32 0.4, %v10630_v38  ;;  %v9211_v37 = vmul.f32 0.53333336, %v9187_v52 }
 0x5f0   : > { %10635 = vst [vmem:[#allocation22_spill] sm:$0xff] %v9193_v19  ;;  %10636 = vst [vmem:[#allocation26_spill] sm:$0xff] %v9196_v43  ;;  %v9214_v0 = vmul.f32 0.53333336, %v9190_v48  ;;  %v9217_v18 = vmul.f32 0.46666667, %v9187_v52 }
 0x5f1   : > { %10637 = vst [vmem:[#allocation27_spill] sm:$0xff] %v9199_v26  ;;  %10638 = vst [vmem:[#allocation15_spill] sm:$0xff] %v9202_v11  ;;  %v9220_v21 = vmul.f32 0.46666667, %v9190_v48  ;;  %v9223_v45 = vmul.f32 0.06666667, %v9187_v52 }
 0x5f2   : > { %10639 = vst [vmem:[#allocation23_spill] sm:$0xff] %v9205_v27  ;;  %10640 = vst [vmem:[#allocation25_spill] sm:$0xff] %v9208_v17  ;;  %v9226_v41 = vmul.f32 0.06666667, %v9190_v48  ;;  %v3955_v24 = vrot.slane %v9217_v18, 1 }
 0x5f3   : > { %v9230_v44 = vmul.f32 0.93333334, %v9187_v52  ;;  %v9233_v10 = vmul.f32 0.93333334, %v9190_v48  ;;  %v3956_v33 = vrot.slane %v9220_v21, 1 }
 0x5f4   : > { %v9238_v3 = vmul.f32 0.6, %v9187_v52  ;;  %v9241_v51 = vmul.f32 0.6, %v9190_v48  ;;  %v9245_v2 = vadd.f32 %v3955_v24, %v9211_v37  ;;  %v4113_v40 = vmul.f32 0.4, %v9187_v52 }
 0x5f5   : > { %v4049_v61 = vrot.slane %v9230_v44, 1  ;;  %v4050_v13 = vrot.slane %v9233_v10, 1  ;;  %v9251_v32 = vadd.f32 %v3956_v33, %v9214_v0  ;;  %v4114_v15 = vmul.f32 0.4, %v9190_v48 }
 0x5f6   : > { %v4193_v36 = vmul.f32 0.13333334, %v9187_v52  ;;  %v4194_v22 = vmul.f32 0.13333334, %v9190_v48  ;;  %v4145_v31 = vrot.slane %v4113_v40, 1  ;;  %v4849_v43 = vrot.slane %v9238_v3, 1 }
 0x5f7   : > { %v9257_v20 = vadd.f32 %v4049_v61, %v9223_v45  ;;  %v9260_v5 = vadd.f32 %v4050_v13, %v9226_v41  ;;  %v4209_v28 = vmul.f32 0.8666667, %v9187_v52  ;;  %v4146_v9 = vrot.slane %v4114_v15, 1 }
 0x5f8   : > { %v4210_v39 = vmul.f32 0.8666667, %v9190_v48  ;;  %v4289_v25 = vmul.f32 0.6666667, %v9187_v52  ;;  %v4785_v29 = vrot.slane %v4193_v36, 1  ;;  %v9266_v6 = vadd.f32 %v4145_v31, %v9238_v3 }
 0x5f9   : > { %v4241_v46 = vrot.slane %v4209_v28, 1  ;;  %v4290_v30 = vmul.f32 0.6666667, %v9190_v48  ;;  %v4305_v56 = vmul.f32 0.33333334, %v9187_v52  ;;  %v9271_v62 = vadd.f32 %v4146_v9, %v9241_v51 }
 0x5fa   : > { %v4242_v1 = vrot.slane %v4210_v39, 1  ;;  %v4306_v35 = vmul.f32 0.33333334, %v9190_v48  ;;  %v4385_v60 = vmul.f32 0.2, %v9187_v52  ;;  %v4786_v16 = vrot.slane %v4194_v22, 1 }
 0x5fb   : > { %v9275_v14 = vadd.f32 %v4241_v46, %v4193_v36  ;;  %v4337_v63 = vrot.slane %v4305_v56, 1  ;;  %v4386_v58 = vmul.f32 0.2, %v9190_v48  ;;  %v4401_v4 = vmul.f32 0.8, %v9187_v52 }
 0x5fc   : > { %v9279_v55 = vadd.f32 %v4242_v1, %v4194_v22  ;;  %v4338_v42 = vrot.slane %v4306_v35, 1  ;;  %v4402_v53 = vmul.f32 0.8, %v9190_v48  ;;  %v4481_v49 = vmul.f32 0.73333335, %v9187_v52 }
 0x5fd   : > { %v9283_v50 = vadd.f32 %v4337_v63, %v4289_v25  ;;  %v4433_v12 = vrot.slane %v4401_v4, 1  ;;  %v4482_v34 = vmul.f32 0.73333335, %v9190_v48  ;;  %v4497_v24 = vmul.f32 0.26666668, %v9187_v52 }
 0x5fe   : > { %v9287_v33 = vadd.f32 %v4338_v42, %v4290_v30  ;;  %v4434_v61 = vrot.slane %v4402_v53, 1  ;;  %v4498_v13 = vmul.f32 0.26666668, %v9190_v48  ;;  %v4593_v36 = vrot.slane %v4481_v49, 1 }
 0x5ff   : > { %v9290_v31 = vadd.f32 %v4433_v12, %v4385_v60  ;;  %v4529_v9 = vrot.slane %v4497_v24, 1  ;;  %v4594_v46 = vrot.slane %v4482_v34, 1  ;;  %v4657_v1 = vrot.slane %v4385_v60, 1 }
 0x600   : > { %v9292_v7 = vadd.f32 %v4434_v61, %v4386_v58  ;;  %v4530_v63 = vrot.slane %v4498_v13, 1  ;;  %v4625_v8 = vadd.f32 %v4593_v36, %v4497_v24  ;;  %v4658_v54 = vrot.slane %v4386_v58, 1 }
 0x601   : > { %v9294_v57 = vadd.f32 %v4529_v9, %v4481_v49  ;;  %v4626_v59 = vadd.f32 %v4594_v46, %v4498_v13  ;;  %v4689_v23 = vadd.f32 %v4657_v1, %v4401_v4  ;;  %v4721_v42 = vrot.slane %v4289_v25, 1 }
 0x602   : > { %v9296_v38 = vadd.f32 %v4530_v63, %v4482_v34  ;;  %v4690_v27 = vadd.f32 %v4658_v54, %v4402_v53  ;;  %v4722_v17 = vrot.slane %v4290_v30, 1  ;;  %v4817_v47 = vadd.f32 %v4785_v29, %v4209_v28 }
 0x603   : > { %v4753_v12 = vadd.f32 %v4721_v42, %v4305_v56  ;;  %v4850_v60 = vrot.slane %v9241_v51, 1  ;;  %v4818_v19 = vadd.f32 %v4786_v16, %v4210_v39  ;;  %v4914_v58 = vrot.slane %v9226_v41, 1 }
 0x604   : > { %v4754_v61 = vadd.f32 %v4722_v17, %v4306_v35  ;;  %v10641_v49 = vrot.slane %v9223_v45, 1  ;;  %v4881_v25 = vadd.f32 %v4849_v43, %v4113_v40  ;;  %v4978_v54 = vrot.slane %v9214_v0, 1 }
 0x605   : > { %v4882_v34 = vadd.f32 %v4850_v60, %v4114_v15  ;;  %v10642_v22 = vrot.slane %v9211_v37, 1  ;;  %v4946_v3 = vadd.f32 %v4914_v58, %v9233_v10  ;;  %v5041_v51 = vrot.slane %v9245_v2, 7 }
 0x606   : > { %v4945_v4 = vadd.f32 %v10641_v49, %v9230_v44  ;;  %v5042_v16 = vrot.slane %v9251_v32, 7  ;;  %v5089_v17 = vrot.slane %v9257_v20, 6  ;;  %v5010_v41 = vadd.f32 %v4978_v54, %v9220_v21 }
 0x607   : > { %v5009_v28 = vadd.f32 %v10642_v22, %v9217_v18  ;;  %v5090_v45 = vrot.slane %v9260_v5, 6  ;;  %v5137_v43 = vrot.slane %v9266_v6, 6  ;;  %v5138_v0 = vrot.slane %v9271_v62, 6  ;;  %v6528_v22 = vld [vmem:[%s6779_s16 + $0x78] sm:$0xff] }
 0x608   : > { %v5185_v44 = vrot.slane %v9275_v14, 5  ;;  %v5186_v37 = vrot.slane %v9279_v55, 5  ;;  %v5233_v18 = vrot.slane %v9283_v50, 5  ;;  %v5234_v10 = vrot.slane %v9287_v33, 5 }
 0x609   : > { %v5281_v2 = vrot.slane %v9290_v31, 4  ;;  %v5282_v40 = vrot.slane %v9292_v7, 4  ;;  %v5329_v21 = vrot.slane %v9294_v57, 4  ;;  %v5330_v32 = vrot.slane %v9296_v38, 4 }
 0x60a   : > { %v5377_v15 = vrot.slane %v4625_v8, 3  ;;  %v5378_v20 = vrot.slane %v4626_v59, 3  ;;  %v5425_v5 = vrot.slane %v4689_v23, 3  ;;  %v5426_v39 = vrot.slane %v4690_v27, 3 }
 0x60b   : > { %v5473_v29 = vrot.slane %v4753_v12, 2  ;;  %v5474_v6 = vrot.slane %v4754_v61, 2  ;;  %v5521_v30 = vrot.slane %v4817_v47, 2  ;;  %v5522_v56 = vrot.slane %v4818_v19, 2 }
 0x60c   : > { %v5569_v62 = vrot.slane %v4881_v25, 1  ;;  %v5570_v35 = vrot.slane %v4882_v34, 1  ;;  %v5617_v14 = vrot.slane %v4945_v4, 1  ;;  %v5618_v55 = vrot.slane %v4946_v3, 1  ;;  %v6527_v34 = vld [vmem:[%s6779_s16 + $0x70] sm:$0xff]  ;;  %v6529_v3 = vld [vmem:[%s6779_s16 + $0x80] sm:$0xff] }
 0x60d   : > { %v5649_v53 = vsel %vm1125_vm6, %v9187_v52, %v5041_v51  ;;  %v5650_v57 = vsel %vm1125_vm6, %v9190_v48, %v5042_v16  ;;  %v5767_v38 = vsel %vm1125_vm6, %v5377_v15, %v5425_v5  ;;  %v5768_v59 = vsel %vm1125_vm6, %v5378_v20, %v5426_v39  ;;  %v6530_v16 = vld [vmem:[%s6779_s16 + $0x88] sm:$0xff]  ;;  %v6531_v15 = vld [vmem:[%s10274_s9] ss:$0 sm:$0xff]  ;;  %v10647_v39 = vld [vmem:[#allocation38_spill] sm:$0xff] }
 0x60e   : > { %v5666_v23 = vsel %vm5658_vm4, %v5649_v53, %v5089_v17  ;;  %v5667_v27 = vsel %vm5658_vm4, %v5650_v57, %v5090_v45  ;;  %v5783_v47 = vsel %vm5658_vm4, %v5767_v38, %v5473_v29  ;;  %v5784_v19 = vsel %vm5658_vm4, %v5768_v59, %v5474_v6  ;;  %v10645_v20 = vld [vmem:[#allocation76_spill] sm:$0xff] }
 0x60f   : > { %v5683_v7 = vsel %vm5675_vm5, %v5666_v23, %v5137_v43  ;;  %v5684_v8 = vsel %vm5675_vm5, %v5667_v27, %v5138_v0  ;;  %v5799_v50 = vsel %vm5675_vm5, %v5783_v47, %v5521_v30  ;;  %v5800_v24 = vsel %vm5675_vm5, %v5784_v19, %v5522_v56  ;;  %v10643_v43 = vld [vmem:[#allocation22_spill] sm:$0xff]  ;;  %v10648_v30 = vld [vmem:[#allocation36_spill] sm:$0xff] }
 0x610   : > { %v5700_v33 = vsel %vm5692_vm7, %v5683_v7, %v5185_v44  ;;  %v5701_v13 = vsel %vm5692_vm7, %v5684_v8, %v5186_v37  ;;  %v5815_v36 = vsel %vm5692_vm7, %v5799_v50, %v5569_v62  ;;  %v5816_v31 = vsel %vm5692_vm7, %v5800_v24, %v5570_v35  ;;  %v10644_v37 = vld [vmem:[#allocation26_spill] sm:$0xff]  ;;  %v10650_v62 = vld [vmem:[#allocation25_spill] sm:$0xff] }
 0x611   : > { %v5717_v9 = vsel %vm2187_vm10, %v5700_v33, %v5233_v18  ;;  %v5718_v46 = vsel %vm2187_vm10, %v5701_v13, %v5234_v10  ;;  %v5831_v1 = vsel %vm2187_vm10, %v5815_v36, %v5617_v14  ;;  %v5832_v63 = vsel %vm2187_vm10, %v5816_v31, %v5618_v55 }
 0x612   : > { %v5734_v42 = vsel %vm5726_vm8, %v5717_v9, %v5281_v2  ;;  %v5735_v12 = vsel %vm5726_vm8, %v5718_v46, %v5282_v40  ;;  %v5847_v60 = vsel %vm5726_vm8, %v5831_v1, %v5009_v28  ;;  %v5848_v61 = vsel %vm5726_vm8, %v5832_v63, %v5010_v41 }
 0x613   : > { %v5751_v58 = vsel %vm5743_vm9, %v5734_v42, %v5329_v21  ;;  %v5752_v49 = vsel %vm5743_vm9, %v5735_v12, %v5330_v32  ;;  %v5863_v4 = vsel %vm5743_vm9, %v5847_v60, %v9187_v52  ;;  %v5864_v25 = vsel %vm5743_vm9, %v5848_v61, %v9190_v48 }
 0x614   : > { %v5886_v54 = vadd.f32 %v6527_v34, %v5751_v58  ;;  %v5887_v28 = vadd.f32 %v6528_v22, %v5863_v4  ;;  %v5888_v51 = vadd.f32 %v6529_v3, %v5752_v49  ;;  %v5889_v17 = vadd.f32 %v6530_v16, %v5864_v25 }
 0x615   : > { %v9363_v41 = vmul.f32 0.53333336, %v9199_v26  ;;  %v9366_v52 = vmul.f32 0.53333336, %v9202_v11  ;;  %v9369_v48 = vmul.f32 0.46666667, %v9199_v26  ;;  %v9409_v5 = vadd.f32 %v6531_v15, %v10645_v20 }
 0x616   : > { %5918 = vst.msk [vmem:[%s8479_s14 + $0x70] sm:$0xff] %vm2475_vm2, %v5886_v54  ;;  %5919 = vst.msk [vmem:[%s8479_s14 + $0x78] sm:$0xff] %vm2475_vm2, %v5887_v28  ;;  %v9380_v45 = vmul.f32 0.46666667, %v9202_v11  ;;  %v3963_v0 = vrot.slane %v10643_v43, 1  ;;  %v4057_v18 = vrot.slane %v10644_v37, 1 }
 0x617   : > { %5920 = vst.msk [vmem:[%s8479_s14 + $0x80] sm:$0xff] %vm2475_vm2, %v5888_v51  ;;  %5921 = vst.msk [vmem:[%s8479_s14 + $0x88] sm:$0xff] %vm2475_vm2, %v5889_v17  ;;  %v9384_v44 = vmul.f32 0.06666667, %v9199_v26  ;;  %v3961_v10 = vrot.slane %v9369_v48, 1  ;;  %v4153_v35 = vrot.slane %v10650_v62, 1 }
 0x618   : > { %v9396_v2 = vmul.f32 0.06666667, %v9202_v11  ;;  %v9399_v40 = vmul.f32 0.93333334, %v9199_v26  ;;  %v3962_v21 = vrot.slane %v9380_v45, 1  ;;  %10646 = vst [vmem:[#allocation24_spill] sm:$0xff] %v9409_v5  ;;  %v9412_v29 = vadd.f32 %v3963_v0, %v10647_v39 }
 0x619   : > { %v9403_v32 = vmul.f32 0.93333334, %v9202_v11  ;;  %v9416_v56 = vadd.f32 %v4057_v18, %v10648_v30 }
 0x61a   : > { %v4055_v6 = vrot.slane %v9399_v40, 1 }
 0x61b   : > { %10649 = vst [vmem:[#allocation28_spill] sm:$0xff] %v9416_v56 }
 0x61c   : > { %6559 = shalt.err (!%p6556_p3)
}
 0x61d   : > { %s6560_s30 = scalar_lea.hbm %s9390_s25, 1024  ;;  %s6564_s12 = scalar_lea.hbm %s10275_s10, 2048 }
 0x61e   : > { %p6561_p4 = scmp.ne.s32.totalorder %s9390_s25, %s6560_s30  ;;  %p6565_p9 = scmp.lt.u32.totalorder %s9390_s25, %s10275_s10 }
 0x61f   : > { %p6566_p10 = scmp.lt.u32.totalorder %s6564_s12, %s6560_s30  ;;  %p6568_p12 = scmp.lt.u32.totalorder %s6560_s30, %s9390_s25 }
 0x620   : > { %p6562_p7 = pnand %p6561_p4, %p6753_p5 }
 0x621   : > { %p6567_p11 = por %p6566_p10, %p6565_p9 }
 0x622   : > { %p6563_p8 = pneg %p6562_p7 }
 0x623   : > { %p6569_p13 = por %p6568_p12, %p6567_p11 }
 0x625   : > { %p6570_p0 = pnand %p6569_p13, %p6563_p8 }
 0x627   : > { %6573 = shalt.err (!%p6570_p0)
}
 0x628   : > { %s6652_s24 = smov 128   ;;  %s6653_s13 = smov 8   ;;  %v9447_v14 = vadd.f32 %v3961_v10, %v9363_v41  ;;  %v4056_v55 = vrot.slane %v9403_v32, 1  ;;  %v9451_v53 = vmul.f32 0.4, %v9199_v26  ;;  %v9457_v38 = vadd.f32 %v3962_v21, %v9366_v52  ;;  %v10652_v50 = vld [vmem:[#allocation23_spill] sm:$0xff] }
 0x629   : > { %s10651_s0 = scalar_lea.sflag [#allocation3], %s8229_s22  ;;  %v9454_v57 = vmul.f32 0.4, %v9202_v11  ;;  %v9460_v59 = vadd.f32 %v4055_v6, %v9384_v44  ;;  %v9463_v23 = vmul.f32 0.6, %v9199_v26  ;;  %v9477_v24 = vadd.f32 %v4153_v35, %v10652_v50  ;;  %v10654_v36 = vld [vmem:[#allocation69_spill] sm:$0xff] }
 0x62a   : > { %6391 = dma.vmem_to_hbm [thread:$0]  (%p6753_p5), %s9392_s15, 1024, %s9390_s25, %s10651_s0, %s6652_s24, %s6652_s24, %s6653_s13   ;;  %v9466_v27 = vmul.f32 0.6, %v9202_v11  ;;  %v4151_v47 = vrot.slane %v9451_v53, 1  ;;  %v9471_v7 = vmul.f32 0.13333334, %v9199_v26  ;;  %v9489_v9 = vadd.f32 %v4056_v55, %v9396_v2 }
 0x62b   : > { %v4152_v19 = vrot.slane %v9454_v57, 1  ;;  %v9474_v8 = vmul.f32 0.13333334, %v9202_v11  ;;  %10653 = vst [vmem:[#allocation32_spill] sm:$0xff] %v9477_v24  ;;  %v9480_v33 = vmul.f32 0.8666667, %v9199_v26 }
 0x62c   : > { %v9483_v13 = vmul.f32 0.8666667, %v9202_v11  ;;  %v9486_v31 = vmul.f32 0.8666667, %v10654_v36  ;;  %10655 = vst [vmem:[#allocation33_spill] sm:$0xff] %v9489_v9  ;;  %v9492_v46 = vadd.f32 %v4151_v47, %v9463_v23  ;;  %s6270_s1 = sshll.u32 %s6736_s21, 12 }
 0x62d   : > { %v9495_v1 = vmul.f32 0.13333334, %v10654_v36  ;;  %v4295_v63 = vmul.f32 0.6666667, %v9199_v26  ;;  %v4247_v42 = vrot.slane %v9480_v33, 1  ;;  %v9503_v58 = vadd.f32 %v4152_v19, %v9466_v27  ;;  %s5971_s2 = sshll.u32 %s8479_s14, 4  ;;  %s10201_s25 = scalar_lea.hbm %s10276_s11, %s6270_s1  ;;  %s10203_s2 = int_to_ptr.vmem [resolvable:$true] %s5971_s2 }
 0x62e   : > { %10656 = vst [vmem:[#allocation18_spill] sm:$0xff] %v9492_v46  ;;  %v4248_v12 = vrot.slane %v9483_v13, 1  ;;  %v4249_v60 = vrot.slane %v9486_v31, 1  ;;  %v4296_v61 = vmul.f32 0.6666667, %v9202_v11  ;;  %s6574_s30 = scalar_lea.vmem %s10203_s2, 4096 }
 0x62f   : > { %10657 = vst [vmem:[#allocation34_spill] sm:$0xff] %v9503_v58  ;;  %v4311_v49 = vmul.f32 0.33333334, %v9199_v26  ;;  %v4312_v4 = vmul.f32 0.33333334, %v9202_v11  ;;  %v9509_v34 = vadd.f32 %v4247_v42, %v9471_v7  ;;  %p6575_p1 = scmp.ne.s32.totalorder %s10203_s2, %s6574_s30  ;;  %s6654_s12 = smov [#allocation4]  }
 0x630   : > { %v4313_v25 = vmul.f32 0.33333334, %v10654_v36  ;;  %v9512_v54 = vadd.f32 %v4248_v12, %v9474_v8  ;;  %v4297_v22 = vmul.f32 0.6666667, %v10654_v36  ;;  %v4391_v28 = vmul.f32 0.2, %v9199_v26 }
 0x631   : > { %10658 = vst [vmem:[#allocation37_spill] sm:$0xff] %v9509_v34  ;;  %v4343_v3 = vrot.slane %v4311_v49, 1  ;;  %v4344_v51 = vrot.slane %v4312_v4, 1  ;;  %v4392_v17 = vmul.f32 0.2, %v9202_v11  ;;  %v9518_v0 = vadd.f32 %v4249_v60, %v9495_v1  ;;  %p6576_p2 = pnand %p6575_p1, %p6753_p5  ;;  %s6578_s29 = sshll.u32 %s6654_s12, 4  ;;  %s6579_s29 = int_to_ptr.vmem [resolvable:$false] %s6578_s29 }
 0x632   : > { %10659 = vst [vmem:[#allocation14_spill] sm:$0xff] %v9512_v54  ;;  %v4345_v16 = vrot.slane %v4313_v25, 1  ;;  %v4393_v18 = vmul.f32 0.2, %v10654_v36  ;;  %v4407_v10 = vmul.f32 0.8, %v9199_v26  ;;  %p6581_p4 = scmp.lt.s32.totalorder %s10203_s2, %s6579_s29 }
 0x633   : > { %10660 = vst [vmem:[#allocation39_spill] sm:$0xff] %v9518_v0  ;;  %v4408_v21 = vmul.f32 0.8, %v9202_v11  ;;  %v9523_v15 = vadd.f32 %v4343_v3, %v4295_v63  ;;  %v9525_v20 = vadd.f32 %v4344_v51, %v4296_v61  ;;  %v4409_v35 = vmul.f32 0.8, %v10654_v36  ;;  %p6577_p3 = pneg %p6576_p2  ;;  %s6580_s0 = scalar_lea.vmem %s6579_s29, 8192 }
 0x634   : > { %v9527_v6 = vadd.f32 %v4345_v16, %v4297_v22  ;;  %v4439_v55 = vrot.slane %v4407_v10, 1  ;;  %v4487_v19 = vmul.f32 0.73333335, %v9199_v26  ;;  %v4488_v42 = vmul.f32 0.73333335, %v9202_v11  ;;  %p6582_p7 = scmp.lt.s32.totalorder %s6580_s0, %s6574_s30 }
 0x635   : > { %10661 = vst [vmem:[#allocation40_spill] sm:$0xff] %v9523_v15  ;;  %10662 = vst [vmem:[#allocation41_spill] sm:$0xff] %v9525_v20  ;;  %v4440_v47 = vrot.slane %v4408_v21, 1  ;;  %v4441_v12 = vrot.slane %v4409_v35, 1  ;;  %v4489_v60 = vmul.f32 0.73333335, %v10654_v36 }
 0x636   : > { %10663 = vst [vmem:[#allocation42_spill] sm:$0xff] %v9527_v6  ;;  %v4503_v5 = vmul.f32 0.26666668, %v9199_v26  ;;  %v4663_v0 = vrot.slane %v4391_v28, 1  ;;  %v9534_v3 = vadd.f32 %v4439_v55, %v4391_v28  ;;  %v4504_v16 = vmul.f32 0.26666668, %v9202_v11  ;;  %p6583_p8 = por %p6582_p7, %p6581_p4 }
 0x637   : > { %v9536_v51 = vadd.f32 %v4440_v47, %v4392_v17  ;;  %v4505_v6 = vmul.f32 0.26666668, %v10654_v36  ;;  %v9540_v20 = vadd.f32 %v4441_v12, %v4393_v18  ;;  %v4599_v54 = vrot.slane %v4487_v19, 1 }
 0x638   : > { %v4535_v15 = vrot.slane %v4503_v5, 1  ;;  %v4600_v34 = vrot.slane %v4488_v42, 1  ;;  %v4536_v24 = vrot.slane %v4504_v16, 1  ;;  %v4601_v46 = vrot.slane %v4489_v60, 1  ;;  %p6584_p9 = pnand %p6583_p8, %p6577_p3 }
 0x639   : > { %10664 = vst [vmem:[#allocation47_spill] sm:$0xff] %v9536_v51  ;;  %10665 = vst [vmem:[#allocation57_spill] sm:$0xff] %v9540_v20  ;;  %v4537_v58 = vrot.slane %v4505_v6, 1  ;;  %v4664_v56 = vrot.slane %v4392_v17, 1  ;;  %v9544_v26 = vadd.f32 %v4599_v54, %v4503_v5  ;;  %v4665_v55 = vrot.slane %v4393_v18, 1 }
 0x63a   : > { %v9542_v9 = vadd.f32 %v4535_v15, %v4487_v19  ;;  %v9546_v28 = vadd.f32 %v4600_v34, %v4504_v16  ;;  %v9548_v47 = vadd.f32 %v4536_v24, %v4488_v42  ;;  %v9552_v12 = vadd.f32 %v4601_v46, %v4505_v6  ;;  %v10671_v6 = vld [vmem:[#allocation37_spill] sm:$0xff] }
 0x63b   : > { %v9550_v11 = vadd.f32 %v4537_v58, %v4489_v60  ;;  %v9554_v36 = vadd.f32 %v4663_v0, %v4407_v10  ;;  %v9556_v20 = vadd.f32 %v4664_v56, %v4408_v21  ;;  %v9558_v51 = vadd.f32 %v4665_v55, %v4409_v35  ;;  %v10670_v21 = vld [vmem:[#allocation32_spill] sm:$0xff]  ;;  %v10673_v60 = vld [vmem:[#allocation39_spill] sm:$0xff] }
 0x63c   : > { %v4727_v17 = vrot.slane %v4295_v63, 1  ;;  %v4728_v15 = vrot.slane %v4296_v61, 1  ;;  %v4729_v19 = vrot.slane %v4297_v22, 1  ;;  %v4791_v5 = vrot.slane %v9471_v7, 1  ;;  %v10668_v22 = vld [vmem:[#allocation18_spill] sm:$0xff]  ;;  %v10674_v16 = vld [vmem:[#allocation40_spill] sm:$0xff] }
 0x63d   : > { %v4792_v34 = vrot.slane %v9474_v8, 1  ;;  %v4793_v24 = vrot.slane %v9495_v1, 1  ;;  %v4855_v46 = vrot.slane %v9463_v23, 1  ;;  %v4856_v56 = vrot.slane %v9466_v27, 1  ;;  %v10675_v55 = vld [vmem:[#allocation41_spill] sm:$0xff] }
 0x63e   : > { %v9563_v54 = vadd.f32 %v4727_v17, %v4311_v49  ;;  %v9565_v58 = vadd.f32 %v4728_v15, %v4312_v4  ;;  %v9569_v0 = vadd.f32 %v4729_v19, %v4313_v25  ;;  %v9572_v63 = vadd.f32 %v4791_v5, %v9480_v33  ;;  %v10667_v25 = vld [vmem:[#allocation28_spill] sm:$0xff]  ;;  %v10676_v17 = vld [vmem:[#allocation42_spill] sm:$0xff] }
 0x63f   : > { %v9575_v61 = vadd.f32 %v4792_v34, %v9483_v13  ;;  %v9578_v7 = vadd.f32 %v4793_v24, %v9486_v31  ;;  %v4857_v8 = vrot.slane %v10652_v50, 1  ;;  %v9582_v1 = vadd.f32 %v4855_v46, %v9451_v53 }
 0x640   : > { %v9585_v23 = vadd.f32 %v4856_v56, %v9454_v57  ;;  %v4919_v27 = vrot.slane %v9384_v44, 1  ;;  %v4920_v49 = vrot.slane %v9396_v2, 1  ;;  %v4921_v33 = vrot.slane %v10648_v30, 1  ;;  %v10677_v5 = vld [vmem:[#allocation47_spill] sm:$0xff]  ;;  %v10678_v24 = vld [vmem:[#allocation57_spill] sm:$0xff] }
 0x641   : > { %v4983_v13 = vrot.slane %v9363_v41, 1  ;;  %v4984_v4 = vrot.slane %v9366_v52, 1  ;;  %v9593_v31 = vadd.f32 %v4857_v8, %v10650_v62  ;;  %v4985_v53 = vrot.slane %v10647_v39, 1 }
 0x642   : > { %v9596_v50 = vadd.f32 %v4919_v27, %v9399_v40  ;;  %v5047_v57 = vrot.slane %v9447_v14, 7  ;;  %v9601_v44 = vadd.f32 %v4920_v49, %v9403_v32  ;;  %v9604_v2 = vadd.f32 %v4921_v33, %v10644_v37  ;;  %v10666_v32 = vld [vmem:[#allocation33_spill] sm:$0xff] }
 0x643   : > { %v9607_v41 = vadd.f32 %v4983_v13, %v9369_v48  ;;  %v9610_v52 = vadd.f32 %v4984_v4, %v9380_v45  ;;  %v9613_v30 = vadd.f32 %v4985_v53, %v10643_v43  ;;  %v5048_v40 = vrot.slane %v9457_v38, 7  ;;  %v10669_v48 = vld [vmem:[#allocation34_spill] sm:$0xff] }
 0x644   : > { %v5049_v39 = vrot.slane %v9412_v29, 7  ;;  %v5095_v62 = vrot.slane %v9460_v59, 6  ;;  %v5096_v14 = vrot.slane %v10666_v32, 6  ;;  %v5097_v37 = vrot.slane %v10667_v25, 6  ;;  %v10672_v43 = vld [vmem:[#allocation14_spill] sm:$0xff]  ;;  %v10679_v25 = vld [vmem:[#allocation27_spill] sm:$0xff] }
 0x645   : > { %v5143_v18 = vrot.slane %v10668_v22, 6  ;;  %v5144_v10 = vrot.slane %v10669_v48, 6  ;;  %v5145_v45 = vrot.slane %v10670_v21, 6  ;;  %v5191_v35 = vrot.slane %v10671_v6, 5  ;;  %v10681_v22 = vld [vmem:[#allocation69_spill] sm:$0xff] }
 0x646   : > { %v5192_v42 = vrot.slane %v10672_v43, 5  ;;  %v5193_v38 = vrot.slane %v10673_v60, 5  ;;  %v5239_v29 = vrot.slane %v10674_v16, 5  ;;  %v5240_v59 = vrot.slane %v10675_v55, 5 }
 0x647   : > { %v5241_v15 = vrot.slane %v10676_v17, 5  ;;  %v5287_v19 = vrot.slane %v9534_v3, 4  ;;  %v5288_v34 = vrot.slane %v10677_v5, 4  ;;  %v5289_v46 = vrot.slane %v10678_v24, 4 }
 0x648   : > { %v5335_v56 = vrot.slane %v9542_v9, 4  ;;  %v5336_v8 = vrot.slane %v9548_v47, 4  ;;  %v5337_v27 = vrot.slane %v9550_v11, 4  ;;  %v5383_v49 = vrot.slane %v9544_v26, 3 }
 0x649   : > { %v5384_v33 = vrot.slane %v9546_v28, 3  ;;  %v5385_v13 = vrot.slane %v9552_v12, 3  ;;  %v5431_v4 = vrot.slane %v9554_v36, 3  ;;  %v5432_v3 = vrot.slane %v9556_v20, 3 }
 0x64a   : > { %v5433_v53 = vrot.slane %v9558_v51, 3  ;;  %v5479_v32 = vrot.slane %v9563_v54, 2  ;;  %v5480_v9 = vrot.slane %v9565_v58, 2  ;;  %v5481_v47 = vrot.slane %v9569_v0, 2 }
 0x64b   : > { %v5527_v11 = vrot.slane %v9572_v63, 2  ;;  %v5528_v26 = vrot.slane %v9575_v61, 2  ;;  %v5529_v28 = vrot.slane %v9578_v7, 2  ;;  %v5575_v12 = vrot.slane %v9582_v1, 1  ;;  %v10680_v63 = vld [vmem:[#allocation15_spill] sm:$0xff] }
 0x64c   : > { %v5576_v36 = vrot.slane %v9585_v23, 1  ;;  %v5577_v20 = vrot.slane %v9593_v31, 1  ;;  %v5623_v51 = vrot.slane %v9596_v50, 1  ;;  %v5624_v54 = vrot.slane %v9601_v44, 1 }
 0x64d   : > { %v5625_v58 = vrot.slane %v9604_v2, 1  ;;  %v5655_v0 = vsel %vm1125_vm6, %v10679_v25, %v5047_v57  ;;  %v5656_v61 = vsel %vm1125_vm6, %v10680_v63, %v5048_v40  ;;  %v5657_v7 = vsel %vm1125_vm6, %v10681_v22, %v5049_v39 }
 0x64e   : > { %v5672_v1 = vsel %vm5658_vm4, %v5655_v0, %v5095_v62  ;;  %v5773_v23 = vsel %vm1125_vm6, %v5383_v49, %v5431_v4  ;;  %v5673_v31 = vsel %vm5658_vm4, %v5656_v61, %v5096_v14  ;;  %v5674_v50 = vsel %vm5658_vm4, %v5657_v7, %v5097_v37 }
 0x64f   : > { %v5689_v44 = vsel %vm5675_vm5, %v5672_v1, %v5143_v18  ;;  %v5774_v2 = vsel %vm1125_vm6, %v5384_v33, %v5432_v3  ;;  %v5690_v57 = vsel %vm5675_vm5, %v5673_v31, %v5144_v10  ;;  %v5691_v48 = vsel %vm5675_vm5, %v5674_v50, %v5145_v45 }
 0x650   : > { %v5706_v40 = vsel %vm5692_vm7, %v5689_v44, %v5191_v35  ;;  %v5775_v39 = vsel %vm1125_vm6, %v5385_v13, %v5433_v53  ;;  %v5707_v62 = vsel %vm5692_vm7, %v5690_v57, %v5192_v42  ;;  %v5708_v21 = vsel %vm5692_vm7, %v5691_v48, %v5193_v38  ;;  %v6534_v13 = vld [vmem:[%s6779_s16 + $0xf0] sm:$0xff] }
 0x651   : > { %v5723_v14 = vsel %vm2187_vm10, %v5706_v40, %v5239_v29  ;;  %v5789_v37 = vsel %vm5658_vm4, %v5773_v23, %v5479_v32  ;;  %v5724_v18 = vsel %vm2187_vm10, %v5707_v62, %v5240_v59  ;;  %v5725_v6 = vsel %vm2187_vm10, %v5708_v21, %v5241_v15 }
 0x652   : > { %v5740_v10 = vsel %vm5726_vm8, %v5723_v14, %v5287_v19  ;;  %v5790_v45 = vsel %vm5658_vm4, %v5774_v2, %v5480_v9  ;;  %v5741_v35 = vsel %vm5726_vm8, %v5724_v18, %v5288_v34  ;;  %v5742_v43 = vsel %vm5726_vm8, %v5725_v6, %v5289_v46  ;;  %v6532_v19 = vld [vmem:[%s6779_s16 + $0xd0] sm:$0xff] }
 0x653   : > { %v5757_v42 = vsel %vm5743_vm9, %v5740_v10, %v5335_v56  ;;  %v5791_v60 = vsel %vm5658_vm4, %v5775_v39, %v5481_v47  ;;  %v5758_v38 = vsel %vm5743_vm9, %v5741_v35, %v5336_v8  ;;  %v5759_v16 = vsel %vm5743_vm9, %v5742_v43, %v5337_v27  ;;  %v6533_v56 = vld [vmem:[%s6779_s16 + $0xe0] sm:$0xff]  ;;  %v6535_v47 = vld [vmem:[%s6779_s16 + $0xd8] sm:$0xff] }
 0x654   : > { %v5805_v29 = vsel %vm5675_vm5, %v5789_v37, %v5527_v11  ;;  %v5806_v55 = vsel %vm5675_vm5, %v5790_v45, %v5528_v26  ;;  %v5807_v59 = vsel %vm5675_vm5, %v5791_v60, %v5529_v28  ;;  %v5898_v5 = vadd.f32 %v6532_v19, %v5757_v42  ;;  %v6536_v26 = vld [vmem:[%s6779_s16 + $0xe8] sm:$0xff] }
 0x655   : > { %v5821_v17 = vsel %vm5692_vm7, %v5805_v29, %v5575_v12  ;;  %v5822_v15 = vsel %vm5692_vm7, %v5806_v55, %v5576_v36  ;;  %v5823_v34 = vsel %vm5692_vm7, %v5807_v59, %v5577_v20  ;;  %v5900_v8 = vadd.f32 %v6533_v56, %v5758_v38  ;;  %v6537_v12 = vld [vmem:[%s6779_s16 + $0xf8] sm:$0xff] }
 0x656   : > { %v5837_v24 = vsel %vm2187_vm10, %v5821_v17, %v5623_v51  ;;  %v5838_v46 = vsel %vm2187_vm10, %v5822_v15, %v5624_v54  ;;  %v5839_v27 = vsel %vm2187_vm10, %v5823_v34, %v5625_v58  ;;  %v5902_v4 = vadd.f32 %v6534_v13, %v5759_v16  ;;  %5930 = vst.msk [vmem:[%s8479_s14 + $0xd0] sm:$0xff] %vm2475_vm2, %v5898_v5  ;;  %v10683_v20 = vld [vmem:[#allocation11_spill] sm:$0xff] }
 0x657   : > { %v5853_v49 = vsel %vm5726_vm8, %v5837_v24, %v9607_v41  ;;  %v5854_v33 = vsel %vm5726_vm8, %v5838_v46, %v9610_v52  ;;  %v5855_v3 = vsel %vm5726_vm8, %v5839_v27, %v9613_v30  ;;  %5932 = vst.msk [vmem:[%s8479_s14 + $0xe0] sm:$0xff] %vm2475_vm2, %v5900_v8  ;;  %v10682_v41 = vld [vmem:[#allocation24_spill] sm:$0xff] }
 0x658   : > { %v5869_v53 = vsel %vm5743_vm9, %v5853_v49, %v10679_v25  ;;  %v5870_v32 = vsel %vm5743_vm9, %v5854_v33, %v10680_v63  ;;  %v3885_v52 = vmul.f32 0.2, %v10682_v41  ;;  %v5871_v9 = vsel %vm5743_vm9, %v5855_v3, %v10681_v22  ;;  %5934 = vst.msk [vmem:[%s8479_s14 + $0xf0] sm:$0xff] %vm2475_vm2, %v5902_v4  ;;  %v10685_v25 = vld [vmem:[#allocation21_spill] sm:$0xff]  ;;  %v10689_v22 = vld [vmem:[#allocation35_spill] sm:$0xff] }
 0x659   : > { %v5899_v11 = vadd.f32 %v6535_v47, %v5869_v53  ;;  %v5901_v30 = vadd.f32 %v6536_v26, %v5870_v32  ;;  %v3888_v28 = vmul.f32 0.6666667, %v10682_v41  ;;  %v5903_v36 = vadd.f32 %v6537_v12, %v5871_v9  ;;  %v10687_v63 = vld [vmem:[#allocation45_spill] sm:$0xff] }
 0x65a   : > { %v9719_v51 = vadd.f32 %v3885_v52, %v10683_v20  ;;  %v3890_v54 = vmul.f32 0.8666667, %v10682_v41  ;;  %v3893_v58 = vmul.f32 0.4, %v10682_v41 }
 0x65b   : > { %5931 = vst.msk [vmem:[%s8479_s14 + $0xd8] sm:$0xff] %vm2475_vm2, %v5899_v11  ;;  %5933 = vst.msk [vmem:[%s8479_s14 + $0xe8] sm:$0xff] %vm2475_vm2, %v5901_v30  ;;  %v9728_v0 = vadd.f32 %v3888_v28, %v10685_v25 }
 0x65c   : > { %10684 = vst [vmem:[#allocation58_spill] sm:$0xff] %v9719_v51  ;;  %5935 = vst.msk [vmem:[%s8479_s14 + $0xf8] sm:$0xff] %vm2475_vm2, %v5903_v36  ;;  %v9733_v61 = vadd.f32 %v10687_v63, %v3890_v54  ;;  %v9736_v7 = vadd.f32 %v10689_v22, %v3893_v58  ;;  %v9739_v1 = vmul.f32 0.53333336, %v9719_v51  ;;  %v9742_v23 = vmul.f32 0.46666667, %v9719_v51 }
 0x65d   : > { %10686 = vst [vmem:[#allocation59_spill] sm:$0xff] %v9728_v0  ;;  %v9745_v31 = vmul.f32 0.53333336, %v9728_v0  ;;  %v9748_v50 = vmul.f32 0.46666667, %v9728_v0 }
 0x65e   : > { %10688 = vst [vmem:[#allocation60_spill] sm:$0xff] %v9733_v61  ;;  %10690 = vst [vmem:[#allocation61_spill] sm:$0xff] %v9736_v7  ;;  %v9751_v44 = vmul.f32 0.06666667, %v9719_v51  ;;  %v9754_v2 = vmul.f32 0.53333336, %v9733_v61 }
 0x65f   : > { %10691 = vst [vmem:[#allocation62_spill] sm:$0xff] %v9739_v1  ;;  %10692 = vst [vmem:[#allocation64_spill] sm:$0xff] %v9742_v23  ;;  %v9757_v57 = vmul.f32 0.53333336, %v9736_v7  ;;  %v9760_v48 = vmul.f32 0.46666667, %v9733_v61 }
 0x660   : > { %10693 = vst [vmem:[#allocation65_spill] sm:$0xff] %v9745_v31  ;;  %10694 = vst [vmem:[#allocation66_spill] sm:$0xff] %v9748_v50  ;;  %v9763_v40 = vmul.f32 0.46666667, %v9736_v7  ;;  %v3957_v39 = vrot.slane %v9742_v23, 1  ;;  %v3958_v62 = vrot.slane %v9748_v50, 1 }
 0x661   : > { %10695 = vst [vmem:[#allocation67_spill] sm:$0xff] %v9751_v44  ;;  %10696 = vst [vmem:[#allocation68_spill] sm:$0xff] %v9754_v2  ;;  %v9768_v21 = vmul.f32 0.06666667, %v9728_v0  ;;  %v3959_v14 = vrot.slane %v9760_v48, 1 }
 0x662   : > { %10697 = vst [vmem:[#allocation63_spill] sm:$0xff] %v9757_v57  ;;  %10698 = vst [vmem:[#allocation46_spill] sm:$0xff] %v9760_v48  ;;  %v9772_v37 = vmul.f32 0.06666667, %v9733_v61  ;;  %v9775_v18 = vmul.f32 0.06666667, %v9736_v7  ;;  %v9780_v45 = vadd.f32 %v3957_v39, %v9739_v1  ;;  %v9783_v35 = vadd.f32 %v3958_v62, %v9745_v31 }
 0x663   : > { %10699 = vst [vmem:[#allocation52_spill] sm:$0xff] %v9763_v40  ;;  %v3960_v10 = vrot.slane %v9763_v40, 1  ;;  %v9786_v43 = vmul.f32 0.93333334, %v9719_v51  ;;  %v9789_v42 = vadd.f32 %v3959_v14, %v9754_v2  ;;  %v9792_v60 = vmul.f32 0.93333334, %v9728_v0 }
 0x664   : > { %10700 = vst [vmem:[#allocation16_spill] sm:$0xff] %v9780_v45  ;;  %10701 = vst [vmem:[#allocation20_spill] sm:$0xff] %v9783_v35  ;;  %v9795_v38 = vmul.f32 0.93333334, %v9733_v61  ;;  %v9798_v16 = vmul.f32 0.93333334, %v9736_v7 }
 0x665   : > { %10702 = vst [vmem:[#allocation10_spill] sm:$0xff] %v9789_v42  ;;  %10703 = vst [vmem:[#allocation48_spill] sm:$0xff] %v9792_v60  ;;  %v9801_v29 = vadd.f32 %v3960_v10, %v9757_v57  ;;  %v4051_v55 = vrot.slane %v9786_v43, 1  ;;  %v9805_v59 = vmul.f32 0.6, %v9719_v51  ;;  %v4052_v15 = vrot.slane %v9792_v60, 1 }
 0x666   : > { %10704 = vst [vmem:[#allocation49_spill] sm:$0xff] %v9795_v38  ;;  %10705 = vst [vmem:[#allocation50_spill] sm:$0xff] %v9798_v16  ;;  %v9808_v17 = vmul.f32 0.6, %v9728_v0  ;;  %v4053_v19 = vrot.slane %v9795_v38, 1  ;;  %v4054_v5 = vrot.slane %v9798_v16, 1 }
 0x667   : > { %10706 = vst [vmem:[#allocation51_spill] sm:$0xff] %v9801_v29  ;;  %v9814_v34 = vmul.f32 0.6, %v9733_v61  ;;  %v9817_v24 = vadd.f32 %v4051_v55, %v9751_v44  ;;  %v9820_v46 = vmul.f32 0.6, %v9736_v7  ;;  %v9829_v27 = vadd.f32 %v4052_v15, %v9768_v21 }
 0x668   : > { %v9823_v56 = vmul.f32 0.4, %v9719_v51  ;;  %v9826_v8 = vmul.f32 0.4, %v9728_v0  ;;  %v9832_v49 = vadd.f32 %v4053_v19, %v9772_v37  ;;  %v9835_v33 = vadd.f32 %v4054_v5, %v9775_v18 }
 0x669   : > { %10707 = vst [vmem:[#allocation53_spill] sm:$0xff] %v9817_v24  ;;  %10708 = vst [vmem:[#allocation54_spill] sm:$0xff] %v9829_v27  ;;  %v9838_v13 = vmul.f32 0.4, %v9733_v61  ;;  %v9841_v4 = vmul.f32 0.4, %v9736_v7 }
 0x66a   : > { %10709 = vst [vmem:[#allocation55_spill] sm:$0xff] %v9832_v49  ;;  %10710 = vst [vmem:[#allocation56_spill] sm:$0xff] %v9835_v33  ;;  %v4147_v3 = vrot.slane %v9823_v56, 1  ;;  %v4148_v53 = vrot.slane %v9826_v8, 1  ;;  %v9846_v32 = vmul.f32 0.13333334, %v9719_v51 }
 0x66b   : > { %v4149_v41 = vrot.slane %v9838_v13, 1  ;;  %v9850_v52 = vmul.f32 0.13333334, %v9728_v0  ;;  %v9853_v9 = vmul.f32 0.13333334, %v9733_v61  ;;  %v4150_v11 = vrot.slane %v9841_v4, 1 }
 0x66c   : > { %v9858_v26 = vadd.f32 %v4147_v3, %v9805_v59  ;;  %v9861_v30 = vadd.f32 %v4148_v53, %v9808_v17  ;;  %v9864_v28 = vmul.f32 0.13333334, %v9736_v7  ;;  %v9870_v36 = vmul.f32 0.8666667, %v9719_v51 }
 0x66d   : > { %v9867_v12 = vadd.f32 %v4149_v41, %v9814_v34  ;;  %v9873_v20 = vmul.f32 0.8666667, %v9728_v0  ;;  %v9876_v54 = vmul.f32 0.8666667, %v9733_v61  ;;  %v9879_v58 = vadd.f32 %v4150_v11, %v9820_v46 }
 0x66e   : > { %10711 = vst [vmem:[#allocation70_spill] sm:$0xff] %v9858_v26  ;;  %10712 = vst [vmem:[#allocation71_spill] sm:$0xff] %v9861_v30  ;;  %v9882_v25 = vmul.f32 0.8666667, %v9736_v7  ;;  %v9885_v63 = vmul.f32 0.6666667, %v9719_v51 }
 0x66f   : > { %10713 = vst [vmem:[#allocation72_spill] sm:$0xff] %v9867_v12  ;;  %10714 = vst [vmem:[#allocation73_spill] sm:$0xff] %v9879_v58  ;;  %v9888_v22 = vmul.f32 0.6666667, %v9728_v0  ;;  %v4243_v39 = vrot.slane %v9870_v36, 1  ;;  %v4244_v62 = vrot.slane %v9873_v20, 1 }
 0x670   : > { %v4245_v14 = vrot.slane %v9876_v54, 1  ;;  %v9894_v10 = vmul.f32 0.6666667, %v9733_v61  ;;  %v4246_v55 = vrot.slane %v9882_v25, 1  ;;  %v9898_v15 = vmul.f32 0.6666667, %v9736_v7 }
 0x671   : > { %v9901_v19 = vmul.f32 0.33333334, %v9719_v51  ;;  %v9905_v3 = vadd.f32 %v4243_v39, %v9846_v32  ;;  %v9908_v53 = vadd.f32 %v4244_v62, %v9850_v52  ;;  %v4308_v11 = vmul.f32 0.33333334, %v9728_v0 }
 0x672   : > { %v9911_v41 = vadd.f32 %v4245_v14, %v9853_v9  ;;  %v9915_v6 = vadd.f32 %v4246_v55, %v9864_v28  ;;  %v9918_v47 = vmul.f32 0.33333334, %v9733_v61  ;;  %v9921_v58 = vmul.f32 0.33333334, %v9736_v7 }
 0x673   : > { %10715 = vst [vmem:[#allocation74_spill] sm:$0xff] %v9905_v3  ;;  %10716 = vst [vmem:[#allocation75_spill] sm:$0xff] %v9908_v53  ;;  %v4339_v39 = vrot.slane %v9901_v19, 1  ;;  %v4340_v5 = vrot.slane %v4308_v11, 1  ;;  %v4387_v62 = vmul.f32 0.2, %v9719_v51 }
 0x674   : > { %10717 = vst [vmem:[#allocation29_spill] sm:$0xff] %v9911_v41  ;;  %10718 = vst [vmem:[#allocation43_spill] sm:$0xff] %v9915_v6  ;;  %v4388_v53 = vmul.f32 0.2, %v9728_v0  ;;  %v4724_v14 = vrot.slane %v9888_v22, 1  ;;  %v4341_v41 = vrot.slane %v9918_v47, 1 }
 0x675   : > { %v4342_v55 = vrot.slane %v9921_v58, 1  ;;  %v9930_v6 = vadd.f32 %v4339_v39, %v9885_v63  ;;  %v4389_v3 = vmul.f32 0.2, %v9733_v61  ;;  %v9934_v12 = vadd.f32 %v4340_v5, %v9888_v22 }
 0x676   : > { %v4390_v30 = vmul.f32 0.2, %v9736_v7  ;;  %v4403_v26 = vmul.f32 0.8, %v9719_v51  ;;  %v4404_v33 = vmul.f32 0.8, %v9728_v0  ;;  %v9940_v49 = vadd.f32 %v4341_v41, %v9894_v10 }
 0x677   : > { %10719 = vst [vmem:[#allocation44_spill] sm:$0xff] %v9930_v6  ;;  %10720 = vst [vmem:[#allocation30_spill] sm:$0xff] %v9934_v12  ;;  %v9943_v27 = vadd.f32 %v4342_v55, %v9898_v15  ;;  %v4405_v39 = vmul.f32 0.8, %v9733_v61  ;;  %v4406_v6 = vmul.f32 0.8, %v9736_v7 }
 0x678   : > { %10721 = vst [vmem:[#allocation31_spill] sm:$0xff] %v9940_v49  ;;  %v4435_v24 = vrot.slane %v4403_v26, 1  ;;  %v4436_v29 = vrot.slane %v4404_v33, 1  ;;  %v4483_v22 = vmul.f32 0.73333335, %v9719_v51  ;;  %v4660_v31 = vrot.slane %v4388_v53, 1 }
 0x679   : > { %10722 = vst [vmem:[#allocation9_spill] sm:$0xff] %v9943_v27  ;;  %v4484_v5 = vmul.f32 0.73333335, %v9728_v0  ;;  %v4437_v12 = vrot.slane %v4405_v39, 1  ;;  %v4438_v42 = vrot.slane %v4406_v6, 1  ;;  %v4661_v1 = vrot.slane %v4389_v3, 1 }
 0x67a   : > { %v4485_v35 = vmul.f32 0.73333335, %v9733_v61  ;;  %v4486_v41 = vmul.f32 0.73333335, %v9736_v7  ;;  %v9951_v49 = vadd.f32 %v4435_v24, %v4387_v62  ;;  %v9953_v55 = vadd.f32 %v4436_v29, %v4388_v53  ;;  %v10735_v53 = vld [vmem:[#allocation49_spill] sm:$0xff] }
 0x67b   : > { %v4499_v27 = vmul.f32 0.26666668, %v9719_v51  ;;  %v4500_v40 = vmul.f32 0.26666668, %v9728_v0  ;;  %v9957_v45 = vadd.f32 %v4437_v12, %v4389_v3  ;;  %v9959_v48 = vadd.f32 %v4438_v42, %v4390_v30  ;;  %v10734_v3 = vld [vmem:[#allocation48_spill] sm:$0xff] }
 0x67c   : > { %10723 = vst [vmem:[#allocation17_spill] sm:$0xff] %v9951_v49  ;;  %10724 = vst [vmem:[#allocation8_spill] sm:$0xff] %v9953_v55  ;;  %v4501_v50 = vmul.f32 0.26666668, %v9733_v61  ;;  %v4502_v23 = vmul.f32 0.26666668, %v9736_v7 }
 0x67d   : > { %10725 = vst [vmem:[#allocation19_spill] sm:$0xff] %v9957_v45  ;;  %10726 = vst [vmem:[#allocation12_spill] sm:$0xff] %v9959_v48  ;;  %v4531_v57 = vrot.slane %v4499_v27, 1  ;;  %v4532_v16 = vrot.slane %v4500_v40, 1  ;;  %v4595_v38 = vrot.slane %v4483_v22, 1  ;;  %v4596_v60 = vrot.slane %v4484_v5, 1 }
 0x67e   : > { %v4533_v24 = vrot.slane %v4501_v50, 1  ;;  %v4534_v49 = vrot.slane %v4502_v23, 1  ;;  %v4597_v29 = vrot.slane %v4485_v35, 1  ;;  %v4598_v55 = vrot.slane %v4486_v41, 1 }
 0x67f   : > { %v9963_v2 = vadd.f32 %v4531_v57, %v4483_v22  ;;  %v9965_v51 = vadd.f32 %v4532_v16, %v4484_v5  ;;  %v9967_v12 = vadd.f32 %v4595_v38, %v4499_v27  ;;  %v9969_v42 = vadd.f32 %v4596_v60, %v4500_v40  ;;  %v10742_v5 = vld [vmem:[#allocation46_spill] sm:$0xff] }
 0x680   : > { %v9971_v0 = vadd.f32 %v4533_v24, %v4485_v35  ;;  %v9973_v61 = vadd.f32 %v4534_v49, %v4486_v41  ;;  %v9975_v7 = vadd.f32 %v4597_v29, %v4501_v50  ;;  %v9977_v48 = vadd.f32 %v4598_v55, %v4502_v23  ;;  %v10744_v55 = vld [vmem:[#allocation16_spill] sm:$0xff] }
 0x681   : > { %v4659_v45 = vrot.slane %v4387_v62, 1  ;;  %v4662_v44 = vrot.slane %v4390_v30, 1  ;;  %v4725_v57 = vrot.slane %v9894_v10, 1  ;;  %v4726_v16 = vrot.slane %v9898_v15, 1  ;;  %v10745_v29 = vld [vmem:[#allocation52_spill] sm:$0xff] }
 0x682   : > { %v10727_v40 = vrot.slane %v9885_v63, 1  ;;  %v9986_v35 = vadd.f32 %v4724_v14, %v4308_v11  ;;  %v9990_v50 = vadd.f32 %v4660_v31, %v4404_v33  ;;  %v9992_v23 = vadd.f32 %v4661_v1, %v4405_v39  ;;  %v10738_v14 = vld [vmem:[#allocation64_spill] sm:$0xff]  ;;  %v10740_v39 = vld [vmem:[#allocation66_spill] sm:$0xff] }
 0x683   : > { %v9988_v38 = vadd.f32 %v4659_v45, %v4403_v26  ;;  %v9994_v27 = vadd.f32 %v4662_v44, %v4406_v6  ;;  %v9997_v49 = vadd.f32 %v4725_v57, %v9918_v47  ;;  %v10000_v30 = vadd.f32 %v4726_v16, %v9921_v58  ;;  %v10732_v58 = vld [vmem:[#allocation65_spill] sm:$0xff]  ;;  %v10747_v16 = vld [vmem:[#allocation20_spill] sm:$0xff] }
 0x684   : > { %v9984_v60 = vadd.f32 %v10727_v40, %v9901_v19  ;;  %v4787_v63 = vrot.slane %v9846_v32, 1  ;;  %v4788_v10 = vrot.slane %v9850_v52, 1  ;;  %v4789_v15 = vrot.slane %v9853_v9, 1 }
 0x685   : > { %v4790_v45 = vrot.slane %v9864_v28, 1  ;;  %v4852_v31 = vrot.slane %v9808_v17, 1  ;;  %v4853_v1 = vrot.slane %v9814_v34, 1  ;;  %v4854_v33 = vrot.slane %v9820_v46, 1  ;;  %v10729_v28 = vld [vmem:[#allocation67_spill] sm:$0xff] }
 0x686   : > { %v10009_v44 = vadd.f32 %v4787_v63, %v9870_v36  ;;  %v10012_v6 = vadd.f32 %v4788_v10, %v9873_v20  ;;  %v10728_v32 = vrot.slane %v9805_v59, 1  ;;  %v10021_v9 = vadd.f32 %v4789_v15, %v9876_v54  ;;  %v10731_v54 = vld [vmem:[#allocation62_spill] sm:$0xff]  ;;  %v10749_v15 = vld [vmem:[#allocation51_spill] sm:$0xff] }
 0x687   : > { %v10024_v17 = vadd.f32 %v4790_v45, %v9882_v25  ;;  %v10027_v34 = vadd.f32 %v4852_v31, %v9826_v8  ;;  %v10030_v47 = vadd.f32 %v4853_v1, %v9838_v13  ;;  %v10033_v26 = vadd.f32 %v4854_v33, %v9841_v4  ;;  %v10733_v13 = vld [vmem:[#allocation68_spill] sm:$0xff]  ;;  %v10748_v63 = vld [vmem:[#allocation10_spill] sm:$0xff]  ;;  %v10750_v31 = vld [vmem:[#allocation53_spill] sm:$0xff] }
 0x688   : > { %v10018_v52 = vadd.f32 %v10728_v32, %v9823_v56  ;;  %v4916_v46 = vrot.slane %v9768_v21, 1  ;;  %v4917_v59 = vrot.slane %v9772_v37, 1  ;;  %v4918_v56 = vrot.slane %v9775_v18, 1  ;;  %v10736_v37 = vld [vmem:[#allocation50_spill] sm:$0xff]  ;;  %v10737_v18 = vld [vmem:[#allocation63_spill] sm:$0xff] }
 0x689   : > { %v10730_v36 = vrot.slane %v10729_v28, 1  ;;  %v4979_v8 = vrot.slane %v10731_v54, 1  ;;  %v4980_v25 = vrot.slane %v10732_v58, 1  ;;  %v4981_v19 = vrot.slane %v10733_v13, 1  ;;  %v10751_v33 = vld [vmem:[#allocation54_spill] sm:$0xff] }
 0x68a   : > { %v10047_v4 = vadd.f32 %v4916_v46, %v10734_v3  ;;  %v10050_v21 = vadd.f32 %v4917_v59, %v10735_v53  ;;  %v10053_v11 = vadd.f32 %v4918_v56, %v10736_v37  ;;  %v4982_v62 = vrot.slane %v10737_v18, 1  ;;  %v10752_v46 = vld [vmem:[#allocation55_spill] sm:$0xff]  ;;  %v10753_v56 = vld [vmem:[#allocation56_spill] sm:$0xff]  ;;  %v10758_v53 = vld [vmem:[#allocation74_spill] sm:$0xff] }
 0x68b   : > { %v10041_v20 = vadd.f32 %v10730_v36, %v9786_v43  ;;  %v10057_v43 = vadd.f32 %v4979_v8, %v10738_v14  ;;  %v10060_v22 = vadd.f32 %v4980_v25, %v10740_v39  ;;  %v10063_v41 = vadd.f32 %v4981_v19, %v10742_v5  ;;  %v10754_v36 = vld [vmem:[#allocation70_spill] sm:$0xff]  ;;  %v10755_v8 = vld [vmem:[#allocation71_spill] sm:$0xff]  ;;  %v10756_v25 = vld [vmem:[#allocation72_spill] sm:$0xff] }
 0x68c   : > { %v5043_v24 = vrot.slane %v10744_v55, 7  ;;  %v10067_v57 = vadd.f32 %v4982_v62, %v10745_v29  ;;  %v5044_v40 = vrot.slane %v10747_v16, 7  ;;  %v5045_v10 = vrot.slane %v10748_v63, 7  ;;  %v10757_v19 = vld [vmem:[#allocation73_spill] sm:$0xff]  ;;  %v10759_v18 = vld [vmem:[#allocation75_spill] sm:$0xff]  ;;  %v10762_v29 = vld [vmem:[#allocation44_spill] sm:$0xff] }
 0x68d   : > { %10739 = vst [vmem:[#allocation13_spill] sm:$0xff] %v10057_v43  ;;  %10741 = vst [vmem:[#allocation22_spill] sm:$0xff] %v10060_v22  ;;  %v5046_v45 = vrot.slane %v10749_v15, 7  ;;  %v5091_v1 = vrot.slane %v10750_v31, 6  ;;  %v5092_v32 = vrot.slane %v10751_v33, 6  ;;  %v5093_v59 = vrot.slane %v10752_v46, 6 }
 0x68e   : > { %10743 = vst [vmem:[#allocation26_spill] sm:$0xff] %v10063_v41  ;;  %10746 = vst [vmem:[#allocation76_spill] sm:$0xff] %v10067_v57  ;;  %v5094_v28 = vrot.slane %v10753_v56, 6  ;;  %v5139_v54 = vrot.slane %v10754_v36, 6  ;;  %v5140_v58 = vrot.slane %v10755_v8, 6  ;;  %v5141_v13 = vrot.slane %v10756_v25, 6 }
 0x68f   : > { %v5142_v3 = vrot.slane %v10757_v19, 6  ;;  %v5187_v37 = vrot.slane %v10758_v53, 5  ;;  %v5188_v62 = vrot.slane %v10759_v18, 5  ;;  %v10760_v14 = vld [vmem:[#allocation29_spill] sm:$0xff]  ;;  %v10761_v5 = vld [vmem:[#allocation43_spill] sm:$0xff]  ;;  %v5235_v16 = vrot.slane %v10762_v29, 5 }
 0x690   : > { %v5189_v39 = vrot.slane %v10760_v14, 5  ;;  %v5190_v55 = vrot.slane %v10761_v5, 5  ;;  %v10763_v63 = vld [vmem:[#allocation30_spill] sm:$0xff]  ;;  %v10764_v31 = vld [vmem:[#allocation31_spill] sm:$0xff]  ;;  %v10765_v46 = vld [vmem:[#allocation9_spill] sm:$0xff]  ;;  %v5331_v14 = vrot.slane %v9963_v2, 4 }
 0x691   : > { %v5236_v15 = vrot.slane %v10763_v63, 5  ;;  %v5237_v33 = vrot.slane %v10764_v31, 5  ;;  %v5238_v56 = vrot.slane %v10765_v46, 5  ;;  %v10766_v36 = vld [vmem:[#allocation17_spill] sm:$0xff]  ;;  %v10767_v25 = vld [vmem:[#allocation8_spill] sm:$0xff]  ;;  %v10768_v57 = vld [vmem:[#allocation19_spill] sm:$0xff] }
 0x692   : > { %v5283_v8 = vrot.slane %v10766_v36, 4  ;;  %v5284_v19 = vrot.slane %v10767_v25, 4  ;;  %v5285_v53 = vrot.slane %v10768_v57, 4  ;;  %v10769_v41 = vld [vmem:[#allocation12_spill] sm:$0xff]  ;;  %v5332_v5 = vrot.slane %v9965_v51, 4  ;;  %v10770_v22 = vld [vmem:[#allocation58_spill] sm:$0xff] }
 0x693   : > { %v5286_v18 = vrot.slane %v10769_v41, 4  ;;  %v5333_v29 = vrot.slane %v9971_v0, 4  ;;  %v5334_v63 = vrot.slane %v9973_v61, 4  ;;  %v5379_v31 = vrot.slane %v9967_v12, 3  ;;  %v10772_v43 = vld [vmem:[#allocation60_spill] sm:$0xff] }
 0x694   : > { %v5380_v46 = vrot.slane %v9969_v42, 3  ;;  %v5381_v36 = vrot.slane %v9975_v7, 3  ;;  %v5382_v25 = vrot.slane %v9977_v48, 3  ;;  %v5427_v57 = vrot.slane %v9988_v38, 3 }
 0x695   : > { %v5428_v41 = vrot.slane %v9990_v50, 3  ;;  %v5429_v2 = vrot.slane %v9992_v23, 3  ;;  %v5430_v51 = vrot.slane %v9994_v27, 3  ;;  %v5475_v0 = vrot.slane %v9984_v60, 2 }
 0x696   : > { %v5476_v61 = vrot.slane %v9986_v35, 2  ;;  %v5477_v12 = vrot.slane %v9997_v49, 2  ;;  %v5478_v42 = vrot.slane %v10000_v30, 2  ;;  %v5523_v7 = vrot.slane %v10009_v44, 2 }
 0x697   : > { %v5524_v48 = vrot.slane %v10012_v6, 2  ;;  %v5525_v38 = vrot.slane %v10021_v9, 2  ;;  %v5526_v50 = vrot.slane %v10024_v17, 2  ;;  %v5571_v23 = vrot.slane %v10018_v52, 1  ;;  %v10771_v17 = vld [vmem:[#allocation59_spill] sm:$0xff] }
 0x698   : > { %v5572_v27 = vrot.slane %v10027_v34, 1  ;;  %v5573_v60 = vrot.slane %v10030_v47, 1  ;;  %v5574_v35 = vrot.slane %v10033_v26, 1  ;;  %v5619_v49 = vrot.slane %v10041_v20, 1  ;;  %v10773_v47 = vld [vmem:[#allocation61_spill] sm:$0xff] }
 0x699   : > { %v5620_v30 = vrot.slane %v10047_v4, 1  ;;  %v5621_v44 = vrot.slane %v10050_v21, 1  ;;  %v5622_v6 = vrot.slane %v10053_v11, 1  ;;  %v5651_v9 = vsel %vm1125_vm6, %v10770_v22, %v5043_v24 }
 0x69a   : > { %v5652_v52 = vsel %vm1125_vm6, %v10771_v17, %v5044_v40  ;;  %v5653_v34 = vsel %vm1125_vm6, %v10772_v43, %v5045_v10  ;;  %v5654_v26 = vsel %vm1125_vm6, %v10773_v47, %v5046_v45  ;;  %v5668_v20 = vsel %vm5658_vm4, %v5651_v9, %v5091_v1 }
 0x69b   : > { %v5669_v4 = vsel %vm5658_vm4, %v5652_v52, %v5092_v32  ;;  %v5670_v21 = vsel %vm5658_vm4, %v5653_v34, %v5093_v59  ;;  %v5671_v11 = vsel %vm5658_vm4, %v5654_v26, %v5094_v28  ;;  %v5685_v22 = vsel %vm5675_vm5, %v5668_v20, %v5139_v54  ;;  %v6540_v34 = vld [vmem:[%s6779_s16 + $0xa0] sm:$0xff]  ;;  %v6541_v20 = vld [vmem:[%s6779_s16 + $0xa8] sm:$0xff] }
 0x69c   : > { %v5686_v24 = vsel %vm5675_vm5, %v5669_v4, %v5140_v58  ;;  %v5687_v40 = vsel %vm5675_vm5, %v5670_v21, %v5141_v13  ;;  %v5688_v17 = vsel %vm5675_vm5, %v5671_v11, %v5142_v3  ;;  %v5702_v10 = vsel %vm5692_vm7, %v5685_v22, %v5187_v37  ;;  %v6542_v21 = vld [vmem:[%s6779_s16 + $0xb0] sm:$0xff]  ;;  %v6543_v11 = vld [vmem:[%s6779_s16 + $0xb8] sm:$0xff] }
 0x69d   : > { %v5703_v45 = vsel %vm5692_vm7, %v5686_v24, %v5188_v62  ;;  %v5704_v1 = vsel %vm5692_vm7, %v5687_v40, %v5189_v39  ;;  %v5705_v32 = vsel %vm5692_vm7, %v5688_v17, %v5190_v55  ;;  %v5719_v59 = vsel %vm2187_vm10, %v5702_v10, %v5235_v16  ;;  %v6539_v17 = vld [vmem:[%s6779_s16 + $0x98] sm:$0xff]  ;;  %v6544_v24 = vld [vmem:[%s6779_s16 + $0xc0] sm:$0xff]  ;;  %v6545_v10 = vld [vmem:[%s6779_s16 + $0xc8] sm:$0xff] }
 0x69e   : > { %v5720_v28 = vsel %vm2187_vm10, %v5703_v45, %v5236_v15  ;;  %v5721_v54 = vsel %vm2187_vm10, %v5704_v1, %v5237_v33  ;;  %v5722_v58 = vsel %vm2187_vm10, %v5705_v32, %v5238_v56  ;;  %v5736_v13 = vsel %vm5726_vm8, %v5719_v59, %v5283_v8 }
 0x69f   : > { %v5737_v3 = vsel %vm5726_vm8, %v5720_v28, %v5284_v19  ;;  %v5738_v22 = vsel %vm5726_vm8, %v5721_v54, %v5285_v53  ;;  %v5739_v37 = vsel %vm5726_vm8, %v5722_v58, %v5286_v18  ;;  %v5753_v62 = vsel %vm5743_vm9, %v5736_v13, %v5331_v14 }
 0x6a0   : > { %v5754_v39 = vsel %vm5743_vm9, %v5737_v3, %v5332_v5  ;;  %v5755_v55 = vsel %vm5743_vm9, %v5738_v22, %v5333_v29  ;;  %v5756_v16 = vsel %vm5743_vm9, %v5739_v37, %v5334_v63  ;;  %v5769_v15 = vsel %vm1125_vm6, %v5379_v31, %v5427_v57 }
 0x6a1   : > { %v5770_v33 = vsel %vm1125_vm6, %v5380_v46, %v5428_v41  ;;  %v5771_v56 = vsel %vm1125_vm6, %v5381_v36, %v5429_v2  ;;  %v5772_v8 = vsel %vm1125_vm6, %v5382_v25, %v5430_v51  ;;  %v5785_v19 = vsel %vm5658_vm4, %v5769_v15, %v5475_v0 }
 0x6a2   : > { %v5786_v53 = vsel %vm5658_vm4, %v5770_v33, %v5476_v61  ;;  %v5787_v18 = vsel %vm5658_vm4, %v5771_v56, %v5477_v12  ;;  %v5788_v14 = vsel %vm5658_vm4, %v5772_v8, %v5478_v42  ;;  %v5801_v5 = vsel %vm5675_vm5, %v5785_v19, %v5523_v7  ;;  %v10774_v61 = vld [vmem:[#allocation13_spill] sm:$0xff]  ;;  %v10775_v42 = vld [vmem:[#allocation22_spill] sm:$0xff] }
 0x6a3   : > { %v5802_v29 = vsel %vm5675_vm5, %v5786_v53, %v5524_v48  ;;  %v5803_v63 = vsel %vm5675_vm5, %v5787_v18, %v5525_v38  ;;  %v5804_v31 = vsel %vm5675_vm5, %v5788_v14, %v5526_v50  ;;  %v5817_v46 = vsel %vm5692_vm7, %v5801_v5, %v5571_v23  ;;  %v10776_v48 = vld [vmem:[#allocation26_spill] sm:$0xff]  ;;  %v10777_v50 = vld [vmem:[#allocation76_spill] sm:$0xff] }
 0x6a4   : > { %v5818_v36 = vsel %vm5692_vm7, %v5802_v29, %v5572_v27  ;;  %v5819_v25 = vsel %vm5692_vm7, %v5803_v63, %v5573_v60  ;;  %v5820_v57 = vsel %vm5692_vm7, %v5804_v31, %v5574_v35  ;;  %v5833_v41 = vsel %vm2187_vm10, %v5817_v46, %v5619_v49  ;;  %v10778_v27 = vld [vmem:[#allocation58_spill] sm:$0xff]  ;;  %v10779_v35 = vld [vmem:[#allocation59_spill] sm:$0xff] }
 0x6a5   : > { %v5834_v2 = vsel %vm2187_vm10, %v5818_v36, %v5620_v30  ;;  %v5835_v51 = vsel %vm2187_vm10, %v5819_v25, %v5621_v44  ;;  %v5836_v0 = vsel %vm2187_vm10, %v5820_v57, %v5622_v6  ;;  %v5849_v12 = vsel %vm5726_vm8, %v5833_v41, %v10774_v61  ;;  %v6538_v6 = vld [vmem:[%s6779_s16 + $0x90] sm:$0xff]  ;;  %s5942_s16 = scalar_lea.sflag [#allocation5], %s8229_s22 }
 0x6a6   : > { %v5850_v7 = vsel %vm5726_vm8, %v5834_v2, %v10775_v42  ;;  %v5851_v38 = vsel %vm5726_vm8, %v5835_v51, %v10776_v48  ;;  %v5852_v23 = vsel %vm5726_vm8, %v5836_v0, %v10777_v50  ;;  %v5865_v60 = vsel %vm5743_vm9, %v5849_v12, %v10778_v27 }
 0x6a7   : > { %v5866_v49 = vsel %vm5743_vm9, %v5850_v7, %v10779_v35  ;;  %v5867_v30 = vsel %vm5743_vm9, %v5851_v38, %v10772_v43  ;;  %v5868_v44 = vsel %vm5743_vm9, %v5852_v23, %v10773_v47  ;;  %v5890_v9 = vadd.f32 %v6538_v6, %v5753_v62 }
 0x6a8   : > { %v5891_v52 = vadd.f32 %v6539_v17, %v5865_v60  ;;  %v5892_v26 = vadd.f32 %v6540_v34, %v5754_v39  ;;  %v5893_v4 = vadd.f32 %v6541_v20, %v5866_v49  ;;  %v5894_v43 = vadd.f32 %v6542_v21, %v5755_v55 }
 0x6a9   : > { %v5895_v47 = vadd.f32 %v6543_v11, %v5867_v30  ;;  %v5896_v40 = vadd.f32 %v6544_v24, %v5756_v16  ;;  %v5897_v45 = vadd.f32 %v6545_v10, %v5868_v44  ;;  %5922 = vst.msk [vmem:[%s8479_s14 + $0x90] sm:$0xff] %vm2475_vm2, %v5890_v9 }
 0x6aa   : > { %5923 = vst.msk [vmem:[%s8479_s14 + $0x98] sm:$0xff] %vm2475_vm2, %v5891_v52  ;;  %5924 = vst.msk [vmem:[%s8479_s14 + $0xa0] sm:$0xff] %vm2475_vm2, %v5892_v26 }
 0x6ab   : > { %5925 = vst.msk [vmem:[%s8479_s14 + $0xa8] sm:$0xff] %vm2475_vm2, %v5893_v4  ;;  %5926 = vst.msk [vmem:[%s8479_s14 + $0xb0] sm:$0xff] %vm2475_vm2, %v5894_v43 }
 0x6ac   : > { %5927 = vst.msk [vmem:[%s8479_s14 + $0xb8] sm:$0xff] %vm2475_vm2, %v5895_v47  ;;  %5928 = vst.msk [vmem:[%s8479_s14 + $0xc0] sm:$0xff] %vm2475_vm2, %v5896_v40 }
 0x6ad   : > { %5929 = vst.msk [vmem:[%s8479_s14 + $0xc8] sm:$0xff] %vm2475_vm2, %v5897_v45 }
 0x6ae   : > { %6587 = shalt.err (!%p6584_p9)
}
 0x6af   : > { %s6588_s14 = scalar_lea.hbm %s10201_s25, 4096  ;;  %s6592_s15 = scalar_lea.hbm %s10276_s11, 8192 }
 0x6b0   : > { %p6589_p10 = scmp.ne.s32.totalorder %s10201_s25, %s6588_s14  ;;  %p6593_p13 = scmp.lt.u32.totalorder %s10201_s25, %s10276_s11 }
 0x6b1   : > { %p6594_p0 = scmp.lt.u32.totalorder %s6592_s15, %s6588_s14  ;;  %p6596_p2 = scmp.lt.u32.totalorder %s6588_s14, %s10201_s25 }
 0x6b2   : > { %p6590_p11 = pnand %p6589_p10, %p6753_p5 }
 0x6b3   : > { %p6595_p1 = por %p6594_p0, %p6593_p13 }
 0x6b4   : > { %p6591_p12 = pneg %p6590_p11 }
 0x6b5   : > { %p6597_p3 = por %p6596_p2, %p6595_p1 }
 0x6b7   : > { %p6598_p4 = pnand %p6597_p3, %p6591_p12 }
 0x6b9   : > { %6601 = shalt.err (!%p6598_p4)
}
 0x6ba   : > { %6392 = dma.vmem_to_hbm [thread:$0]  (%p6753_p5), %s10203_s2, 4096, %s10201_s25, %s5942_s16, %s6652_s24, %s6652_s24, %s6653_s13  }
 0x6bb PF: > { %p6402_p7 = scmp.ge.s32.totalorder %s6640_s20, 2  ;;  %s5986_s30 = sand.u32 1, %s6628_s17  }
 0x6bc   : > { %s5987_s0 = scalar_lea.sflag [#allocation3], %s5986_s30 }
 0x6bd   : > { %p6396_p8 = pnand %p6402_p7, %p6757_p6 }
 0x6bf   : > { %6619 = dma.done.wait (!%p6396_p8), %s5987_s0, 1024  }
 0x6c0   : > { %6621 = vsyncadd (!%p6396_p8), %s5987_s0, 4294966272  ;;  %s5996_s27 = scalar_lea.sflag [#allocation5], %s5986_s30 }
 0x6c1   : > { %6623 = dma.done.wait (!%p6396_p8), %s5996_s27, 4096  }
 0x6c2   : > { %6625 = vsyncadd (!%p6396_p8), %s5996_s27, 4294963200  ;;  %p25_p5 = scmp.ge.s32.totalorder %s6740_s23, 4   ;;  %s10780_s17 = smov %s6632_s18 }
 0x6c3   : > { %s10781_s18 = smov %s6636_s19  ;;  %s10782_s19 = smov %s6751_s26 }
 0x6c4   : > { %s10783_s20 = smov %s6740_s23  ;;  %27 = sbr.rel (!%p25_p5) target bundleno = 9 (0x9), region = 115 }
 0x6cb   :  { %6001 = vsyncpa [#allocation3], 1 }
 0x6cc   :  { %6003 = vsyncpa [#allocation3 + $0x1], 1 }
 0x6cd   :  { %6004 = vsyncpa [#allocation5], 1 }
 0x6ce   :  { %6006 = vsyncpa [#allocation5 + $0x1], 1 }

</bundles_post_ra>
